<compile_context>
chip_gen: v7x
topology: tpu7x:2x2x1
jax: 0.10.0
libtpu: 0.0.40
codegen_flags: <defaults>
</compile_context>

<pallas_src>
import math

import jax
import jax.numpy as jnp
import numpy as np
from jax.experimental import pallas as pl
from jax.experimental.pallas import tpu as pltpu

LANES = 128  # lane-dense padding of the tiny class dim


# ----------------------------- Pallas kernel --------------------------------
def base_model_kernel(img_ref, conv_w_ref, conv_b_ref, head_w_ref, head_b_ref,
                      out_ref, pad_ref, tap_ref):
    # img_ref   : (Bt, H, W, Cin)      bf16  un-padded NHWC batch tile
    # conv_w_ref: (9*Cin, Cout)        bf16  rows ordered (kh, kw, cin)
    # conv_b_ref: (1, Cout)            f32
    # head_w_ref: (Cout, 128)          f32   pre-scaled by 1/(H*W), lane-padded
    # head_b_ref: (1, 128)             f32   lane-padded
    # out_ref   : (1, Bt, 128)         f32   lane-dense output block
    # pad_ref   : (Bt, H+2, W+2, Cin)  bf16  VMEM zero-padded image scratch
    # tap_ref   : (Bt*H*W, 9*Cin)      bf16  VMEM im2col scratch
    bt, h, w, cin = img_ref.shape
    cout = conv_w_ref.shape[1]
    hw = h * w

    # SAME padding done in VMEM (replaces wrapper-side jnp.pad + HBM round
    # trip).  Border is re-zeroed every step: cheap, and safe when the
    # "parallel" batch axis is split across TensorCores (scratch is per-core).
    pad_ref[...] = jnp.zeros_like(pad_ref)
    pad_ref[:, 1:h + 1, 1:w + 1, :] = img_ref[...]

    # im2col in VMEM: 9 contiguous shifted-window slices, one per 3x3 tap.
    # The (Bt,H,W,Cin)->(Bt*HW,Cin) reshape merges leading/sublane dims only
    # (W is a multiple of 8), so it is a layout-free relabel, not a shuffle.
    for k in range(9):
        i, j = k // 3, k % 3
        tap_ref[:, k * cin:(k + 1) * cin] = (
            pad_ref[:, i:i + h, j:j + w, :].reshape(bt * hw, cin))

    # ONE fused conv matmul (Bt*HW, 9*Cin) @ (9*Cin, Cout), f32 accumulation,
    # then bias + ReLU in a single VPU pass.
    acts = jnp.dot(tap_ref[...], conv_w_ref[...],
                   preferred_element_type=jnp.float32)          # (Bt*HW, Cout)
    acts = jnp.maximum(acts + conv_b_ref[...], 0.0)

    # Global average pool per sample: raw spatial sum (the 1/(H*W) scale is
    # folded into head_w).  Leading-dim split is layout-free; the reduction is
    # a sublane (XLU) reduce, off the VPU/MXU critical path.
    pooled = jnp.sum(acts.reshape(bt, hw, cout), axis=1)        # (Bt, Cout)

    # Classification head in f32; output lane-padded to 128 -> dense store.
    logits = jnp.dot(pooled, head_w_ref[...],
                     preferred_element_type=jnp.float32) + head_b_ref[...]
    out_ref[0] = logits                                          # (Bt, 128)


# ------------------------------- wrapper -------------------------------------
def _pick_batch_tile(n, max_tile=8):
    # Amortize the ~0.35us per-grid-step overhead over several samples, but
    # keep >=2 grid steps when n >= 2 so both v7x TensorCores get work.
    if n <= 1:
        return 1
    return max(1, min(max_tile, n // 2))


def base_model_forward(x_nchw, conv_w, conv_b, head_w, head_b, *, max_batch_tile=8):
    # x_nchw : (N, Cin, H, W) f32
    # conv_w : (Cout, Cin, 3, 3) f32 (PyTorch layout)   conv_b : (Cout,) f32
    # head_w : (Ncls, Cout) f32 (PyTorch Linear layout) head_b : (Ncls,) f32
    n, cin, h, w = x_nchw.shape
    cout = conv_w.shape[0]
    ncls = head_w.shape[0]

    # ---- weight prep (tiny, one-time under jit) ------------------------------
    conv_w_mat = (jnp.transpose(conv_w, (2, 3, 1, 0))        # (kh, kw, cin, cout)
                  .reshape(9 * cin, cout).astype(jnp.bfloat16))
    conv_b2 = conv_b.reshape(1, cout).astype(jnp.float32)
    head_w_scaled = (head_w.T / float(h * w)).astype(jnp.float32)   # fold 1/(H*W)
    head_w_pad = jnp.zeros((cout, LANES), jnp.float32).at[:, :ncls].set(head_w_scaled)
    head_b_pad = jnp.zeros((1, LANES), jnp.float32).at[:, :ncls].set(
        head_b.astype(jnp.float32).reshape(1, ncls))

    # ---- per-forward image prep: a single fused transpose + bf16 cast -------
    # (SAME padding and the padded-copy cast now happen inside the kernel.)
    x_nhwc = jnp.transpose(x_nchw, (0, 2, 3, 1)).astype(jnp.bfloat16)

    bt = _pick_batch_tile(n, max_batch_tile)
    n_steps = pl.cdiv(n, bt)
    n_pad = n_steps * bt
    if n_pad != n:
        x_nhwc = jnp.pad(x_nhwc, ((0, n_pad - n), (0, 0), (0, 0), (0, 0)))

    out_padded = pl.pallas_call(
        base_model_kernel,
        out_shape=jax.ShapeDtypeStruct((n_steps, bt, LANES), jnp.float32),
        grid_spec=pltpu.PrefetchScalarGridSpec(
            num_scalar_prefetch=0,
            grid=(n_steps,),                          # batch-tile axis, auto-pipelined
            in_specs=[
                pl.BlockSpec((bt, h, w, cin), lambda b: (b, 0, 0, 0)),
                # Constant-across-grid weight/bias blocks; pl.Buffered(1) would
                # drop their second pipeline buffer, but they total <20 KiB so
                # the default double-buffering is left in place.
                pl.BlockSpec((9 * cin, cout), lambda b: (0, 0)),
                pl.BlockSpec((1, cout), lambda b: (0, 0)),
                pl.BlockSpec((cout, LANES), lambda b: (0, 0)),
                pl.BlockSpec((1, LANES), lambda b: (0, 0)),
            ],
            out_specs=pl.BlockSpec((1, bt, LANES), lambda b: (b, 0, 0)),
            scratch_shapes=[
                pltpu.VMEM((bt, h + 2, w + 2, cin), jnp.bfloat16),   # padded image
                pltpu.VMEM((bt * h * w, 9 * cin), jnp.bfloat16),     # im2col
            ],
        ),
        compiler_params=pltpu.CompilerParams(
            # Batch axis "parallel" lets megacore shard it; if profiling on v7x
            # shows one idle TensorCore, switch to pltpu.CORE_PARALLEL.
            dimension_semantics=("parallel",),
            # ~5 MiB actually used at Bt=8 (lane-padded scratch included);
            # 32 MiB keeps headroom and stays under v7x's 64 MiB physical VMEM.
            vmem_limit_bytes=32 * 1024 * 1024,
        ),
    )(x_nhwc, conv_w_mat, conv_b2, head_w_pad, head_b_pad)

    return out_padded.reshape(n_pad, LANES)[:n, :ncls]


# ----------------------- deterministic params / reference --------------------
def init_params(key, cin=4, cout=32, ncls=8, k=3):
    k_conv, k_hw, k_hb = jax.random.split(key, 3)

    # Conv2d: kaiming_uniform_(mode='fan_in', nonlinearity='relu'); bias = 0.
    fan_in = cin * k * k
    bound = math.sqrt(2.0) * math.sqrt(3.0 / fan_in)
    conv_w = jax.random.uniform(k_conv, (cout, cin, k, k),
                                minval=-bound, maxval=bound, dtype=jnp.float32)
    conv_b = jnp.zeros((cout,), jnp.float32)

    # Linear head keeps PyTorch default init (BaseModel.initialize skips Linear).
    hb = 1.0 / math.sqrt(cout)
    head_w = jax.random.uniform(k_hw, (ncls, cout), minval=-hb, maxval=hb,
                                dtype=jnp.float32)
    head_b = jax.random.uniform(k_hb, (ncls,), minval=-hb, maxval=hb,
                                dtype=jnp.float32)
    return conv_w, conv_b, head_w, head_b


def reference_forward(x, conv_w, conv_b, head_w, head_b):
    y = jax.lax.conv_general_dilated(x, conv_w, window_strides=(1, 1),
                                     padding="SAME",
                                     dimension_numbers=("NCHW", "OIHW", "NCHW"))
    y = jnp.maximum(y + conv_b[None, :, None, None], 0.0)
    pooled = jnp.mean(y, axis=(2, 3))
    return pooled @ head_w.T + head_b


if __name__ == "__main__":
    key = jax.random.PRNGKey(0)
    k_x, k_p = jax.random.split(key)

    N, CIN, H, W, COUT, NCLS = 2, 4, 16, 16, 32, 8
    x = jax.random.normal(k_x, (N, CIN, H, W), dtype=jnp.float32)
    conv_w, conv_b, head_w, head_b = init_params(k_p, cin=CIN, cout=COUT, ncls=NCLS)

    fwd = jax.jit(base_model_forward)
    y = fwd(x, conv_w, conv_b, head_w, head_b)
    jax.block_until_ready(y)
    assert y.shape == (N, NCLS)

    # Pure-JAX reference (f32); kernel uses bf16 conv operands -> loose tol.
    y_ref = reference_forward(x, conv_w, conv_b, head_w, head_b)
    np.testing.assert_allclose(np.asarray(y), np.asarray(y_ref),
                               rtol=3e-2, atol=3e-2)

    print("KERNEL_OK")
</pallas_src>

<mosaic_0001>
module attributes {stable_mosaic.version = 11 : i64} {
  func.func @base_model_kernel(%arg0: i32, %arg1: memref<1x16x16x4xbf16, #tpu.memory_space<vmem>>, %arg2: memref<36x32xbf16, #tpu.memory_space<vmem>>, %arg3: memref<1x32xf32, #tpu.memory_space<vmem>>, %arg4: memref<32x128xf32, #tpu.memory_space<vmem>>, %arg5: memref<1x128xf32, #tpu.memory_space<vmem>>, %arg6: memref<1x1x128xf32, #tpu.memory_space<vmem>>, %arg7: memref<1x18x18x4xbf16, #tpu.memory_space<vmem>>, %arg8: memref<256x36xbf16, #tpu.memory_space<vmem>>) attributes {dimension_semantics = [#tpu.dimension_semantics<parallel>], iteration_bounds = array<i64: 2>, scalar_prefetch = 0 : i64, scratch_operands = 2 : i64, tpu.core_type = #tpu.core_type<tc>, window_params = [{transform_indices = @transform_0, window_bounds = array<i64: 1, 16, 16, 4>}, {pipeline_mode = #tpu.pipeline_mode<synchronous>, transform_indices = @transform_1, window_bounds = array<i64: 36, 32>}, {pipeline_mode = #tpu.pipeline_mode<synchronous>, transform_indices = @transform_2, window_bounds = array<i64: 1, 32>}, {pipeline_mode = #tpu.pipeline_mode<synchronous>, transform_indices = @transform_3, window_bounds = array<i64: 32, 128>}, {pipeline_mode = #tpu.pipeline_mode<synchronous>, transform_indices = @transform_4, window_bounds = array<i64: 1, 128>}, {transform_indices = @transform_5, window_bounds = array<i64: 1, 1, 128>}]} {
    %cst = arith.constant 0.000000e+00 : bf16
    %0 = vector.broadcast %cst : bf16 to vector<1x18x18x4xbf16>
    %c0 = arith.constant 0 : index
    %c0_0 = arith.constant 0 : index
    %c0_1 = arith.constant 0 : index
    %c0_2 = arith.constant 0 : index
    %1 = vector.load %arg7[%c0, %c0_0, %c0_1, %c0_2] : memref<1x18x18x4xbf16, #tpu.memory_space<vmem>>, vector<1x18x18x4xbf16>
    tpu.vector_store %arg7[%c0, %c0_0, %c0_1, %c0_2], %0 {strides = array<i32>} : memref<1x18x18x4xbf16, #tpu.memory_space<vmem>>, vector<1x18x18x4xbf16>,
    %c0_3 = arith.constant 0 : index
    %c0_4 = arith.constant 0 : index
    %c0_5 = arith.constant 0 : index
    %c0_6 = arith.constant 0 : index
    %2 = vector.load %arg1[%c0_3, %c0_4, %c0_5, %c0_6] : memref<1x16x16x4xbf16, #tpu.memory_space<vmem>>, vector<1x16x16x4xbf16>
    %c0_7 = arith.constant 0 : index
    %c1 = arith.constant 1 : index
    %c1_8 = arith.constant 1 : index
    %c0_9 = arith.constant 0 : index
    %3 = vector.load %arg7[%c0_7, %c1, %c1_8, %c0_9] : memref<1x18x18x4xbf16, #tpu.memory_space<vmem>>, vector<1x16x16x4xbf16>
    tpu.vector_store %arg7[%c0_7, %c1, %c1_8, %c0_9], %2 {strides = array<i32>} : memref<1x18x18x4xbf16, #tpu.memory_space<vmem>>, vector<1x16x16x4xbf16>,
    %c0_10 = arith.constant 0 : index
    %c0_11 = arith.constant 0 : index
    %c0_12 = arith.constant 0 : index
    %c0_13 = arith.constant 0 : index
    %4 = vector.load %arg7[%c0_10, %c0_11, %c0_12, %c0_13] : memref<1x18x18x4xbf16, #tpu.memory_space<vmem>>, vector<1x16x16x4xbf16>
    %5 = vector.shape_cast %4 : vector<1x16x16x4xbf16> to vector<256x4xbf16>
    %c0_14 = arith.constant 0 : index
    %c0_15 = arith.constant 0 : index
    %6 = vector.load %arg8[%c0_14, %c0_15] : memref<256x36xbf16, #tpu.memory_space<vmem>>, vector<256x4xbf16>
    tpu.vector_store %arg8[%c0_14, %c0_15], %5 {strides = array<i32>} : memref<256x36xbf16, #tpu.memory_space<vmem>>, vector<256x4xbf16>,
    %c0_16 = arith.constant 0 : index
    %c0_17 = arith.constant 0 : index
    %c1_18 = arith.constant 1 : index
    %c0_19 = arith.constant 0 : index
    %7 = vector.load %arg7[%c0_16, %c0_17, %c1_18, %c0_19] : memref<1x18x18x4xbf16, #tpu.memory_space<vmem>>, vector<1x16x16x4xbf16>
    %8 = vector.shape_cast %7 : vector<1x16x16x4xbf16> to vector<256x4xbf16>
    %c0_20 = arith.constant 0 : index
    %c4 = arith.constant 4 : index
    %9 = vector.load %arg8[%c0_20, %c4] : memref<256x36xbf16, #tpu.memory_space<vmem>>, vector<256x4xbf16>
    tpu.vector_store %arg8[%c0_20, %c4], %8 {strides = array<i32>} : memref<256x36xbf16, #tpu.memory_space<vmem>>, vector<256x4xbf16>,
    %c0_21 = arith.constant 0 : index
    %c0_22 = arith.constant 0 : index
    %c2 = arith.constant 2 : index
    %c0_23 = arith.constant 0 : index
    %10 = vector.load %arg7[%c0_21, %c0_22, %c2, %c0_23] : memref<1x18x18x4xbf16, #tpu.memory_space<vmem>>, vector<1x16x16x4xbf16>
    %11 = vector.shape_cast %10 : vector<1x16x16x4xbf16> to vector<256x4xbf16>
    %c0_24 = arith.constant 0 : index
    %c8 = arith.constant 8 : index
    %12 = vector.load %arg8[%c0_24, %c8] : memref<256x36xbf16, #tpu.memory_space<vmem>>, vector<256x4xbf16>
    tpu.vector_store %arg8[%c0_24, %c8], %11 {strides = array<i32>} : memref<256x36xbf16, #tpu.memory_space<vmem>>, vector<256x4xbf16>,
    %c0_25 = arith.constant 0 : index
    %c1_26 = arith.constant 1 : index
    %c0_27 = arith.constant 0 : index
    %c0_28 = arith.constant 0 : index
    %13 = vector.load %arg7[%c0_25, %c1_26, %c0_27, %c0_28] : memref<1x18x18x4xbf16, #tpu.memory_space<vmem>>, vector<1x16x16x4xbf16>
    %14 = vector.shape_cast %13 : vector<1x16x16x4xbf16> to vector<256x4xbf16>
    %c0_29 = arith.constant 0 : index
    %c12 = arith.constant 12 : index
    %15 = vector.load %arg8[%c0_29, %c12] : memref<256x36xbf16, #tpu.memory_space<vmem>>, vector<256x4xbf16>
    tpu.vector_store %arg8[%c0_29, %c12], %14 {strides = array<i32>} : memref<256x36xbf16, #tpu.memory_space<vmem>>, vector<256x4xbf16>,
    %c0_30 = arith.constant 0 : index
    %c1_31 = arith.constant 1 : index
    %c1_32 = arith.constant 1 : index
    %c0_33 = arith.constant 0 : index
    %16 = vector.load %arg7[%c0_30, %c1_31, %c1_32, %c0_33] : memref<1x18x18x4xbf16, #tpu.memory_space<vmem>>, vector<1x16x16x4xbf16>
    %17 = vector.shape_cast %16 : vector<1x16x16x4xbf16> to vector<256x4xbf16>
    %c0_34 = arith.constant 0 : index
    %c16 = arith.constant 16 : index
    %18 = vector.load %arg8[%c0_34, %c16] : memref<256x36xbf16, #tpu.memory_space<vmem>>, vector<256x4xbf16>
    tpu.vector_store %arg8[%c0_34, %c16], %17 {strides = array<i32>} : memref<256x36xbf16, #tpu.memory_space<vmem>>, vector<256x4xbf16>,
    %c0_35 = arith.constant 0 : index
    %c1_36 = arith.constant 1 : index
    %c2_37 = arith.constant 2 : index
    %c0_38 = arith.constant 0 : index
    %19 = vector.load %arg7[%c0_35, %c1_36, %c2_37, %c0_38] : memref<1x18x18x4xbf16, #tpu.memory_space<vmem>>, vector<1x16x16x4xbf16>
    %20 = vector.shape_cast %19 : vector<1x16x16x4xbf16> to vector<256x4xbf16>
    %c0_39 = arith.constant 0 : index
    %c20 = arith.constant 20 : index
    %21 = vector.load %arg8[%c0_39, %c20] : memref<256x36xbf16, #tpu.memory_space<vmem>>, vector<256x4xbf16>
    tpu.vector_store %arg8[%c0_39, %c20], %20 {strides = array<i32>} : memref<256x36xbf16, #tpu.memory_space<vmem>>, vector<256x4xbf16>,
    %c0_40 = arith.constant 0 : index
    %c2_41 = arith.constant 2 : index
    %c0_42 = arith.constant 0 : index
    %c0_43 = arith.constant 0 : index
    %22 = vector.load %arg7[%c0_40, %c2_41, %c0_42, %c0_43] : memref<1x18x18x4xbf16, #tpu.memory_space<vmem>>, vector<1x16x16x4xbf16>
    %23 = vector.shape_cast %22 : vector<1x16x16x4xbf16> to vector<256x4xbf16>
    %c0_44 = arith.constant 0 : index
    %c24 = arith.constant 24 : index
    %24 = vector.load %arg8[%c0_44, %c24] : memref<256x36xbf16, #tpu.memory_space<vmem>>, vector<256x4xbf16>
    tpu.vector_store %arg8[%c0_44, %c24], %23 {strides = array<i32>} : memref<256x36xbf16, #tpu.memory_space<vmem>>, vector<256x4xbf16>,
    %c0_45 = arith.constant 0 : index
    %c2_46 = arith.constant 2 : index
    %c1_47 = arith.constant 1 : index
    %c0_48 = arith.constant 0 : index
    %25 = vector.load %arg7[%c0_45, %c2_46, %c1_47, %c0_48] : memref<1x18x18x4xbf16, #tpu.memory_space<vmem>>, vector<1x16x16x4xbf16>
    %26 = vector.shape_cast %25 : vector<1x16x16x4xbf16> to vector<256x4xbf16>
    %c0_49 = arith.constant 0 : index
    %c28 = arith.constant 28 : index
    %27 = vector.load %arg8[%c0_49, %c28] : memref<256x36xbf16, #tpu.memory_space<vmem>>, vector<256x4xbf16>
    tpu.vector_store %arg8[%c0_49, %c28], %26 {strides = array<i32>} : memref<256x36xbf16, #tpu.memory_space<vmem>>, vector<256x4xbf16>,
    %c0_50 = arith.constant 0 : index
    %c2_51 = arith.constant 2 : index
    %c2_52 = arith.constant 2 : index
    %c0_53 = arith.constant 0 : index
    %28 = vector.load %arg7[%c0_50, %c2_51, %c2_52, %c0_53] : memref<1x18x18x4xbf16, #tpu.memory_space<vmem>>, vector<1x16x16x4xbf16>
    %29 = vector.shape_cast %28 : vector<1x16x16x4xbf16> to vector<256x4xbf16>
    %c0_54 = arith.constant 0 : index
    %c32 = arith.constant 32 : index
    %30 = vector.load %arg8[%c0_54, %c32] : memref<256x36xbf16, #tpu.memory_space<vmem>>, vector<256x4xbf16>
    tpu.vector_store %arg8[%c0_54, %c32], %29 {strides = array<i32>} : memref<256x36xbf16, #tpu.memory_space<vmem>>, vector<256x4xbf16>,
    %c0_55 = arith.constant 0 : index
    %c0_56 = arith.constant 0 : index
    %31 = vector.load %arg8[%c0_55, %c0_56] : memref<256x36xbf16, #tpu.memory_space<vmem>>, vector<256x36xbf16>
    %c0_57 = arith.constant 0 : index
    %c0_58 = arith.constant 0 : index
    %32 = vector.load %arg2[%c0_57, %c0_58] : memref<36x32xbf16, #tpu.memory_space<vmem>>, vector<36x32xbf16>
    %cst_59 = arith.constant dense<0.000000e+00> : vector<256x32xf32>
    %33 = tpu.matmul %31, %32, %cst_59 {dimension_numbers = #tpu.dot_dimension_numbers<[1], [0], [0], [1], [0, 0, 1, 1], [], []>} : vector<256x36xbf16>, vector<36x32xbf16>, vector<256x32xf32> -> vector<256x32xf32>
    %c0_60 = arith.constant 0 : index
    %c0_61 = arith.constant 0 : index
    %34 = vector.load %arg3[%c0_60, %c0_61] : memref<1x32xf32, #tpu.memory_space<vmem>>, vector<1x32xf32>
    %35 = vector.broadcast %34 : vector<1x32xf32> to vector<256x32xf32>
    %36 = arith.addf %33, %35 : vector<256x32xf32>
    %cst_62 = arith.constant 0.000000e+00 : f32
    %37 = vector.broadcast %cst_62 : f32 to vector<256x32xf32>
    %38 = arith.maximumf %36, %37 : vector<256x32xf32>
    %39 = vector.shape_cast %38 : vector<256x32xf32> to vector<1x256x32xf32>
    %cst_63 = arith.constant dense<0.000000e+00> : vector<1x32xf32>
    %40 = vector.multi_reduction <add>, %39, %cst_63 [1] : vector<1x256x32xf32> to vector<1x32xf32>
    %c0_64 = arith.constant 0 : index
    %c0_65 = arith.constant 0 : index
    %41 = vector.load %arg4[%c0_64, %c0_65] : memref<32x128xf32, #tpu.memory_space<vmem>>, vector<32x128xf32>
    %cst_66 = arith.constant dense<0.000000e+00> : vector<1x128xf32>
    %42 = tpu.matmul %40, %41, %cst_66 {dimension_numbers = #tpu.dot_dimension_numbers<[1], [0], [0], [1], [0, 0, 1, 1], [], []>} : vector<1x32xf32>, vector<32x128xf32>, vector<1x128xf32> -> vector<1x128xf32>
    %c0_67 = arith.constant 0 : index
    %c0_68 = arith.constant 0 : index
    %43 = vector.load %arg5[%c0_67, %c0_68] : memref<1x128xf32, #tpu.memory_space<vmem>>, vector<1x128xf32>
    %44 = arith.addf %42, %43 : vector<1x128xf32>
    %c0_69 = arith.constant 0 : index
    %c0_70 = arith.constant 0 : index
    %c0_71 = arith.constant 0 : index
    %45 = vector.load %arg6[%c0_69, %c0_70, %c0_71] : memref<1x1x128xf32, #tpu.memory_space<vmem>>, vector<1x1x128xf32>
    %46 = vector.shape_cast %45 : vector<1x1x128xf32> to vector<1x128xf32>
    %47 = vector.shape_cast %44 : vector<1x128xf32> to vector<1x1x128xf32>
    tpu.vector_store %arg6[%c0_69, %c0_70, %c0_71], %47 {strides = array<i32>} : memref<1x1x128xf32, #tpu.memory_space<vmem>>, vector<1x1x128xf32>,
    return
  }
  func.func @transform_0(%arg0: i32) -> (i32, i32, i32, i32) {
    %c0_i32 = arith.constant 0 : i32
    %c0_i32_0 = arith.constant 0 : i32
    %c0_i32_1 = arith.constant 0 : i32
    %c0_i32_2 = arith.constant 0 : i32
    return %arg0, %c0_i32, %c0_i32_0, %c0_i32_1 : i32, i32, i32, i32
  }
  func.func @transform_1(%arg0: i32) -> (i32, i32) {
    %c0_i32 = arith.constant 0 : i32
    %c0_i32_0 = arith.constant 0 : i32
    %c0_i32_1 = arith.constant 0 : i32
    return %c0_i32, %c0_i32_0 : i32, i32
  }
  func.func @transform_2(%arg0: i32) -> (i32, i32) {
    %c0_i32 = arith.constant 0 : i32
    %c0_i32_0 = arith.constant 0 : i32
    %c0_i32_1 = arith.constant 0 : i32
    return %c0_i32, %c0_i32_0 : i32, i32
  }
  func.func @transform_3(%arg0: i32) -> (i32, i32) {
    %c0_i32 = arith.constant 0 : i32
    %c0_i32_0 = arith.constant 0 : i32
    %c0_i32_1 = arith.constant 0 : i32
    return %c0_i32, %c0_i32_0 : i32, i32
  }
  func.func @transform_4(%arg0: i32) -> (i32, i32) {
    %c0_i32 = arith.constant 0 : i32
    %c0_i32_0 = arith.constant 0 : i32
    %c0_i32_1 = arith.constant 0 : i32
    return %c0_i32, %c0_i32_0 : i32, i32
  }
  func.func @transform_5(%arg0: i32) -> (i32, i32, i32) {
    %c0_i32 = arith.constant 0 : i32
    %c0_i32_0 = arith.constant 0 : i32
    %c0_i32_1 = arith.constant 0 : i32
    return %arg0, %c0_i32, %c0_i32_0 : i32, i32, i32
  }
}

</mosaic_0001>

<bundles_post_ra>
// kernel: base_model_forward.1
= control target key start
LH: loop header
LB: loop body
LE: loop exit
PB: predicated region body
PF: predicated region fallthrough
CT: control target
= control target key end

     0   :  { %10 = vsyncpa [#allocation5], 0  ;;  %s6160_s0 = inlined_call_operand.vmem [shape: bf16[2,16,16,4], index: 0, kind: input, shape index: {}]   ;;  %s6161_s1 = inlined_call_operand.vmem [shape: bf16[36,32], index: 1, kind: input, shape index: {}]   ;;  %s6162_s2 = inlined_call_operand.vmem [shape: f32[1,32], index: 2, kind: input, shape index: {}]   ;;  %s6163_s3 = inlined_call_operand.vmem [shape: f32[32,128], index: 3, kind: input, shape index: {}]   ;;  %s6164_s4 = inlined_call_operand.vmem [shape: f32[1,128], index: 4, kind: input, shape index: {}]   ;;  %s6165_s5 = inlined_call_operand.hbm [shape: f32[2,1,128], index: 5, kind: output, shape index: {}]  }
   0x1   :  { %12 = vsyncpa [#allocation5 + $0x1], 0  ;;  %s4881_s18 = smov 0   ;;  %s4883_s19 = smov 0  }
   0x2   :  { %s4885_s20 = smov 0   ;;  %s4887_s21 = smov 0  }
   0x3 LB: > { %s4902_s22 = sadd.s32 4294967295, %s4836_s21   ;;  %s4362_s23 = sadd.s32 4294967294, %s4836_s21   ;;  %s4836_s21 = sphi %s4887_s21, %s6191_s21   ;;  %s4832_s20 = sphi %s4885_s20, %s6190_s20   ;;  %s4828_s19 = sphi %s4883_s19, %s6189_s19   ;;  %s4824_s18 = sphi %s4881_s18, %s6188_s18  }
   0x4   : > { %s4906_s24 = sadd.s32 1, %s4836_s21   ;;  %s135_s25 = sadd.s32 1, %s4832_s20 }
   0x5   : > { %s132_s26 = ssub.s32 %s4836_s21, %s4906_s24  ;;  %p145_p0 = scmp.ne.s32.totalorder %s4832_s20, %s4828_s19 }
   0x6   : > { %p133_p1 = scmp.eq.s32.totalorder %s132_s26, 0  ;;  %p146_p2 = scmp.eq.s32.totalorder %s4902_s22, 1 }
   0x7   : > { %p151_p3 = scmp.ne.s32.totalorder %s4828_s19, %s4824_s18  ;;  %p152_p4 = scmp.eq.s32.totalorder %s4362_s23, 1 }
   0x8   : > { %s4917_s27 = scalar_select %p133_p1, %s4832_s20, %s135_s25  }
   0x9   : > { %p4919_p5 = por %p146_p2, %p145_p0  ;;  %p4923_p6 = por %p152_p4, %p151_p3 }
   0xa   : > { %p4365_p7 = scmp.ge.s32.totalorder %s4836_s21, 1  ;;  %p190_p8 = scmp.lt.s32.totalorder %s4836_s21, 3 }
   0xc   : > { %p191_p9 = pnand %p4365_p7, %p190_p8 }
   0xd   : > { %vm223_vm0 = vcmask (!%p191_p9), 27648   ;;  %vm226_vm1 = vcmask (!%p191_p9), 24576   ;;  %v4838_v0 = vmov (!%p191_p9), 0   ;;  %p217_p10 = scmp.lt.s32.totalorder (!%p191_p9), %s4902_s22, 1  ;;  %vm945_vm2 = vsmask.f32 (!%p191_p9), 3328 }
   0xe   : > { %194 = sbr.rel (%p191_p9) target bundleno = 997 (0x3e5), region = 40  ;;  %224 = vst.msk [vmem:[#allocation2] sm:$0xf] (!%p191_p9), %vm223_vm0, %v4838_v0  ;;  %225 = vst.msk [vmem:[#allocation2 + $0x4] sm:$0xf] (!%p191_p9), %vm223_vm0, %v4838_v0  ;;  %vm1541_vm4 = vcmask (!%p191_p9), 1042432  }
   0xf   : > { %227 = vst.msk [vmem:[#allocation2 + $0x8] sm:$0x1] (!%p191_p9), %vm226_vm1, %v4838_v0  ;;  %230 = vst.msk [vmem:[#allocation2 + $0x14] sm:$0x1] (!%p191_p9), %vm226_vm1, %v4838_v0  ;;  %vm946_vm3 = vsmask.f32 (!%p191_p9), 7440 }
  0x10   : > { %228 = vst.msk [vmem:[#allocation2 + $0xc] sm:$0xf] (!%p191_p9), %vm223_vm0, %v4838_v0  ;;  %229 = vst.msk [vmem:[#allocation2 + $0x10] sm:$0xf] (!%p191_p9), %vm223_vm0, %v4838_v0  ;;  %vm1542_vm5 = vcmask (!%p191_p9), 1046532   ;;  %s4839_s10 = smov (!%p191_p9), 8  }
  0x11   : > { %231 = vst.msk [vmem:[#allocation2 + $0x18] sm:$0xf] (!%p191_p9), %vm223_vm0, %v4838_v0  ;;  %232 = vst.msk [vmem:[#allocation2 + $0x1c] sm:$0xf] (!%p191_p9), %vm223_vm0, %v4838_v0  ;;  %vm311_vm6 = vsmask.f32 (!%p191_p9), 256 }
  0x12   : > { %233 = vst.msk [vmem:[#allocation2 + $0x20] sm:$0x1] (!%p191_p9), %vm226_vm1, %v4838_v0  ;;  %236 = vst.msk [vmem:[#allocation2 + $0x2c] sm:$0x1] (!%p191_p9), %vm226_vm1, %v4838_v0  ;;  %vm312_vm7 = vsmask.f32 (!%p191_p9), 4368 }
  0x13   : > { %234 = vst.msk [vmem:[#allocation2 + $0x24] sm:$0xf] (!%p191_p9), %vm223_vm0, %v4838_v0  ;;  %235 = vst.msk [vmem:[#allocation2 + $0x28] sm:$0xf] (!%p191_p9), %vm223_vm0, %v4838_v0  ;;  %vm636_vm8 = vsmask.f32 (!%p191_p9), 7938 }
  0x14   : > { %237 = vst.msk [vmem:[#allocation2 + $0x30] sm:$0xf] (!%p191_p9), %vm223_vm0, %v4838_v0  ;;  %238 = vst.msk [vmem:[#allocation2 + $0x34] sm:$0xf] (!%p191_p9), %vm223_vm0, %v4838_v0  ;;  %s4840_s11 = smov (!%p191_p9), 4   ;;  %s4841_s12 = smov (!%p191_p9), 12  }
  0x15   : > { %239 = vst.msk [vmem:[#allocation2 + $0x38] sm:$0x1] %vm226_vm1, %v4838_v0  ;;  %242 = vst.msk [vmem:[#allocation2 + $0x44] sm:$0x1] %vm226_vm1, %v4838_v0  ;;  %s218_s30 = scalar_select %p217_p10, %s4902_s22, 1  ;;  %vm880_vm14 = vcmask 31744  }
  0x16   : > { %240 = vst.msk [vmem:[#allocation2 + $0x3c] sm:$0xf] %vm223_vm0, %v4838_v0  ;;  %241 = vst.msk [vmem:[#allocation2 + $0x40] sm:$0xf] %vm223_vm0, %v4838_v0  ;;  %v897_v2 = vld [vmem:[#allocation2] sm:$0xf] }
  0x17   : > { %243 = vst.msk [vmem:[#allocation2 + $0x48] sm:$0xf] %vm223_vm0, %v4838_v0  ;;  %244 = vst.msk [vmem:[#allocation2 + $0x4c] sm:$0xf] %vm223_vm0, %v4838_v0  ;;  %s4584_s6 = sshll.u32 %s218_s30, 7  ;;  %v949_v6 = vshrl.u32 %v897_v2, 16 }
  0x18   : > { %245 = vst.msk [vmem:[#allocation2 + $0x50] sm:$0x1] %vm226_vm1, %v4838_v0  ;;  %248 = vst.msk [vmem:[#allocation2 + $0x5c] sm:$0x1] %vm226_vm1, %v4838_v0  ;;  %s4988_s9 = scalar_lea.vmem %s6160_s0, %s4584_s6  ;;  %v898_v3 = vld [vmem:[#allocation2 + $0x4] sm:$0xf] }
  0x19   : > { %246 = vst.msk [vmem:[#allocation2 + $0x54] sm:$0xf] %vm223_vm0, %v4838_v0  ;;  %247 = vst.msk [vmem:[#allocation2 + $0x58] sm:$0xf] %vm223_vm0, %v4838_v0  ;;  %v279_v1 = vld [vmem:[%s4988_s9] sm:$0xf] }
  0x1a   : > { %249 = vst.msk [vmem:[#allocation2 + $0x60] sm:$0xf] %vm223_vm0, %v4838_v0  ;;  %250 = vst.msk [vmem:[#allocation2 + $0x64] sm:$0xf] %vm223_vm0, %v4838_v0  ;;  %v899_v4 = vld [vmem:[#allocation2 + $0x8] sm:$0x1] }
  0x1b   : > { %251 = vst.msk [vmem:[#allocation2 + $0x68] sm:$0x1] %vm226_vm1, %v4838_v0  ;;  %254 = vst.msk [vmem:[#allocation2 + $0x74] sm:$0x1] %vm226_vm1, %v4838_v0  ;;  %v280_v5 = vld [vmem:[%s4988_s9 + $0x4] sm:$0xf] }
  0x1c   : > { %252 = vst.msk [vmem:[#allocation2 + $0x6c] sm:$0xf] %vm223_vm0, %v4838_v0  ;;  %253 = vst.msk [vmem:[#allocation2 + $0x70] sm:$0xf] %vm223_vm0, %v4838_v0  ;;  %v952_v7 = vshll.u32 %v897_v2, 16  ;;  %v958_v8 = vshll.u32 %v898_v3, 16 }
  0x1d   : > { %255 = vst.msk [vmem:[#allocation2 + $0x78] sm:$0xf] %vm223_vm0, %v4838_v0  ;;  %256 = vst.msk [vmem:[#allocation2 + $0x7c] sm:$0xf] %vm223_vm0, %v4838_v0  ;;  %v962_v9 = vshrl.u32 %v898_v3, 16  ;;  %v968_v11 = vshll.u32 %v899_v4, 16 }
  0x1e   : > { %257 = vst.msk [vmem:[#allocation2 + $0x80] sm:$0x1] %vm226_vm1, %v4838_v0  ;;  %260 = vst.msk [vmem:[#allocation2 + $0x8c] sm:$0x1] %vm226_vm1, %v4838_v0  ;;  %v1445_v10 = vld [vmem:[#allocation2] sm:$0xe] }
  0x1f   : > { %258 = vst.msk [vmem:[#allocation2 + $0x84] sm:$0xf] %vm223_vm0, %v4838_v0  ;;  %259 = vst.msk [vmem:[#allocation2 + $0x88] sm:$0xf] %vm223_vm0, %v4838_v0  ;;  %v1446_v12 = vld [vmem:[#allocation2 + $0x4] sm:$0xf] }
  0x20   : > { %261 = vst.msk [vmem:[#allocation2 + $0x90] sm:$0xf] %vm223_vm0, %v4838_v0  ;;  %262 = vst.msk [vmem:[#allocation2 + $0x94] sm:$0xf] %vm223_vm0, %v4838_v0  ;;  %v1447_v13 = vld [vmem:[#allocation2 + $0x8] sm:$0x1] }
  0x21   : > { %263 = vst.msk [vmem:[#allocation2 + $0x98] sm:$0x1] %vm226_vm1, %v4838_v0  ;;  %266 = vst.msk [vmem:[#allocation2 + $0xa4] sm:$0x1] %vm226_vm1, %v4838_v0  ;;  %v4400_v14 = vrot.slane %v1445_v10, 9  ;;  %v951_v15 = vrot.slane %v949_v6, 4 }
  0x22   : > { %264 = vst.msk [vmem:[#allocation2 + $0x9c] sm:$0xf] %vm223_vm0, %v4838_v0  ;;  %265 = vst.msk [vmem:[#allocation2 + $0xa0] sm:$0xf] %vm223_vm0, %v4838_v0  ;;  %v954_v16 = vrot.slane %v952_v7, 5  ;;  %v960_v17 = vrot.slane %v958_v8, 5 }
  0x23   : > { %267 = vst.msk [vmem:[#allocation2 + $0xa8] sm:$0xf] %vm223_vm0, %v4838_v0  ;;  %268 = vst.msk [vmem:[#allocation2 + $0xac] sm:$0xf] %vm223_vm0, %v4838_v0  ;;  %v964_v18 = vrot.slane %v962_v9, 4  ;;  %v970_v20 = vrot.slane %v968_v11, 5 }
  0x24   : > { %269 = vst.msk [vmem:[#allocation2 + $0xb0] sm:$0x1] %vm226_vm1, %v4838_v0  ;;  %272 = vst.msk [vmem:[#allocation2 + $0xbc] sm:$0x1] %vm226_vm1, %v4838_v0  ;;  %v1546_v21 = vrot.slane %v1446_v12, 5  ;;  %v1549_v22 = vrot.slane %v1447_v13, 5  ;;  %v955_v25 = vor.u32 %v954_v16, %v951_v15 }
  0x25   : > { %270 = vst.msk [vmem:[#allocation2 + $0xb4] sm:$0xf] %vm223_vm0, %v4838_v0  ;;  %271 = vst.msk [vmem:[#allocation2 + $0xb8] sm:$0xf] %vm223_vm0, %v4838_v0  ;;  %v315_v23 = vshrl.u32 %v279_v1, 16  ;;  %v965_v26 = vor.u32 %v964_v18, %v960_v17  ;;  %v318_v27 = vshll.u32 %v279_v1, 16 }
  0x26   : > { %273 = vst.msk [vmem:[#allocation2 + $0xc0] sm:$0xf] %vm223_vm0, %v4838_v0  ;;  %274 = vst.msk [vmem:[#allocation2 + $0xc4] sm:$0xf] %vm223_vm0, %v4838_v0  ;;  %v281_v24 = vld [vmem:[%s4988_s9 + $0x8] sm:$0xf] }
  0x27   : > { %275 = vst.msk [vmem:[#allocation2 + $0xc8] sm:$0x1] %vm226_vm1, %v4838_v0  ;;  %278 = vst.msk [vmem:[#allocation2 + $0xd4] sm:$0x1] %vm226_vm1, %v4838_v0  ;;  %v323_v28 = vshrl.u32 %v280_v5, 16  ;;  %v1548_v31 = vrot.slane %v1546_v21, 4 }
  0x28   : > { %276 = vst.msk [vmem:[#allocation2 + $0xcc] sm:$0xf] %vm223_vm0, %v4838_v0  ;;  %277 = vst.msk [vmem:[#allocation2 + $0xd0] sm:$0xf] %vm223_vm0, %v4838_v0  ;;  %v317_v32 = vrot.slane %v315_v23, 7  ;;  %v326_v33 = vshll.u32 %v280_v5, 16 }
  0x29   : > { %vm4994_vm9 = vmor %vm1541_vm4, %vm1542_vm5  ;;  %v956_v34 = vrot.slane %v955_v25, 4  ;;  %v966_v35 = vrot.slane %v965_v26, 4  ;;  %v325_v36 = vrot.slane %v323_v28, 7  ;;  %v638_v38 = vld [vmem:[#allocation2 + $0xc] sm:$0xf]  ;;  %v332_v39 = vshrl.u32 %v281_v24, 16 }
  0x2a   : > { %vm5001_vm10 = vmor %vm945_vm2, %vm946_vm3  ;;  %v1547_v30 = vsel %vm4994_vm9, %v4400_v14, %v1546_v21  ;;  %v1550_v40 = vsel %vm4994_vm9, %v1548_v31, %v1549_v22  ;;  %v320_v42 = vor.u32 %v318_v27, %v317_v32  ;;  %v321_v43 = vrot.slane %v317_v32, 4  ;;  %v282_v44 = vld [vmem:[%s4988_s9 + $0xc] sm:$0xf]  ;;  %v283_v46 = vld [vmem:[%s4988_s9 + $0x10] sm:$0xf]  ;;  %s4842_s13 = smov 24  }
  0x2b   : > { %vm5009_vm11 = vmand %vm223_vm0, %vm636_vm8  ;;  %v335_v45 = vshll.u32 %v281_v24, 16  ;;  %v961_v47 = vsel %vm5001_vm10, %v956_v34, %v960_v17  ;;  %v971_v48 = vsel %vm5001_vm10, %v966_v35, %v970_v20  ;;  %v4416_v49 = vcombine.low %v1547_v30, %v1550_v40  ;;  %v284_v51 = vld [vmem:[%s4988_s9 + $0x14] sm:$0xf]  ;;  %v647_v57 = vld [vmem:[#allocation2 + $0x18] sm:$0xf]  ;;  %s4843_s14 = smov 20  }
  0x2c   : > { %vm5017_vm12 = vmor %vm311_vm6, %vm312_vm7  ;;  %v328_v50 = vor.u32 %v326_v33, %v325_v36  ;;  %v4384_v52 = vcombine.low %v961_v47, %v971_v48  ;;  %v330_v53 = vrot.slane %v325_v36, 4  ;;  %v639_v54 = vsel %vm5009_vm11, %v320_v42, %v638_v38  ;;  %v644_v58 = vld [vmem:[#allocation2 + $0x14] sm:$0x1]  ;;  %v285_v63 = vld [vmem:[%s4988_s9 + $0x18] sm:$0xf]  ;;  %s4844_s15 = smov 32  }
  0x2d   : > { %vm5032_vm13 = vmand %vm226_vm1, %vm311_vm6  ;;  %v334_v56 = vrot.slane %v332_v39, 7  ;;  %1704 = vrot.lane.b32.xlu1 %v4416_v49, %s4839_s10  ;;  %640 = vst [vmem:[#allocation2 + $0xc] sm:$0xf] %v639_v54  ;;  %v340_v60 = vshrl.u32 %v282_v44, 16  ;;  %v343_v61 = vshll.u32 %v282_v44, 16  ;;  %v349_v62 = vshrl.u32 %v283_v46, 16 }
  0x2e   : > { %v329_v59 = vsel %vm5017_vm12, %v321_v43, %v328_v50  ;;  %1380 = vrot.lane.b32.xlu0 %v4384_v52, %s4840_s11  ;;  %v352_v2 = vshll.u32 %v283_v46, 16  ;;  %v357_v3 = vshrl.u32 %v284_v51, 16  ;;  %v360_v6 = vshll.u32 %v284_v51, 16  ;;  %v654_v7 = vld [vmem:[#allocation2 + $0x24] sm:$0xf]  ;;  %s4845_s16 = smov 16  }
  0x2f   : > { %641 = vst.msk [vmem:[#allocation2 + $0x10] sm:$0xf] %vm223_vm0, %v329_v59  ;;  %v337_v0 = vor.u32 %v335_v45, %v334_v56  ;;  %v338_v1 = vrot.slane %v334_v56, 4  ;;  %v342_v4 = vrot.slane %v340_v60, 7  ;;  %v351_v5 = vrot.slane %v349_v62, 7  ;;  %s4846_s17 = smov 28  }
  0x30   : > { %v645_v8 = vsel %vm5032_vm13, %v330_v53, %v644_v58  ;;  %v359_v10 = vrot.slane %v357_v3, 7  ;;  %v651_v11 = vld [vmem:[#allocation2 + $0x20] sm:$0x1]  ;;  %v366_v12 = vshrl.u32 %v285_v63, 16  ;;  %v369_v13 = vshll.u32 %v285_v63, 16  ;;  %s215_s23 = sand.u32 1, %s4828_s19  }
  0x31   : > { %v648_v9 = vsel %vm5009_vm11, %v337_v0, %v647_v57  ;;  %646 = vst [vmem:[#allocation2 + $0x14] sm:$0x1] %v645_v8  ;;  %v345_v14 = vor.u32 %v343_v61, %v342_v4  ;;  %v347_v15 = vrot.slane %v342_v4, 4  ;;  %v354_v16 = vor.u32 %v352_v2, %v351_v5  ;;  %v658_v18 = vld [vmem:[#allocation2 + $0x2c] sm:$0x1]  ;;  %s4581_s30 = sshll.u32 %s4902_s22, 4 }
  0x32   : > { %649 = vst [vmem:[#allocation2 + $0x18] sm:$0xf] %v648_v9  ;;  %v355_v17 = vrot.slane %v351_v5, 4  ;;  %v362_v20 = vor.u32 %v360_v6, %v359_v10  ;;  %v364_v21 = vrot.slane %v359_v10, 4  ;;  %v5047_v22 = vld [vmem:[%s4988_s9 + $0x1c] sm:$0xf] }
  0x33   : > { %v5049_v23 = vrot.slane %v366_v12, 7  ;;  %v346_v24 = vsel %vm5017_vm12, %v338_v1, %v345_v14  ;;  %v655_v25 = vsel %vm5009_vm11, %v354_v16, %v654_v7  ;;  %v652_v26 = vsel %vm5032_vm13, %v347_v15, %v651_v11  ;;  %v661_v27 = vld [vmem:[#allocation2 + $0x30] sm:$0xf]  ;;  %s216_s6 = scalar_lea.vmem [#allocation4], %s215_s23  ;;  %s4850_s22 = smov [#allocation4]  }
  0x34   : > { %650 = vst.msk [vmem:[#allocation2 + $0x1c] sm:$0xf] %vm223_vm0, %v346_v24  ;;  %v363_v28 = vsel %vm5017_vm12, %v355_v17, %v362_v20  ;;  %656 = vst [vmem:[#allocation2 + $0x24] sm:$0xf] %v655_v25  ;;  %v2491_v30 = vld [vmem:[#allocation2 + $0xc] sm:$0xe]  ;;  %v659_v32 = vsel %vm5032_vm13, %v364_v21, %v658_v18 }
  0x35   : > { %v1448_v31 = vld [vmem:[#allocation2 + $0xc] sm:$0xe]  ;;  %653 = vst [vmem:[#allocation2 + $0x20] sm:$0x1] %v652_v26  ;;  %v371_v33 = vor.u32 %v369_v13, %v5049_v23  ;;  %657 = vst.msk [vmem:[#allocation2 + $0x28] sm:$0xf] %vm223_vm0, %v363_v28 }
  0x36   : > { %v4723_v34 = vld [vmem:[#allocation2 + $0xc] sm:$0xff]   ;;  %660 = vst [vmem:[#allocation2 + $0x2c] sm:$0x1] %v659_v32  ;;  %v374_v36 = vshrl.u32 %v5047_v22, 16  ;;  %v377_v42 = vshll.u32 %v5047_v22, 16  ;;  %v4464_v45 = vrot.slane %v2491_v30, 9 }
  0x37   : > { %v2492_v35 = vld [vmem:[#allocation2 + $0x10] sm:$0xf]  ;;  %v5065_v40 = vld [vmem:[#allocation2 + $0xc] sm:$0xf]  ;;  %v662_v43 = vsel %vm5009_vm11, %v371_v33, %v661_v27  ;;  %1881 = vrot.lane.b32.xlu0 %v4723_v34, %s4841_s12  ;;  %v4401_v50 = vrot.slane %v1448_v31, 9  ;;  %vm1428_vm15 = vcmask 64544  }
  0x38   : > { %v2589_v38 = vrot.slane %v2492_v35, 5  ;;  %v1449_v39 = vld [vmem:[#allocation2 + $0x10] sm:$0xf]  ;;  %v2493_v44 = vld [vmem:[#allocation2 + $0x14] sm:$0x1]  ;;  %v973_v53 = vshrl.u32 %v5065_v40, 16 }
  0x39   : > { %v1450_v46 = vld [vmem:[#allocation2 + $0x14] sm:$0x1]  ;;  %v1553_v47 = vrot.slane %v1449_v39, 5  ;;  %663 = vst [vmem:[#allocation2 + $0x30] sm:$0xf] %v662_v43  ;;  %v2592_v49 = vrot.slane %v2493_v44, 5 }
  0x3a   : > { %v2591_v48 = vrot.slane %v2589_v38, 4  ;;  %v3535_v51 = vld [vmem:[#allocation2 + $0x18] sm:$0xe]  ;;  %v1556_v56 = vrot.slane %v1450_v46, 5  ;;  %v2590_v61 = vsel %vm4994_vm9, %v4464_v45, %v2589_v38  ;;  %v901_v45 = vld [vmem:[#allocation2 + $0x10] sm:$0xf] }
  0x3b   : > { %v2494_v52 = vld [vmem:[#allocation2 + $0x18] sm:$0xe]  ;;  %v1555_v54 = vrot.slane %v1553_v47, 4  ;;  %v4528_v57 = vrot.slane %v3535_v51, 9  ;;  %v1554_v3 = vsel %vm4994_vm9, %v4401_v50, %v1553_v47  ;;  %v3536_v4 = vld [vmem:[#allocation2 + $0x1c] sm:$0xf] }
  0x3c   : > { %v4465_v58 = vrot.slane %v2494_v52, 9  ;;  %v1949_v59 = vld [vmem:[#allocation2 + $0x18] sm:$0xf]  ;;  %v2593_v62 = vsel %vm4994_vm9, %v2591_v48, %v2592_v49  ;;  %v4726_v2 = vld [vmem:[#allocation2 + $0x24] sm:$0xff]   ;;  %v3537_v5 = vld [vmem:[#allocation2 + $0x20] sm:$0x1] }
  0x3d   : > { %v4724_v60 = vld [vmem:[#allocation2 + $0x18] sm:$0xff]   ;;  %v2019_v63 = vshrl.u32 %v1949_v59, 16  ;;  %v2022_v1 = vshll.u32 %v1949_v59, 16  ;;  %v4480_v7 = vcombine.low %v2590_v61, %v2593_v62  ;;  %v1557_v8 = vsel %vm4994_vm9, %v1555_v54, %v1556_v56  ;;  %v2496_v12 = vld [vmem:[#allocation2 + $0x20] sm:$0x1]  ;;  %s4307_s7 = sshll.u32 %s216_s6, 4  ;;  %s6120_s7 = int_to_ptr.vmem [resolvable:$true] %s4307_s7 }
  0x3e   : > { %v4725_v0 = vld [vmem:[#allocation2 + $0x18] sm:$0xff]   ;;  %1883 = vrot.lane.b32.xlu1 %v4724_v60, %s4841_s12  ;;  %v3633_v9 = vrot.slane %v3536_v4, 5  ;;  %v3636_v10 = vrot.slane %v3537_v5, 5  ;;  %v2599_v14 = vrot.slane %v2496_v12, 5  ;;  %v3538_v15 = vld [vmem:[#allocation2 + $0x24] sm:$0xe]  ;;  %v4417_v25 = vcombine.low %v1554_v3, %v1557_v8 }
  0x3f   : > { %v2021_v6 = vrot.slane %v2019_v63, 4  ;;  %2925 = vrot.lane.b32.xlu0 %v4725_v0, %s4842_s13  ;;  %v2495_v11 = vld [vmem:[#allocation2 + $0x1c] sm:$0xf]  ;;  %v3539_v16 = vld [vmem:[#allocation2 + $0x28] sm:$0xf]  ;;  %v4529_v21 = vrot.slane %v3538_v15, 9 }
  0x40   : > { %v2596_v13 = vrot.slane %v2495_v11, 5  ;;  %v3634_v17 = vsel %vm4994_vm9, %v4528_v57, %v3633_v9  ;;  %v3635_v18 = vrot.slane %v3633_v9, 4  ;;  %v3540_v20 = vld [vmem:[#allocation2 + $0x2c] sm:$0x1]  ;;  %v3640_v24 = vrot.slane %v3539_v16, 5 }
  0x41   : > { %v3643_v28 = vrot.slane %v3540_v20, 5  ;;  %v1950_v30 = vld [vmem:[#allocation2 + $0x1c] sm:$0xf]  ;;  %v1951_v31 = vld [vmem:[#allocation2 + $0x20] sm:$0x1]  ;;  %v2024_v35 = vrot.slane %v2022_v1, 5 }
  0x42   : > { %2927 = vrot.lane.b32.xlu1 %v4726_v2, %s4842_s13  ;;  %v2597_v26 = vsel %vm4994_vm9, %v4465_v58, %v2596_v13  ;;  %v2598_v27 = vrot.slane %v2596_v13, 4  ;;  %v3637_v32 = vsel %vm4994_vm9, %v3635_v18, %v3636_v10  ;;  %v3641_v33 = vsel %vm4994_vm9, %v4529_v21, %v3640_v24  ;;  %v902_v50 = vld [vmem:[#allocation2 + $0x14] sm:$0x1]  ;;  %v2993_v51 = vld [vmem:[#allocation2 + $0x24] sm:$0xf] }
  0x43   : > { %2747 = vrot.lane.b32.xlu0 %v4480_v7, %s4843_s14  ;;  %v3642_v34 = vrot.slane %v3640_v24, 4  ;;  %v4544_v38 = vcombine.low %v3634_v17, %v3637_v32  ;;  %v2028_v43 = vshll.u32 %v1950_v30, 16  ;;  %v2032_v44 = vshrl.u32 %v1950_v30, 16  ;;  %v2994_v62 = vld [vmem:[#allocation2 + $0x28] sm:$0xf] }
  0x44   : > { %v2600_v39 = vsel %vm4994_vm9, %v2598_v27, %v2599_v14  ;;  %v2025_v48 = vor.u32 %v2024_v35, %v2021_v6  ;;  %v2038_v49 = vshll.u32 %v1951_v31, 16  ;;  %v975_v57 = vrot.slane %v973_v53, 4  ;;  %v2995_v2 = vld [vmem:[#allocation2 + $0x2c] sm:$0x1]  ;;  %v1947_v18 = vld [vmem:[#allocation2 + $0x10] sm:$0xf] }
  0x45   : > { %v4481_v46 = vcombine.low %v2597_v26, %v2600_v39  ;;  %v3644_v47 = vsel %vm4994_vm9, %v3642_v34, %v3643_v28  ;;  %v2030_v54 = vrot.slane %v2028_v43, 5  ;;  %v2034_v56 = vrot.slane %v2032_v44, 4  ;;  %v1946_v7 = vld [vmem:[#allocation2 + $0xc] sm:$0xf]  ;;  %v1948_v27 = vld [vmem:[#allocation2 + $0x14] sm:$0x1] }
  0x46   : > { %1706 = vrot.lane.b32.xlu1 %v4417_v25, %s4839_s10  ;;  %v4545_v52 = vcombine.low %v3641_v33, %v3644_v47  ;;  %v2026_v58 = vrot.slane %v2025_v48, 4  ;;  %v2040_v59 = vrot.slane %v2038_v49, 5  ;;  %v976_v60 = vshll.u32 %v5065_v40, 16  ;;  %v903_v39 = vld [vmem:[#allocation2 + $0x18] sm:$0xf] }
  0x47   : > { %3791 = vrot.lane.b32.xlu0 %v4544_v38, %s4844_s15  ;;  %v982_v61 = vshll.u32 %v901_v45, 16  ;;  %v2035_v63 = vor.u32 %v2034_v56, %v2030_v54  ;;  %v986_v0 = vshrl.u32 %v901_v45, 16  ;;  %v992_v1 = vshll.u32 %v902_v50, 16  ;;  %v904_v47 = vld [vmem:[#allocation2 + $0x1c] sm:$0xf] }
  0x48   : > { %v3063_v3 = vshrl.u32 %v2993_v51, 16  ;;  %v2031_v4 = vsel %vm5001_vm10, %v2026_v58, %v2030_v54  ;;  %v978_v5 = vrot.slane %v976_v60, 5  ;;  %v3066_v53 = vshll.u32 %v2993_v51, 16  ;;  %v2990_v54 = vld [vmem:[#allocation2 + $0x18] sm:$0xf] }
  0x49   : > { %v984_v6 = vrot.slane %v982_v61, 5  ;;  %v2036_v8 = vrot.slane %v2035_v63, 4  ;;  %v988_v9 = vrot.slane %v986_v0, 4  ;;  %v994_v10 = vrot.slane %v992_v1, 5 }
  0x4a   : > { %2749 = vrot.lane.b32.xlu1 %v4481_v46, %s4843_s14  ;;  %v3065_v40 = vrot.slane %v3063_v3, 4  ;;  %v979_v11 = vor.u32 %v978_v5, %v975_v57  ;;  %v3068_v12 = vrot.slane %v3066_v53, 5  ;;  %v3072_v13 = vshll.u32 %v2994_v62, 16 }
  0x4b   : > { %3793 = vrot.lane.b32.xlu0 %v4545_v52, %s4844_s15  ;;  %v3076_v14 = vshrl.u32 %v2994_v62, 16  ;;  %v2041_v15 = vsel %vm5001_vm10, %v2036_v8, %v2040_v59  ;;  %v989_v16 = vor.u32 %v988_v9, %v984_v6  ;;  %v3082_v17 = vshll.u32 %v2995_v2, 16  ;;  %v905_v52 = vld [vmem:[#allocation2 + $0x20] sm:$0x1] }
  0x4c   : > { %v1995_v20 = vshrl.u32 %v1946_v7, 16  ;;  %v4449_v21 = vcombine.low %v2031_v4, %v2041_v15  ;;  %v980_v24 = vrot.slane %v979_v11, 4  ;;  %v3069_v25 = vor.u32 %v3068_v12, %v3065_v40  ;;  %v2991_v4 = vld [vmem:[#allocation2 + $0x1c] sm:$0xf] }
  0x4d   : > { %v3074_v26 = vrot.slane %v3072_v13, 5  ;;  %v990_v28 = vrot.slane %v989_v16, 4  ;;  %v3078_v30 = vrot.slane %v3076_v14, 4  ;;  %v3084_v31 = vrot.slane %v3082_v17, 5  ;;  %v2992_v13 = vld [vmem:[#allocation2 + $0x20] sm:$0x1] }
  0x4e   : > { %v1997_v32 = vrot.slane %v1995_v20, 4  ;;  %2428 = vrot.lane.b32.xlu1 %v4449_v21, %s4845_s16  ;;  %v985_v33 = vsel %vm5001_vm10, %v980_v24, %v984_v6  ;;  %v3070_v34 = vrot.slane %v3069_v25, 4  ;;  %v1998_v35 = vshll.u32 %v1946_v7, 16  ;;  %v906_v16 = vld [vmem:[#allocation2 + $0x24] sm:$0xf] }
  0x4f   : > { %v2004_v38 = vshll.u32 %v1947_v18, 16  ;;  %v995_v43 = vsel %vm5001_vm10, %v990_v28, %v994_v10  ;;  %v3079_v44 = vor.u32 %v3078_v30, %v3074_v26  ;;  %v2008_v45 = vshrl.u32 %v1947_v18, 16  ;;  %v907_v24 = vld [vmem:[#allocation2 + $0x28] sm:$0xf] }
  0x50   : > { %v2014_v46 = vshll.u32 %v1948_v27, 16  ;;  %v4385_v48 = vcombine.low %v985_v33, %v995_v43  ;;  %v3075_v49 = vsel %vm5001_vm10, %v3070_v34, %v3074_v26  ;;  %v2000_v50 = vrot.slane %v1998_v35, 5 }
  0x51   : > { %v2006_v51 = vrot.slane %v2004_v38, 5  ;;  %v3080_v56 = vrot.slane %v3079_v44, 4  ;;  %v2010_v57 = vrot.slane %v2008_v45, 4  ;;  %v997_v59 = vshrl.u32 %v903_v39, 16  ;;  %v908_v38 = vld [vmem:[#allocation2 + $0x2c] sm:$0x1] }
  0x52   : > { %v2016_v58 = vrot.slane %v2014_v46, 5  ;;  %1382 = vrot.lane.b32.xlu0 %v4385_v48, %s4840_s11  ;;  %v2001_v60 = vor.u32 %v2000_v50, %v1997_v32  ;;  %v1000_v61 = vshll.u32 %v903_v39, 16  ;;  %v1006_v62 = vshll.u32 %v904_v47, 16  ;;  %v1451_v44 = vld [vmem:[#allocation2 + $0x18] sm:$0xe] }
  0x53   : > { %v1010_v63 = vshrl.u32 %v904_v47, 16  ;;  %v3085_v0 = vsel %vm5001_vm10, %v3080_v56, %v3084_v31  ;;  %v2011_v1 = vor.u32 %v2010_v57, %v2006_v51  ;;  %v999_v2 = vrot.slane %v997_v59, 4  ;;  %v1453_v50 = vld [vmem:[#allocation2 + $0x20] sm:$0x1]  ;;  %v1454_v57 = vld [vmem:[#allocation2 + $0x24] sm:$0xe] }
  0x54   : > { %v1016_v3 = vshll.u32 %v905_v52, 16  ;;  %v4513_v5 = vcombine.low %v3075_v49, %v3085_v0  ;;  %v2002_v6 = vrot.slane %v2001_v60, 4  ;;  %v1002_v53 = vrot.slane %v1000_v61, 5  ;;  %v1452_v49 = vld [vmem:[#allocation2 + $0x1c] sm:$0xf] }
  0x55   : > { %v1008_v7 = vrot.slane %v1006_v62, 5  ;;  %v2012_v8 = vrot.slane %v2011_v1, 4  ;;  %v1012_v9 = vrot.slane %v1010_v63, 4  ;;  %v3039_v40 = vshrl.u32 %v2990_v54, 16 }
  0x56   : > { %v1018_v10 = vrot.slane %v1016_v3, 5  ;;  %3472 = vrot.lane.b32.xlu1 %v4513_v5, %s4846_s17  ;;  %v2007_v11 = vsel %vm5001_vm10, %v2002_v6, %v2006_v51  ;;  %v1003_v12 = vor.u32 %v1002_v53, %v999_v2  ;;  %v3042_v14 = vshll.u32 %v2990_v54, 16  ;;  %v1455_v2 = vld [vmem:[#allocation2 + $0x28] sm:$0xf]  ;;  %v1456_v3 = vld [vmem:[#allocation2 + $0x2c] sm:$0x1] }
  0x57   : > { %v3048_v15 = vshll.u32 %v2991_v4, 16  ;;  %v2017_v17 = vsel %vm5001_vm10, %v2012_v8, %v2016_v58  ;;  %v1013_v18 = vor.u32 %v1012_v9, %v1008_v7  ;;  %v3041_v20 = vrot.slane %v3039_v40, 4 }
  0x58   : > { %v3052_v21 = vshrl.u32 %v2991_v4, 16  ;;  %v4448_v25 = vcombine.low %v2007_v11, %v2017_v17  ;;  %v1004_v26 = vrot.slane %v1003_v12, 4  ;;  %v3044_v27 = vrot.slane %v3042_v14, 5 }
  0x59   : > { %v3050_v28 = vrot.slane %v3048_v15, 5  ;;  %v1014_v30 = vrot.slane %v1013_v18, 4  ;;  %v3058_v32 = vshll.u32 %v2992_v13, 16  ;;  %v1021_v33 = vshrl.u32 %v906_v16, 16  ;;  %v1953_v15 = vld [vmem:[#allocation2 + $0x28] sm:$0xf] }
  0x5a   : > { %v3054_v31 = vrot.slane %v3052_v21, 4  ;;  %2426 = vrot.lane.b32.xlu0 %v4448_v25, %s4845_s16  ;;  %v1009_v34 = vsel %vm5001_vm10, %v1004_v26, %v1008_v7  ;;  %v3045_v35 = vor.u32 %v3044_v27, %v3041_v20  ;;  %v1024_v39 = vshll.u32 %v906_v16, 16  ;;  %v1952_v7 = vld [vmem:[#allocation2 + $0x24] sm:$0xf]  ;;  %v665_v21 = vld [vmem:[#allocation2 + $0x38] sm:$0x1] }
  0x5b   : > { %v1030_v43 = vshll.u32 %v907_v24, 16  ;;  %v1019_v45 = vsel %vm5001_vm10, %v1014_v30, %v1018_v10  ;;  %v3060_v47 = vrot.slane %v3058_v32, 5  ;;  %v1023_v48 = vrot.slane %v1021_v33, 4  ;;  %v1954_v27 = vld [vmem:[#allocation2 + $0x2c] sm:$0x1] }
  0x5c   : > { %v3055_v46 = vor.u32 %v3054_v31, %v3050_v28  ;;  %v4386_v51 = vcombine.low %v1009_v34, %v1019_v45  ;;  %v3046_v52 = vrot.slane %v3045_v35, 4  ;;  %v1026_v54 = vrot.slane %v1024_v39, 5  ;;  %v2497_v34 = vld [vmem:[#allocation2 + $0x24] sm:$0xe] }
  0x5d   : > { %v1032_v56 = vrot.slane %v1030_v43, 5  ;;  %v1034_v59 = vshrl.u32 %v907_v24, 16  ;;  %v1040_v60 = vshll.u32 %v908_v38, 16  ;;  %v4402_v61 = vrot.slane %v1451_v44, 9  ;;  %v2498_v43 = vld [vmem:[#allocation2 + $0x28] sm:$0xf] }
  0x5e   : > { %v3056_v58 = vrot.slane %v3055_v46, 4  ;;  %1384 = vrot.lane.b32.xlu1 %v4386_v51, %s4840_s11  ;;  %v3051_v62 = vsel %vm5001_vm10, %v3046_v52, %v3050_v28  ;;  %v1027_v63 = vor.u32 %v1026_v54, %v1023_v48  ;;  %v1560_v0 = vrot.slane %v1452_v49, 5  ;;  %v1955_v28 = vld [vmem:[#allocation2 + $0x30] sm:$0xf]  ;;  %v2499_v44 = vld [vmem:[#allocation2 + $0x2c] sm:$0x1] }
  0x5f   : > { %v1563_v1 = vrot.slane %v1453_v50, 5  ;;  %v1036_v5 = vrot.slane %v1034_v59, 4  ;;  %v1042_v6 = vrot.slane %v1040_v60, 5  ;;  %v4403_v53 = vrot.slane %v1454_v57, 9  ;;  %v2500_v48 = vld [vmem:[#allocation2 + $0x30] sm:$0xe] }
  0x60   : > { %v3061_v4 = vsel %vm5001_vm10, %v3056_v58, %v3060_v47  ;;  %v1028_v9 = vrot.slane %v1027_v63, 4  ;;  %v1561_v10 = vsel %vm4994_vm9, %v4402_v61, %v1560_v0  ;;  %v1562_v40 = vrot.slane %v1560_v0, 4  ;;  %v287_v49 = vld [vmem:[%s4988_s9 + $0x20] sm:$0xf] }
  0x61   : > { %v4512_v8 = vcombine.low %v3051_v62, %v3061_v4  ;;  %v1037_v11 = vor.u32 %v1036_v5, %v1032_v56  ;;  %v1567_v12 = vrot.slane %v1455_v2, 5  ;;  %v1570_v13 = vrot.slane %v1456_v3, 5 }
  0x62   : > { %v372_v14 = vrot.slane %v5049_v23, 4  ;;  %v1033_v16 = vsel %vm5001_vm10, %v1028_v9, %v1032_v56  ;;  %v1564_v17 = vsel %vm4994_vm9, %v1562_v40, %v1563_v1  ;;  %v376_v18 = vrot.slane %v374_v36, 7  ;;  %v5156_v56 = vld [vmem:[%s4988_s9 + $0x24] sm:$0xf] }
  0x63   : > { %3470 = vrot.lane.b32.xlu0 %v4512_v8, %s4846_s17  ;;  %v2043_v20 = vshrl.u32 %v1952_v7, 16  ;;  %v1038_v24 = vrot.slane %v1037_v11, 4  ;;  %v4418_v25 = vcombine.low %v1561_v10, %v1564_v17  ;;  %v1568_v26 = vsel %vm4994_vm9, %v4403_v53, %v1567_v12 }
  0x64   : > { %v1569_v23 = vrot.slane %v1567_v12, 4  ;;  %v379_v30 = vor.u32 %v377_v42, %v376_v18  ;;  %v381_v31 = vrot.slane %v376_v18, 4  ;;  %v2046_v33 = vshll.u32 %v1952_v7, 16  ;;  %v4727_v42 = vld [vmem:[#allocation2 + $0x24] sm:$0xff]  }
  0x65   : > { %v2045_v32 = vrot.slane %v2043_v20, 4  ;;  %v1043_v36 = vsel %vm5001_vm10, %v1038_v24, %v1042_v6  ;;  %v2052_v38 = vshll.u32 %v1953_v15, 16  ;;  %v2056_v39 = vshrl.u32 %v1953_v15, 16  ;;  %v668_v20 = vld [vmem:[#allocation2 + $0x3c] sm:$0xf] }
  0x66   : > { %v1571_v35 = vsel %vm4994_vm9, %v1569_v23, %v1570_v13  ;;  %v4387_v45 = vcombine.low %v1033_v16, %v1043_v36  ;;  %v380_v46 = vsel %vm5017_vm12, %v372_v14, %v379_v30  ;;  %v2048_v47 = vrot.slane %v2046_v33, 5 }
  0x67   : > { %1708 = vrot.lane.b32.xlu0 %v4418_v25, %s4839_s10  ;;  %v4419_v22 = vcombine.low %v1568_v26, %v1571_v35  ;;  %664 = vst.msk [vmem:[#allocation2 + $0x34] sm:$0xf] %vm223_vm0, %v380_v46  ;;  %v2054_v50 = vrot.slane %v2052_v38, 5  ;;  %v2058_v51 = vrot.slane %v2056_v39, 4  ;;  %v2062_v52 = vshll.u32 %v1954_v27, 16 }
  0x68   : > { %v666_v54 = vsel %vm5032_vm13, %v381_v31, %v665_v21  ;;  %1386 = vrot.lane.b32.xlu1 %v4387_v45, %s4840_s11  ;;  %v2049_v57 = vor.u32 %v2048_v47, %v2045_v32  ;;  %v2067_v58 = vshrl.u32 %v1955_v28, 16  ;;  %v2070_v59 = vshll.u32 %v1955_v28, 16  ;;  %v2996_v21 = vld [vmem:[#allocation2 + $0x30] sm:$0xf] }
  0x69   : > { %667 = vst [vmem:[#allocation2 + $0x38] sm:$0x1] %v666_v54  ;;  %v4466_v60 = vrot.slane %v2497_v34, 9  ;;  %v2059_v61 = vor.u32 %v2058_v51, %v2054_v50  ;;  %v2064_v62 = vrot.slane %v2062_v52, 5  ;;  %v2603_v63 = vrot.slane %v2498_v43, 5 }
  0x6a   : > { %v2606_v0 = vrot.slane %v2499_v44, 5  ;;  %v2050_v1 = vrot.slane %v2049_v57, 4  ;;  %v2069_v2 = vrot.slane %v2067_v58, 4  ;;  %v2072_v3 = vrot.slane %v2070_v59, 5  ;;  %v909_v58 = vld [vmem:[#allocation2 + $0x30] sm:$0xf] }
  0x6b   : > { %1885 = vrot.lane.b32.xlu0 %v4727_v42, %s4841_s12  ;;  %v4467_v4 = vrot.slane %v2500_v48, 9  ;;  %v2060_v5 = vrot.slane %v2059_v61, 4  ;;  %v2604_v6 = vsel %vm4994_vm9, %v4466_v60, %v2603_v63  ;;  %v2605_v53 = vrot.slane %v2603_v63, 4 }
  0x6c   : > { %v383_v7 = vshrl.u32 %v287_v49, 16  ;;  %1710 = vrot.lane.b32.xlu1 %v4419_v22, %s4839_s10  ;;  %v2055_v8 = vsel %vm5001_vm10, %v2050_v1, %v2054_v50  ;;  %v2073_v9 = vor.u32 %v2072_v3, %v2069_v2  ;;  %v386_v10 = vshll.u32 %v287_v49, 16  ;;  %v672_v22 = vld [vmem:[#allocation2 + $0x44] sm:$0x1]  ;;  %v3541_v50 = vld [vmem:[#allocation2 + $0x30] sm:$0xe] }
  0x6d   : > { %v391_v40 = vshrl.u32 %v5156_v56, 16  ;;  %v2065_v11 = vsel %vm5001_vm10, %v2060_v5, %v2064_v62  ;;  %v2607_v12 = vsel %vm4994_vm9, %v2605_v53, %v2606_v0  ;;  %v394_v14 = vshll.u32 %v5156_v56, 16 }
  0x6e   : > { %v385_v13 = vrot.slane %v383_v7, 7  ;;  %v4728_v15 = vld [vmem:[#allocation2 + $0x30] sm:$0xff]   ;;  %v4450_v16 = vcombine.low %v2055_v8, %v2065_v11  ;;  %v2074_v18 = vrot.slane %v2073_v9, 4  ;;  %v4482_v30 = vcombine.low %v2604_v6, %v2607_v12 }
  0x6f   : > { %v1956_v17 = vld [vmem:[#allocation2 + $0x34] sm:$0xf]  ;;  %v393_v44 = vrot.slane %v391_v40, 7  ;;  %v3087_v49 = vshrl.u32 %v2996_v21, 16  ;;  %v3090_v57 = vshll.u32 %v2996_v21, 16  ;;  %v4530_v7 = vrot.slane %v3541_v50, 9 }
  0x70   : > { %v1957_v24 = vld [vmem:[#allocation2 + $0x38] sm:$0x1]  ;;  %v2076_v25 = vshll.u32 %v1956_v17, 16  ;;  %v2080_v26 = vshrl.u32 %v1956_v17, 16  ;;  %v2501_v23 = vld [vmem:[#allocation2 + $0x34] sm:$0xf]  ;;  %v388_v27 = vor.u32 %v386_v10, %v385_v13  ;;  %1887 = vrot.lane.b32.xlu1 %v4728_v15, %s4841_s12  ;;  %2430 = vrot.lane.b32.xlu0 %v4450_v16, %s4845_s16 }
  0x71   : > { %v2086_v28 = vshll.u32 %v1957_v24, 16  ;;  %v2502_v31 = vld [vmem:[#allocation2 + $0x38] sm:$0x1]  ;;  %v2610_v32 = vrot.slane %v2501_v23, 5  ;;  %v389_v35 = vrot.slane %v385_v13, 4  ;;  %v4729_v52 = vld [vmem:[#allocation2 + $0x30] sm:$0xff]   ;;  %v396_v54 = vor.u32 %v394_v14, %v393_v44 }
  0x72   : > { %v2078_v33 = vrot.slane %v2076_v25, 5  ;;  %v2082_v34 = vrot.slane %v2080_v26, 4  ;;  %v2613_v36 = vrot.slane %v2502_v31, 5  ;;  %v2997_v45 = vld [vmem:[#allocation2 + $0x34] sm:$0xf]  ;;  %v669_v47 = vsel %vm5009_vm11, %v388_v27, %v668_v20 }
  0x73   : > { %v2088_v38 = vrot.slane %v2086_v28, 5  ;;  %v5175_v39 = vsel %vm4994_vm9, %v4467_v4, %v2610_v32  ;;  %v2612_v43 = vrot.slane %v2610_v32, 4  ;;  %v2998_v48 = vld [vmem:[#allocation2 + $0x38] sm:$0x1]  ;;  %v398_v56 = vrot.slane %v393_v44, 4 }
  0x74   : > { %v2079_v42 = vsel %vm5001_vm10, %v2074_v18, %v2078_v33  ;;  %v2083_v46 = vor.u32 %v2082_v34, %v2078_v33  ;;  %2751 = vrot.lane.b32.xlu0 %v4482_v30, %s4843_s14  ;;  %670 = vst [vmem:[#allocation2 + $0x3c] sm:$0xf] %v669_v47  ;;  %v3089_v61 = vrot.slane %v3087_v49, 4  ;;  %v3096_v62 = vshll.u32 %v2997_v45, 16  ;;  %v3542_v63 = vld [vmem:[#allocation2 + $0x34] sm:$0xf] }
  0x75   : > { %v2614_v51 = vsel %vm4994_vm9, %v2612_v43, %v2613_v36  ;;  %v397_v0 = vsel %vm5017_vm12, %v389_v35, %v396_v54  ;;  %v3092_v1 = vrot.slane %v3090_v57, 5  ;;  %v3100_v2 = vshrl.u32 %v2997_v45, 16  ;;  %v3543_v4 = vld [vmem:[#allocation2 + $0x38] sm:$0x1]  ;;  %v910_v8 = vld [vmem:[#allocation2 + $0x34] sm:$0xf] }
  0x76   : > { %v2084_v59 = vrot.slane %v2083_v46, 4  ;;  %v4483_v60 = vcombine.low %v5175_v39, %v2614_v51  ;;  %v3106_v3 = vshll.u32 %v2998_v48, 16  ;;  %671 = vst.msk [vmem:[#allocation2 + $0x40] sm:$0xf] %vm223_vm0, %v397_v0  ;;  %v3098_v6 = vrot.slane %v3096_v62, 5 }
  0x77   : > { %v673_v53 = vsel %vm5032_vm13, %v398_v56, %v672_v22  ;;  %v3093_v10 = vor.u32 %v3092_v1, %v3089_v61  ;;  %v3102_v40 = vrot.slane %v3100_v2, 4  ;;  %v3647_v12 = vrot.slane %v3542_v63, 5  ;;  %v911_v31 = vld [vmem:[#allocation2 + $0x38] sm:$0x1]  ;;  %v1457_v2 = vld [vmem:[#allocation2 + $0x30] sm:$0xe] }
  0x78   : > { %v2089_v5 = vsel %vm5001_vm10, %v2084_v59, %v2088_v38  ;;  %2929 = vrot.lane.b32.xlu0 %v4729_v52, %s4842_s13  ;;  %v3108_v11 = vrot.slane %v3106_v3, 5  ;;  %674 = vst [vmem:[#allocation2 + $0x44] sm:$0x1] %v673_v53  ;;  %v3650_v13 = vrot.slane %v3543_v4, 5  ;;  %v1045_v14 = vshrl.u32 %v909_v58, 16 }
  0x79   : > { %v4451_v9 = vcombine.low %v2079_v42, %v2089_v5  ;;  %v1048_v15 = vshll.u32 %v909_v58, 16  ;;  %v3094_v16 = vrot.slane %v3093_v10, 4  ;;  %v3103_v17 = vor.u32 %v3102_v40, %v3098_v6 }
  0x7a   : > { %v1054_v18 = vshll.u32 %v910_v8, 16  ;;  %v1058_v20 = vshrl.u32 %v910_v8, 16  ;;  %v3648_v24 = vsel %vm4994_vm9, %v4530_v7, %v3647_v12  ;;  %v3649_v25 = vrot.slane %v3647_v12, 4 }
  0x7b   : > { %2432 = vrot.lane.b32.xlu1 %v4451_v9, %s4845_s16  ;;  %v2999_v21 = vld [vmem:[#allocation2 + $0x3c] sm:$0xf]  ;;  %v1047_v26 = vrot.slane %v1045_v14, 4  ;;  %v3099_v23 = vsel %vm5001_vm10, %v3094_v16, %v3098_v6  ;;  %v3104_v27 = vrot.slane %v3103_v17, 4  ;;  %v1050_v33 = vrot.slane %v1048_v15, 5  ;;  %v4744_v17 = vld [vmem:[%s6161_s1] sm:$0xff]  }
  0x7c   : > { %v3111_v28 = vshrl.u32 %v2999_v21, 16  ;;  %v3114_v30 = vshll.u32 %v2999_v21, 16  ;;  %v3651_v32 = vsel %vm4994_vm9, %v3649_v25, %v3650_v13  ;;  %v1056_v34 = vrot.slane %v1054_v18, 5  ;;  %v3544_v35 = vld [vmem:[#allocation2 + $0x3c] sm:$0xe]  ;;  %4609 = vmatprep.subr.bf16.mxu0 %v4744_v17  ;;  %4664 = vmatprep.subr.bf16.mxu1 %v4744_v17 }
  0x7d   : > { %v1060_v36 = vrot.slane %v1058_v20, 4  ;;  %v4730_v38 = vld [vmem:[#allocation2 + $0x3c] sm:$0xff]   ;;  %v3109_v39 = vsel %vm5001_vm10, %v3104_v27, %v3108_v11  ;;  %v4546_v45 = vcombine.low %v3648_v24, %v3651_v32  ;;  %v1051_v50 = vor.u32 %v1050_v33, %v1047_v26  ;;  %v1458_v11 = vld [vmem:[#allocation2 + $0x34] sm:$0xf]  ;;  %v1459_v16 = vld [vmem:[#allocation2 + $0x38] sm:$0x1]  ;;  %4610 = vmatpush3.bf16.msra.mxu0 %v4744_v17  ;;  %4667 = vmatpush3.bf16.msra.mxu1 %v4744_v17 }
  0x7e   : > { %v3000_v43 = vld [vmem:[#allocation2 + $0x40] sm:$0xf]  ;;  %v3113_v44 = vrot.slane %v3111_v28, 4  ;;  %v4514_v22 = vcombine.low %v3099_v23, %v3109_v39  ;;  %v3116_v46 = vrot.slane %v3114_v30, 5  ;;  %v1064_v52 = vshll.u32 %v911_v31, 16 }
  0x7f   : > { %2753 = vrot.lane.b32.xlu1 %v4483_v60, %s4843_s14  ;;  %v3001_v42 = vld [vmem:[#allocation2 + $0x44] sm:$0x1]  ;;  %v3120_v47 = vshll.u32 %v3000_v43, 16  ;;  %v3124_v48 = vshrl.u32 %v3000_v43, 16  ;;  %v1061_v51 = vor.u32 %v1060_v36, %v1056_v34  ;;  %v3545_v54 = vld [vmem:[#allocation2 + $0x40] sm:$0xf] }
  0x80   : > { %v3130_v49 = vshll.u32 %v3001_v42, 16  ;;  %v3546_v56 = vld [vmem:[#allocation2 + $0x44] sm:$0x1]  ;;  %3474 = vrot.lane.b32.xlu0 %v4514_v22, %s4846_s17  ;;  %v3117_v57 = vor.u32 %v3116_v46, %v3113_v44  ;;  %v4531_v60 = vrot.slane %v3544_v35, 9  ;;  %v912_v61 = vld [vmem:[#allocation2 + $0x3c] sm:$0xf] }
  0x81   : > { %v3122_v58 = vrot.slane %v3120_v47, 5  ;;  %v3126_v59 = vrot.slane %v3124_v48, 4  ;;  %v1052_v63 = vrot.slane %v1051_v50, 4  ;;  %v1062_v0 = vrot.slane %v1061_v51, 4  ;;  %v913_v53 = vld [vmem:[#allocation2 + $0x40] sm:$0xf] }
  0x82   : > { %v3132_v62 = vrot.slane %v3130_v49, 5  ;;  %v1066_v1 = vrot.slane %v1064_v52, 5  ;;  %v3118_v3 = vrot.slane %v3117_v57, 4  ;;  %v3654_v5 = vrot.slane %v3545_v54, 5  ;;  %v914_v9 = vld [vmem:[#allocation2 + $0x44] sm:$0x1] }
  0x83   : > { %2931 = vrot.lane.b32.xlu1 %v4730_v38, %s4842_s13  ;;  %v3127_v4 = vor.u32 %v3126_v59, %v3122_v58  ;;  %v3657_v6 = vrot.slane %v3546_v56, 5  ;;  %v1057_v7 = vsel %vm5001_vm10, %v1052_v63, %v1056_v34  ;;  %v1069_v10 = vshrl.u32 %v912_v61, 16  ;;  %v1460_v25 = vld [vmem:[#allocation2 + $0x3c] sm:$0xe]  ;;  %v1461_v30 = vld [vmem:[#allocation2 + $0x40] sm:$0xf] }
  0x84   : > { %v1067_v8 = vsel %vm5001_vm10, %v1062_v0, %v1066_v1  ;;  %v1072_v40 = vshll.u32 %v912_v61, 16  ;;  %v3123_v12 = vsel %vm5001_vm10, %v3118_v3, %v3122_v58  ;;  %3795 = vrot.lane.b32.xlu0 %v4546_v45, %s4844_s15  ;;  %v3655_v15 = vsel %vm4994_vm9, %v4531_v60, %v3654_v5  ;;  %v1462_v36 = vld [vmem:[#allocation2 + $0x44] sm:$0x1]  ;;  %v4747_v35 = vld [vmem:[%s6161_s1 + $0x8] sm:$0xff]   ;;  %v1958_v59 = vld [vmem:[#allocation2 + $0x3c] sm:$0xf] }
  0x85   : > { %v3128_v13 = vrot.slane %v3127_v4, 4  ;;  %v4388_v14 = vcombine.low %v1057_v7, %v1067_v8  ;;  %v3656_v18 = vrot.slane %v3654_v5, 4  ;;  %v1071_v20 = vrot.slane %v1069_v10, 4  ;;  %v289_v45 = vld [vmem:[%s4988_s9 + $0x28] sm:$0xf]  ;;  %4611 = vmatprep.subr.bf16.mxu0 %v4747_v35  ;;  %4665 = vmatprep.subr.bf16.mxu1 %v4747_v35 }
  0x86   : > { %v1074_v21 = vrot.slane %v1072_v40, 5  ;;  %v1078_v24 = vshll.u32 %v913_v53, 16  ;;  %v1082_v23 = vshrl.u32 %v913_v53, 16  ;;  %v1088_v27 = vshll.u32 %v914_v9, 16  ;;  %v290_v48 = vld [vmem:[%s4988_s9 + $0x2c] sm:$0xf]  ;;  %4612 = vmatpush3.bf16.msra.mxu0 %v4747_v35  ;;  %4668 = vmatpush3.bf16.msra.mxu1 %v4747_v35 }
  0x87   : > { %v3133_v26 = vsel %vm5001_vm10, %v3128_v13, %v3132_v62  ;;  %v4404_v28 = vrot.slane %v1457_v2, 9  ;;  %v3658_v32 = vsel %vm4994_vm9, %v3656_v18, %v3657_v6  ;;  %v1574_v44 = vrot.slane %v1458_v11, 5  ;;  %v675_v0 = vld [vmem:[#allocation2 + $0x48] sm:$0xf]  ;;  %v1959_v5 = vld [vmem:[#allocation2 + $0x40] sm:$0xf] }
  0x88   : > { %v4515_v31 = vcombine.low %v3123_v12, %v3133_v26  ;;  %v1075_v33 = vor.u32 %v1074_v21, %v1071_v20  ;;  %v1080_v34 = vrot.slane %v1078_v24, 5  ;;  %v4547_v38 = vcombine.low %v3655_v15, %v3658_v32  ;;  %v679_v6 = vld [vmem:[#allocation2 + $0x50] sm:$0x1]  ;;  %v1960_v9 = vld [vmem:[#allocation2 + $0x44] sm:$0x1]  ;;  %v4731_v11 = vld [vmem:[#allocation2 + $0x3c] sm:$0xff]  }
  0x89   : > { %v1084_v39 = vrot.slane %v1082_v23, 4  ;;  %v1090_v43 = vrot.slane %v1088_v27, 5  ;;  %v1577_v42 = vrot.slane %v1459_v16, 5  ;;  %v4405_v46 = vrot.slane %v1460_v25, 9  ;;  %v2503_v15 = vld [vmem:[#allocation2 + $0x3c] sm:$0xe] }
  0x8a   : > { %3476 = vrot.lane.b32.xlu1 %v4515_v31, %s4846_s17  ;;  %v1076_v22 = vrot.slane %v1075_v33, 4  ;;  %v1581_v47 = vrot.slane %v1461_v30, 5  ;;  %3797 = vrot.lane.b32.xlu0 %v4547_v38, %s4844_s15  ;;  %v1575_v50 = vsel %vm4994_vm9, %v4404_v28, %v1574_v44  ;;  %v1576_v51 = vrot.slane %v1574_v44, 4  ;;  %v291_v16 = vld [vmem:[%s4988_s9 + $0x30] sm:$0xf] }
  0x8b   : > { %v1085_v49 = vor.u32 %v1084_v39, %v1080_v34  ;;  %v1584_v52 = vrot.slane %v1462_v36, 5  ;;  %v400_v58 = vshrl.u32 %v289_v45, 16  ;;  %v403_v62 = vshll.u32 %v289_v45, 16  ;;  %v2504_v24 = vld [vmem:[#allocation2 + $0x40] sm:$0xf] }
  0x8c   : > { %v1081_v54 = vsel %vm5001_vm10, %v1076_v22, %v1080_v34  ;;  %v1582_v56 = vsel %vm4994_vm9, %v4405_v46, %v1581_v47  ;;  %v1583_v57 = vrot.slane %v1581_v47, 4  ;;  %v1578_v61 = vsel %vm4994_vm9, %v1576_v51, %v1577_v42  ;;  %v292_v28 = vld [vmem:[%s4988_s9 + $0x34] sm:$0xf]  ;;  %v2505_v33 = vld [vmem:[#allocation2 + $0x44] sm:$0x1] }
  0x8d   : > { %v1086_v60 = vrot.slane %v1085_v49, 4  ;;  %v408_v63 = vshrl.u32 %v290_v48, 16  ;;  %v4420_v1 = vcombine.low %v1575_v50, %v1578_v61  ;;  %v402_v3 = vrot.slane %v400_v58, 7 }
  0x8e   : > { %1388 = vrot.lane.b32.xlu1 %v4388_v14, %s4840_s11  ;;  %v1585_v2 = vsel %vm4994_vm9, %v1583_v57, %v1584_v52  ;;  %v411_v4 = vshll.u32 %v290_v48, 16  ;;  %v2091_v10 = vshrl.u32 %v1958_v59, 16  ;;  %v2094_v14 = vshll.u32 %v1958_v59, 16 }
  0x8f   : > { %v1091_v53 = vsel %vm5001_vm10, %v1086_v60, %v1090_v43  ;;  %v4421_v7 = vcombine.low %v1582_v56, %v1585_v2  ;;  %v410_v8 = vrot.slane %v408_v63, 7  ;;  %1712 = vrot.lane.b32.xlu0 %v4420_v1, %s4839_s10  ;;  %v405_v12 = vor.u32 %v403_v62, %v402_v3 }
  0x90   : > { %v4389_v40 = vcombine.low %v1081_v54, %v1091_v53  ;;  %v406_v13 = vrot.slane %v402_v3, 4  ;;  %v2093_v20 = vrot.slane %v2091_v10, 4  ;;  %v2100_v21 = vshll.u32 %v1959_v5, 16  ;;  %v682_v54 = vld [vmem:[#allocation2 + $0x54] sm:$0xf] }
  0x91   : > { %v413_v17 = vor.u32 %v411_v4, %v410_v8  ;;  %v415_v18 = vrot.slane %v410_v8, 4  ;;  %v676_v25 = vsel %vm5009_vm11, %v405_v12, %v675_v0  ;;  %v2096_v26 = vrot.slane %v2094_v14, 5  ;;  %v5266_v0 = vld [vmem:[%s4988_s9 + $0x38] sm:$0xf] }
  0x92   : > { %1390 = vrot.lane.b32.xlu1 %v4389_v40, %s4840_s11  ;;  %v2104_v23 = vshrl.u32 %v1959_v5, 16  ;;  %v2110_v27 = vshll.u32 %v1960_v9, 16  ;;  %677 = vst [vmem:[#allocation2 + $0x48] sm:$0xf] %v676_v25  ;;  %v2102_v31 = vrot.slane %v2100_v21, 5  ;;  %v4468_v35 = vrot.slane %v2503_v15, 9 }
  0x93   : > { %v414_v30 = vsel %vm5017_vm12, %v406_v13, %v413_v17  ;;  %v680_v32 = vsel %vm5032_vm13, %v415_v18, %v679_v6  ;;  %1889 = vrot.lane.b32.xlu0 %v4731_v11, %s4841_s12  ;;  %v2097_v34 = vor.u32 %v2096_v26, %v2093_v20  ;;  %v2617_v38 = vrot.slane %v2504_v24, 5  ;;  %v686_v20 = vld [vmem:[#allocation2 + $0x5c] sm:$0x1] }
  0x94   : > { %678 = vst.msk [vmem:[#allocation2 + $0x4c] sm:$0xf] %vm223_vm0, %v414_v30  ;;  %v2106_v36 = vrot.slane %v2104_v23, 4  ;;  %681 = vst [vmem:[#allocation2 + $0x50] sm:$0x1] %v680_v32  ;;  %v2112_v39 = vrot.slane %v2110_v27, 5 }
  0x95   : > { %v417_v43 = vshrl.u32 %v291_v16, 16  ;;  %v420_v44 = vshll.u32 %v291_v16, 16  ;;  %v425_v45 = vshrl.u32 %v292_v28, 16  ;;  %v2098_v22 = vrot.slane %v2097_v34, 4 }
  0x96   : > { %1714 = vrot.lane.b32.xlu1 %v4421_v7, %s4839_s10  ;;  %v2107_v42 = vor.u32 %v2106_v36, %v2102_v31  ;;  %v2619_v46 = vrot.slane %v2617_v38, 4  ;;  %v2620_v47 = vrot.slane %v2505_v33, 5  ;;  %v428_v50 = vshll.u32 %v292_v28, 16 }
  0x97   : > { %v419_v48 = vrot.slane %v417_v43, 7  ;;  %v5254_v49 = vrot.slane %v425_v45, 7  ;;  %v2103_v51 = vsel %vm5001_vm10, %v2098_v22, %v2102_v31  ;;  %v2618_v61 = vsel %vm4994_vm9, %v4468_v35, %v2617_v38 }
  0x98   : > { %v2108_v52 = vrot.slane %v2107_v42, 4  ;;  %v2621_v62 = vsel %vm4994_vm9, %v2619_v46, %v2620_v47  ;;  %v434_v26 = vshrl.u32 %v5266_v0, 16  ;;  %vm1752_vm1 = vcmask 97344  }
  0x99   : > { %v422_v56 = vor.u32 %v420_v44, %v419_v48  ;;  %v423_v57 = vrot.slane %v419_v48, 4  ;;  %v430_v58 = vor.u32 %v428_v50, %v5254_v49  ;;  %v1961_v60 = vld [vmem:[#allocation2 + $0x48] sm:$0xf]  ;;  %v4484_v12 = vcombine.low %v2618_v61, %v2621_v62 }
  0x9a   : > { %v2113_v59 = vsel %vm5001_vm10, %v2108_v52, %v2112_v39  ;;  %v2506_v63 = vld [vmem:[#allocation2 + $0x48] sm:$0xe]  ;;  %v2115_v4 = vshrl.u32 %v1961_v60, 16  ;;  %v2118_v7 = vshll.u32 %v1961_v60, 16  ;;  %v432_v25 = vrot.slane %v5254_v49, 4 }
  0x9b   : > { %v4732_v1 = vld [vmem:[#allocation2 + $0x48] sm:$0xff]   ;;  %v4452_v2 = vcombine.low %v2103_v51, %v2113_v59  ;;  %v431_v5 = vsel %vm5017_vm12, %v423_v57, %v430_v58  ;;  %v683_v6 = vsel %vm5009_vm11, %v422_v56, %v682_v54  ;;  %v1963_v53 = vld [vmem:[#allocation2 + $0x50] sm:$0x1]  ;;  %v4469_v10 = vrot.slane %v2506_v63, 9 }
  0x9c   : > { %v1962_v3 = vld [vmem:[#allocation2 + $0x4c] sm:$0xf]  ;;  %684 = vst [vmem:[#allocation2 + $0x54] sm:$0xf] %v683_v6  ;;  %685 = vst.msk [vmem:[#allocation2 + $0x58] sm:$0xf] %vm223_vm0, %v431_v5  ;;  %1891 = vrot.lane.b32.xlu1 %v4732_v1, %s4841_s12  ;;  %v687_v48 = vsel %vm5032_vm13, %v432_v25, %v686_v20 }
  0x9d   : > { %v2124_v8 = vshll.u32 %v1962_v3, 16  ;;  %v2128_v9 = vshrl.u32 %v1962_v3, 16  ;;  %2434 = vrot.lane.b32.xlu0 %v4452_v2, %s4845_s16  ;;  %v2117_v40 = vrot.slane %v2115_v4, 4  ;;  %v2134_v11 = vshll.u32 %v1963_v53, 16  ;;  %v2507_v13 = vld [vmem:[#allocation2 + $0x4c] sm:$0xf] }
  0x9e   : > { %v2508_v14 = vld [vmem:[#allocation2 + $0x50] sm:$0x1]  ;;  %v2120_v15 = vrot.slane %v2118_v7, 5  ;;  %v2624_v18 = vrot.slane %v2507_v13, 5  ;;  %v4733_v31 = vld [vmem:[#allocation2 + $0x48] sm:$0xff]   ;;  %v437_v49 = vshll.u32 %v5266_v0, 16 }
  0x9f   : > { %v2126_v16 = vrot.slane %v2124_v8, 5  ;;  %v2130_v17 = vrot.slane %v2128_v9, 4  ;;  %v2136_v21 = vrot.slane %v2134_v11, 5  ;;  %v2627_v24 = vrot.slane %v2508_v14, 5  ;;  %v3002_v32 = vld [vmem:[#allocation2 + $0x48] sm:$0xf] }
  0xa0   : > { %v2121_v23 = vor.u32 %v2120_v15, %v2117_v40  ;;  %v5279_v28 = vsel %vm4994_vm9, %v4469_v10, %v2624_v18  ;;  %v2626_v30 = vrot.slane %v2624_v18, 4  ;;  %v3003_v33 = vld [vmem:[#allocation2 + $0x4c] sm:$0xf]  ;;  %v3004_v34 = vld [vmem:[#allocation2 + $0x50] sm:$0x1]  ;;  %v3135_v36 = vshrl.u32 %v3002_v32, 16  ;;  %v5292_v58 = vpop.permute.xlu0 %1380  ;;  %v5298_v18 = vpop.permute.xlu1 %1704 }
  0xa1   : > { %v2131_v27 = vor.u32 %v2130_v17, %v2126_v16  ;;  %2755 = vrot.lane.b32.xlu0 %v4484_v12, %s4843_s14  ;;  %v3138_v35 = vshll.u32 %v3002_v32, 16  ;;  %v3144_v38 = vshll.u32 %v3003_v33, 16  ;;  %v3148_v39 = vshrl.u32 %v3003_v33, 16  ;;  %v3547_v42 = vld [vmem:[#allocation2 + $0x48] sm:$0xe]  ;;  %v4752_v0 = vld [vmem:[#allocation2 + $0x30] sm:$0xff]  }
  0xa2   : > { %v2122_v43 = vrot.slane %v2121_v23, 4  ;;  %v2628_v45 = vsel %vm4994_vm9, %v2626_v30, %v2627_v24  ;;  %v3154_v22 = vshll.u32 %v3004_v34, 16  ;;  %v3137_v47 = vrot.slane %v3135_v36, 4  ;;  %688 = vst [vmem:[#allocation2 + $0x5c] sm:$0x1] %v687_v48  ;;  %885 = vst.msk [vmem:[#allocation3 + $0x20] sm:$0xff] %vm880_vm14, %v4752_v0 }
  0xa3   : > { %v2132_v44 = vrot.slane %v2131_v27, 4  ;;  %v4485_v46 = vcombine.low %v5279_v28, %v2628_v45  ;;  %v3140_v52 = vrot.slane %v3138_v35, 5  ;;  %v3146_v54 = vrot.slane %v3144_v38, 5  ;;  %v3005_v56 = vld [vmem:[#allocation2 + $0x54] sm:$0xf] }
  0xa4   : > { %v2127_v50 = vsel %vm5001_vm10, %v2122_v43, %v2126_v16  ;;  %v3006_v57 = vld [vmem:[#allocation2 + $0x58] sm:$0xf]  ;;  %v3150_v60 = vrot.slane %v3148_v39, 4  ;;  %v3156_v61 = vrot.slane %v3154_v22, 5  ;;  %v3159_v62 = vshrl.u32 %v3005_v56, 16 }
  0xa5   : > { %v2137_v51 = vsel %vm5001_vm10, %v2132_v44, %v2136_v21  ;;  %2933 = vrot.lane.b32.xlu0 %v4733_v31, %s4842_s13  ;;  %v3548_v63 = vld [vmem:[#allocation2 + $0x4c] sm:$0xf]  ;;  %v3141_v1 = vor.u32 %v3140_v52, %v3137_v47  ;;  %v3162_v2 = vshll.u32 %v3005_v56, 16  ;;  %v3168_v3 = vshll.u32 %v3006_v57, 16  ;;  %v3549_v5 = vld [vmem:[#allocation2 + $0x50] sm:$0x1] }
  0xa6   : > { %v4453_v59 = vcombine.low %v2127_v50, %v2137_v51  ;;  %v3172_v4 = vshrl.u32 %v3006_v57, 16  ;;  %v3151_v6 = vor.u32 %v3150_v60, %v3146_v54  ;;  %v3161_v53 = vrot.slane %v3159_v62, 4  ;;  %v915_v9 = vld [vmem:[#allocation2 + $0x48] sm:$0xf]  ;;  %v916_v13 = vld [vmem:[#allocation2 + $0x4c] sm:$0xf] }
  0xa7   : > { %v4532_v7 = vrot.slane %v3547_v42, 9  ;;  %v3661_v8 = vrot.slane %v3548_v63, 5  ;;  %v3142_v10 = vrot.slane %v3141_v1, 4  ;;  %v3164_v40 = vrot.slane %v3162_v2, 5  ;;  %v4734_v20 = vld [vmem:[#allocation2 + $0x54] sm:$0xff]  }
  0xa8   : > { %2436 = vrot.lane.b32.xlu1 %v4453_v59, %s4845_s16  ;;  %v3170_v11 = vrot.slane %v3168_v3, 5  ;;  %v3174_v12 = vrot.slane %v3172_v4, 4  ;;  %v3152_v14 = vrot.slane %v3151_v6, 4  ;;  %v3664_v17 = vrot.slane %v3549_v5, 5  ;;  %v917_v23 = vld [vmem:[#allocation2 + $0x50] sm:$0x1] }
  0xa9   : > { %v3662_v15 = vsel %vm4994_vm9, %v4532_v7, %v3661_v8  ;;  %v3663_v16 = vrot.slane %v3661_v8, 4  ;;  %v3147_v21 = vsel %vm5001_vm10, %v3142_v10, %v3146_v54  ;;  %v3165_v24 = vor.u32 %v3164_v40, %v3161_v53  ;;  %v3550_v28 = vld [vmem:[#allocation2 + $0x54] sm:$0xe]  ;;  %v5302_v30 = vpop.permute.xlu0 %1881  ;;  %v3007_v32 = vld [vmem:[#allocation2 + $0x5c] sm:$0x1] }
  0xaa   : > { %v3175_v25 = vor.u32 %v3174_v12, %v3170_v11  ;;  %v1093_v27 = vshrl.u32 %v915_v9, 16  ;;  %v3157_v31 = vsel %vm5001_vm10, %v3152_v14, %v3156_v61  ;;  %v1096_v34 = vshll.u32 %v915_v9, 16  ;;  %v3551_v35 = vld [vmem:[#allocation2 + $0x58] sm:$0xf]  ;;  %v3552_v45 = vld [vmem:[#allocation2 + $0x5c] sm:$0x1] }
  0xab   : > { %v3665_v33 = vsel %vm4994_vm9, %v3663_v16, %v3664_v17  ;;  %v1102_v36 = vshll.u32 %v916_v13, 16  ;;  %v4516_v38 = vcombine.low %v3147_v21, %v3157_v31  ;;  %v3166_v39 = vrot.slane %v3165_v24, 4  ;;  %v919_v56 = vld [vmem:[#allocation2 + $0x58] sm:$0xf]  ;;  %v920_v62 = vld [vmem:[#allocation2 + $0x5c] sm:$0x1] }
  0xac   : > { %2757 = vrot.lane.b32.xlu1 %v4485_v46, %s4843_s14  ;;  %v3176_v43 = vrot.slane %v3175_v25, 4  ;;  %v3178_v44 = vshll.u32 %v3007_v32, 16  ;;  %v4548_v22 = vcombine.low %v3662_v15, %v3665_v33  ;;  %v1095_v42 = vrot.slane %v1093_v27, 4  ;;  %v918_v46 = vld [vmem:[#allocation2 + $0x54] sm:$0xf] }
  0xad   : > { %v1098_v47 = vrot.slane %v1096_v34, 5  ;;  %v1104_v48 = vrot.slane %v1102_v36, 5  ;;  %3478 = vrot.lane.b32.xlu0 %v4516_v38, %s4846_s17  ;;  %v3171_v50 = vsel %vm5001_vm10, %v3166_v39, %v3170_v11  ;;  %v1106_v52 = vshrl.u32 %v916_v13, 16  ;;  %v1463_v5 = vld [vmem:[#allocation2 + $0x48] sm:$0xe] }
  0xae   : > { %v3180_v51 = vrot.slane %v3178_v44, 5  ;;  %v1112_v54 = vshll.u32 %v917_v23, 16  ;;  %v4533_v59 = vrot.slane %v3550_v28, 9  ;;  %v3668_v60 = vrot.slane %v3551_v35, 5  ;;  %v1464_v10 = vld [vmem:[#allocation2 + $0x4c] sm:$0xf] }
  0xaf   : > { %v1099_v57 = vor.u32 %v1098_v47, %v1095_v42  ;;  %v3671_v61 = vrot.slane %v3552_v45, 5  ;;  %v1108_v2 = vrot.slane %v1106_v52, 4  ;;  %v1117_v4 = vshrl.u32 %v918_v46, 16  ;;  %v1465_v40 = vld [vmem:[#allocation2 + $0x50] sm:$0x1] }
  0xb0   : > { %2935 = vrot.lane.b32.xlu1 %v4734_v20, %s4842_s13  ;;  %v5313_v63 = vpop.permute.xlu1 %1883  ;;  %v3181_v1 = vsel %vm5001_vm10, %v3176_v43, %v3180_v51  ;;  %v1114_v3 = vrot.slane %v1112_v54, 5  ;;  %v3669_v8 = vsel %vm4994_vm9, %v4533_v59, %v3668_v60  ;;  %v3670_v9 = vrot.slane %v3668_v60, 4  ;;  %v1466_v15 = vld [vmem:[#allocation2 + $0x54] sm:$0xe]  ;;  %v1467_v24 = vld [vmem:[#allocation2 + $0x58] sm:$0xf] }
  0xb1   : > { %v5317_v6 = vpop.permute.xlu0 %2925  ;;  %v4517_v53 = vcombine.low %v3171_v50, %v3181_v1  ;;  %v1100_v7 = vrot.slane %v1099_v57, 4  ;;  %3799 = vrot.lane.b32.xlu0 %v4548_v22, %s4844_s15  ;;  %v1109_v11 = vor.u32 %v1108_v2, %v1104_v48  ;;  %v1119_v12 = vrot.slane %v1117_v4, 4  ;;  %v1468_v38 = vld [vmem:[#allocation2 + $0x5c] sm:$0x1]  ;;  %v1964_v1 = vld [vmem:[#allocation2 + $0x54] sm:$0xf] }
  0xb2   : > { %v1120_v13 = vshll.u32 %v918_v46, 16  ;;  %v1126_v14 = vshll.u32 %v919_v56, 16  ;;  %v3672_v17 = vsel %vm4994_vm9, %v3670_v9, %v3671_v61  ;;  %v1130_v20 = vshrl.u32 %v919_v56, 16  ;;  %v294_v22 = vld [vmem:[%s4988_s9 + $0x3c] sm:$0xf] }
  0xb3   : > { %v1105_v16 = vsel %vm5001_vm10, %v1100_v7, %v1104_v48  ;;  %v1136_v21 = vshll.u32 %v920_v62, 16  ;;  %v1110_v23 = vrot.slane %v1109_v11, 4  ;;  %v4549_v27 = vcombine.low %v3669_v8, %v3672_v17  ;;  %v693_v7 = vld [vmem:[#allocation2 + $0x68] sm:$0x1]  ;;  %v1965_v11 = vld [vmem:[#allocation2 + $0x58] sm:$0xf] }
  0xb4   : > { %3480 = vrot.lane.b32.xlu1 %v4517_v53, %s4846_s17  ;;  %v5327_v25 = vpop.permute.xlu1 %2927  ;;  %v1122_v28 = vrot.slane %v1120_v13, 5  ;;  %v1128_v31 = vrot.slane %v1126_v14, 5  ;;  %v1132_v33 = vrot.slane %v1130_v20, 4  ;;  %v4406_v36 = vrot.slane %v1463_v5, 9  ;;  %v4735_v5 = vld [vmem:[#allocation2 + $0x54] sm:$0xff]  }
  0xb5   : > { %v5329_v32 = vpop.permute.xlu0 %2747  ;;  %v1138_v34 = vrot.slane %v1136_v21, 5  ;;  %v1588_v35 = vrot.slane %v1464_v10, 5  ;;  %v1115_v39 = vsel %vm5001_vm10, %v1110_v23, %v1114_v3  ;;  %3801 = vrot.lane.b32.xlu0 %v4549_v27, %s4844_s15  ;;  %v1591_v44 = vrot.slane %v1465_v40, 5  ;;  %v689_v53 = vld [vmem:[#allocation2 + $0x60] sm:$0xf]  ;;  %v4743_v23 = vld [vmem:[#allocation2 + $0x18] sm:$0xff]  }
  0xb6   : > { %v1123_v43 = vor.u32 %v1122_v28, %v1119_v12  ;;  %v4407_v45 = vrot.slane %v1466_v15, 9  ;;  %v4390_v42 = vcombine.low %v1105_v16, %v1115_v39  ;;  %v1133_v47 = vor.u32 %v1132_v33, %v1128_v31  ;;  %v1966_v12 = vld [vmem:[#allocation2 + $0x5c] sm:$0x1]  ;;  %v2509_v17 = vld [vmem:[#allocation2 + $0x54] sm:$0xe]  ;;  %v4737_v21 = vld [vmem:[#allocation2] sm:$0xff]  }
  0xb7   : > { %v1589_v48 = vsel %vm4994_vm9, %v4406_v36, %v1588_v35  ;;  %v1590_v46 = vrot.slane %v1588_v35, 4  ;;  %v1595_v51 = vrot.slane %v1467_v24, 5  ;;  %v1598_v52 = vrot.slane %v1468_v38, 5  ;;  %v2510_v20 = vld [vmem:[#allocation2 + $0x58] sm:$0xf]  ;;  %v4742_v24 = vld [vmem:[#allocation2 + $0xc] sm:$0xff]  }
  0xb8   : > { %v1124_v50 = vrot.slane %v1123_v43, 4  ;;  %v436_v54 = vrot.slane %v434_v26, 7  ;;  %v5339_v56 = vpop.permute.xlu1 %1706  ;;  %1392 = vrot.lane.b32.xlu1 %v4390_v42, %s4840_s11  ;;  %v1134_v59 = vrot.slane %v1133_v47, 4  ;;  %v442_v61 = vshrl.u32 %v294_v22, 16  ;;  %v4745_v27 = vld [vmem:[#allocation2 + $0x24] sm:$0xff]   ;;  %v4753_v36 = vld [vmem:[#allocation2 + $0x3c] sm:$0xff]  }
  0xb9   : > { %v5341_v57 = vpop.permute.xlu0 %3791  ;;  %v1592_v60 = vsel %vm4994_vm9, %v1590_v46, %v1591_v44  ;;  %v445_v62 = vshll.u32 %v294_v22, 16  ;;  %v1596_v26 = vsel %vm4994_vm9, %v4407_v45, %v1595_v51  ;;  %v1597_v4 = vrot.slane %v1595_v51, 4  ;;  %881 = vst.msk [vmem:[#allocation3] sm:$0xff] %vm880_vm14, %v4737_v21  ;;  %882 = vst.msk [vmem:[#allocation3 + $0x8] sm:$0xff] %vm880_vm14, %v4742_v24  ;;  %v696_v0 = vld [vmem:[#allocation2 + $0x6c] sm:$0xf] }
  0xba   : > { %v1129_v2 = vsel %vm5001_vm10, %v1124_v50, %v1128_v31  ;;  %v4422_v3 = vcombine.low %v1589_v48, %v1592_v60  ;;  %v1139_v8 = vsel %vm5001_vm10, %v1134_v59, %v1138_v34  ;;  %v439_v9 = vor.u32 %v437_v49, %v436_v54  ;;  %v2511_v34 = vld [vmem:[#allocation2 + $0x5c] sm:$0x1]  ;;  %v5372_v60 = vld [vmem:[%s4988_s9 + $0x44] sm:$0xf]  ;;  %883 = vst.msk [vmem:[#allocation3 + $0x10] sm:$0xff] %vm880_vm14, %v4743_v23 }
  0xbb   : > { %v440_v10 = vrot.slane %v436_v54, 4  ;;  %v444_v40 = vrot.slane %v442_v61, 7  ;;  %v4391_v13 = vcombine.low %v1129_v2, %v1139_v8  ;;  %v1599_v14 = vsel %vm4994_vm9, %v1597_v4, %v1598_v52  ;;  %v295_v52 = vld [vmem:[%s4988_s9 + $0x40] sm:$0xf]  ;;  %884 = vst.msk [vmem:[#allocation3 + $0x18] sm:$0xff] %vm880_vm14, %v4745_v27  ;;  %886 = vst.msk [vmem:[#allocation3 + $0x28] sm:$0xff] %vm880_vm14, %v4753_v36 }
  0xbc   : > { %1716 = vrot.lane.b32.xlu0 %v4422_v3, %s4839_s10  ;;  %v2139_v15 = vshrl.u32 %v1964_v1, 16  ;;  %v2142_v16 = vshll.u32 %v1964_v1, 16  ;;  %v4423_v49 = vcombine.low %v1596_v26, %v1599_v14  ;;  %v690_v33 = vsel %vm5009_vm11, %v439_v9, %v689_v53  ;;  %v5360_v44 = vpop.permute.xlu1 %2749  ;;  %1429 = vst.msk [vmem:[#allocation3] sm:$0xff] %vm1428_vm15, %v5292_v58 }
  0xbd   : > { %v447_v28 = vor.u32 %v445_v62, %v444_v40  ;;  %v449_v31 = vrot.slane %v444_v40, 4  ;;  %1394 = vrot.lane.b32.xlu1 %v4391_v13, %s4840_s11  ;;  %691 = vst [vmem:[#allocation2 + $0x60] sm:$0xf] %v690_v33  ;;  %v2148_v39 = vshll.u32 %v1965_v11, 16  ;;  %v2152_v43 = vshrl.u32 %v1965_v11, 16  ;;  %v5362_v45 = vpop.permute.xlu0 %3793  ;;  %1753 = vst.msk [vmem:[#allocation3] sm:$0xff] %vm1752_vm1, %v5298_v18 }
  0xbe   : > { %v2141_v35 = vrot.slane %v2139_v15, 4  ;;  %v2144_v38 = vrot.slane %v2142_v16, 5  ;;  %v2158_v42 = vshll.u32 %v1966_v12, 16  ;;  %v2631_v51 = vrot.slane %v2510_v20, 5 }
  0xbf   : > { %v448_v22 = vsel %vm5017_vm12, %v440_v10, %v447_v28  ;;  %v694_v47 = vsel %vm5032_vm13, %v449_v31, %v693_v7  ;;  %v2150_v46 = vrot.slane %v2148_v39, 5  ;;  %v2154_v50 = vrot.slane %v2152_v43, 4 }
  0xc0   : > { %1893 = vrot.lane.b32.xlu0 %v4735_v5, %s4841_s12  ;;  %692 = vst.msk [vmem:[#allocation2 + $0x64] sm:$0xf] %vm223_vm0, %v448_v22  ;;  %v2145_v48 = vor.u32 %v2144_v38, %v2141_v35  ;;  %695 = vst [vmem:[#allocation2 + $0x68] sm:$0x1] %v694_v47  ;;  %v4470_v54 = vrot.slane %v2509_v17, 9  ;;  %v2634_v59 = vrot.slane %v2511_v34, 5  ;;  %v5388_v7 = vpop.permute.xlu1 %2428 }
  0xc1   : > { %1718 = vrot.lane.b32.xlu1 %v4423_v49, %s4839_s10  ;;  %v2155_v62 = vor.u32 %v2154_v50, %v2150_v46  ;;  %v2160_v1 = vrot.slane %v2158_v42, 5  ;;  %v2633_v2 = vrot.slane %v2631_v51, 4  ;;  %v451_v3 = vshrl.u32 %v295_v52, 16 }
  0xc2   : > { %v2146_v61 = vrot.slane %v2145_v48, 4  ;;  %v454_v5 = vshll.u32 %v295_v52, 16  ;;  %v459_v53 = vshrl.u32 %v5372_v60, 16  ;;  %v2632_v10 = vsel %vm4994_vm9, %v4470_v54, %v2631_v51 }
  0xc3   : > { %v2156_v4 = vrot.slane %v2155_v62, 4  ;;  %v2635_v58 = vsel %vm4994_vm9, %v2633_v2, %v2634_v59  ;;  %v453_v17 = vrot.slane %v451_v3, 7  ;;  %vm1929_vm2 = vcmask 130144  }
  0xc4   : > { %v2151_v26 = vsel %vm5001_vm10, %v2146_v61, %v2150_v46  ;;  %v1383_v8 = vpop.permute.xlu0 %1382  ;;  %v1967_v9 = vld [vmem:[#allocation2 + $0x60] sm:$0xf]  ;;  %v4486_v28 = vcombine.low %v2632_v10, %v2635_v58  ;;  %v461_v48 = vrot.slane %v459_v53, 7  ;;  %1930 = vst.msk [vmem:[#allocation3] sm:$0xff] %vm1929_vm2, %v5302_v30  ;;  %v700_v53 = vld [vmem:[#allocation2 + $0x74] sm:$0x1] }
  0xc5   : > { %v2512_v40 = vld [vmem:[#allocation2 + $0x60] sm:$0xe]  ;;  %1430 = vst.msk [vmem:[#allocation3 + $0x8] sm:$0xff] %vm1428_vm15, %v1383_v8  ;;  %v2161_v11 = vsel %vm5001_vm10, %v2156_v4, %v2160_v1  ;;  %v2163_v18 = vshrl.u32 %v1967_v9, 16  ;;  %v2166_v12 = vshll.u32 %v1967_v9, 16  ;;  %v456_v34 = vor.u32 %v454_v5, %v453_v17 }
  0xc6   : > { %v4471_v13 = vrot.slane %v2512_v40, 9  ;;  %1754 = vst.msk [vmem:[#allocation3 + $0x8] sm:$0xff] %vm1752_vm1, %v5339_v56  ;;  %v4454_v15 = vcombine.low %v2151_v26, %v2161_v11  ;;  %v462_v56 = vshll.u32 %v5372_v60, 16  ;;  %v457_v47 = vrot.slane %v453_v17, 4  ;;  %v3008_v46 = vld [vmem:[#allocation2 + $0x60] sm:$0xf] }
  0xc7   : > { %v4736_v14 = vld [vmem:[#allocation2 + $0x60] sm:$0xff]   ;;  %v1969_v20 = vld [vmem:[#allocation2 + $0x68] sm:$0x1]  ;;  %v2165_v21 = vrot.slane %v2163_v18, 4  ;;  %v2168_v24 = vrot.slane %v2166_v12, 5  ;;  %v466_v62 = vrot.slane %v461_v48, 4  ;;  %v697_v1 = vsel %vm5009_vm11, %v456_v34, %v696_v0 }
  0xc8   : > { %v1968_v16 = vld [vmem:[#allocation2 + $0x64] sm:$0xf]  ;;  %1895 = vrot.lane.b32.xlu1 %v4736_v14, %s4841_s12  ;;  %2438 = vrot.lane.b32.xlu0 %v4454_v15, %s4845_s16  ;;  %v2182_v49 = vshll.u32 %v1969_v20, 16  ;;  %v2514_v33 = vld [vmem:[#allocation2 + $0x68] sm:$0x1]  ;;  %v5402_v43 = vpop.permute.xlu1 %3472  ;;  %v464_v61 = vor.u32 %v462_v56, %v461_v48  ;;  %v3183_v5 = vshrl.u32 %v3008_v46, 16 }
  0xc9   : > { %v2172_v23 = vshll.u32 %v1968_v16, 16  ;;  %v2176_v27 = vshrl.u32 %v1968_v16, 16  ;;  %v2513_v31 = vld [vmem:[#allocation2 + $0x64] sm:$0xf]  ;;  %v2169_v36 = vor.u32 %v2168_v24, %v2165_v21  ;;  %v2641_v42 = vrot.slane %v2514_v33, 5  ;;  %1931 = vst.msk [vmem:[#allocation3 + $0x8] sm:$0xff] %vm1929_vm2, %v5313_v63 }
  0xca   : > { %v2638_v39 = vrot.slane %v2513_v31, 5  ;;  %v2184_v22 = vrot.slane %v2182_v49, 5  ;;  %v3009_v59 = vld [vmem:[#allocation2 + $0x64] sm:$0xf]  ;;  %v3010_v2 = vld [vmem:[#allocation2 + $0x68] sm:$0x1]  ;;  %v465_v58 = vsel %vm5017_vm12, %v457_v47, %v464_v61  ;;  %v701_v24 = vsel %vm5032_vm13, %v466_v62, %v700_v53 }
  0xcb   : > { %v2174_v35 = vrot.slane %v2172_v23, 5  ;;  %v2178_v38 = vrot.slane %v2176_v27, 4  ;;  %v2170_v50 = vrot.slane %v2169_v36, 4  ;;  %v4738_v60 = vld [vmem:[#allocation2 + $0x60] sm:$0xff]   ;;  %698 = vst [vmem:[#allocation2 + $0x6c] sm:$0xf] %v697_v1 }
  0xcc   : > { %v5406_v52 = vsel %vm4994_vm9, %v4471_v13, %v2638_v39  ;;  %v2640_v54 = vrot.slane %v2638_v39, 4  ;;  %2759 = vrot.lane.b32.xlu0 %v4486_v28, %s4843_s14  ;;  %v3553_v8 = vld [vmem:[#allocation2 + $0x60] sm:$0xe]  ;;  %v5419_v9 = vpop.permute.xlu0 %2426  ;;  %v3186_v40 = vshll.u32 %v3008_v46, 16  ;;  %v3192_v11 = vshll.u32 %v3009_v59, 16 }
  0xcd   : > { %v2179_v51 = vor.u32 %v2178_v38, %v2174_v35  ;;  %v2175_v3 = vsel %vm5001_vm10, %v2170_v50, %v2174_v35  ;;  %v3554_v18 = vld [vmem:[#allocation2 + $0x64] sm:$0xf]  ;;  %v3555_v12 = vld [vmem:[#allocation2 + $0x68] sm:$0x1]  ;;  %699 = vst.msk [vmem:[#allocation2 + $0x70] sm:$0xf] %vm223_vm0, %v465_v58 }
  0xce   : > { %v2642_v4 = vsel %vm4994_vm9, %v2640_v54, %v2641_v42  ;;  %v3185_v13 = vrot.slane %v3183_v5, 4  ;;  %v3196_v14 = vshrl.u32 %v3009_v59, 16  ;;  %v3202_v15 = vshll.u32 %v3010_v2, 16  ;;  %v921_v63 = vld [vmem:[#allocation2 + $0x60] sm:$0xf] }
  0xcf   : > { %v2180_v26 = vrot.slane %v2179_v51, 4  ;;  %v4487_v10 = vcombine.low %v5406_v52, %v2642_v4  ;;  %v3188_v20 = vrot.slane %v3186_v40, 5  ;;  %v3194_v21 = vrot.slane %v3192_v11, 5  ;;  %v922_v23 = vld [vmem:[#allocation2 + $0x64] sm:$0xf] }
  0xd0   : > { %v1385_v16 = vpop.permute.xlu1 %1384  ;;  %2937 = vrot.lane.b32.xlu0 %v4738_v60, %s4842_s13  ;;  %v3198_v27 = vrot.slane %v3196_v14, 4  ;;  %v3204_v0 = vrot.slane %v3202_v15, 5  ;;  %702 = vst [vmem:[#allocation2 + $0x74] sm:$0x1] %v701_v24  ;;  %v4534_v49 = vrot.slane %v3553_v8, 9  ;;  %v3675_v28 = vrot.slane %v3554_v18, 5 }
  0xd1   : > { %v2185_v30 = vsel %vm5001_vm10, %v2180_v26, %v2184_v22  ;;  %1431 = vst.msk [vmem:[#allocation3 + $0x10] sm:$0xff] %vm1428_vm15, %v1385_v16  ;;  %v3189_v31 = vor.u32 %v3188_v20, %v3185_v13  ;;  %v3678_v33 = vrot.slane %v3555_v12, 5  ;;  %v1141_v34 = vshrl.u32 %v921_v63, 16  ;;  %v923_v54 = vld [vmem:[#allocation2 + $0x68] sm:$0x1] }
  0xd2   : > { %v4455_v17 = vcombine.low %v2175_v3, %v2185_v30  ;;  %v1144_v56 = vshll.u32 %v921_v63, 16  ;;  %v3199_v36 = vor.u32 %v3198_v27, %v3194_v21  ;;  %v5434_v35 = vsel %vm4994_vm9, %v4534_v49, %v3675_v28  ;;  %v3011_v47 = vld [vmem:[#allocation2 + $0x6c] sm:$0xf] }
  0xd3   : > { %v3677_v38 = vrot.slane %v3675_v28, 4  ;;  %v1150_v39 = vshll.u32 %v922_v23, 16  ;;  %v3190_v42 = vrot.slane %v3189_v31, 4  ;;  %v1143_v48 = vrot.slane %v1141_v34, 4  ;;  %v3556_v5 = vld [vmem:[#allocation2 + $0x6c] sm:$0xe] }
  0xd4   : > { %2440 = vrot.lane.b32.xlu1 %v4455_v17, %s4845_s16  ;;  %v3200_v46 = vrot.slane %v3199_v36, 4  ;;  %v3207_v50 = vshrl.u32 %v3011_v47, 16  ;;  %v3210_v51 = vshll.u32 %v3011_v47, 16  ;;  %v4739_v59 = vld [vmem:[#allocation2 + $0x6c] sm:$0xff]   ;;  %v1146_v1 = vrot.slane %v1144_v56, 5 }
  0xd5   : > { %v5436_v22 = vpop.permute.xlu0 %3470  ;;  %v3679_v52 = vsel %vm4994_vm9, %v3677_v38, %v3678_v33  ;;  %v3195_v60 = vsel %vm5001_vm10, %v3190_v42, %v3194_v21  ;;  %v3012_v61 = vld [vmem:[#allocation2 + $0x70] sm:$0xf]  ;;  %v5446_v11 = vrot.slane %v1150_v39, 5  ;;  %v1154_v14 = vshrl.u32 %v922_v23, 16  ;;  %v924_v24 = vld [vmem:[#allocation2 + $0x6c] sm:$0xf] }
  0xd6   : > { %v4550_v62 = vcombine.low %v5434_v35, %v3679_v52  ;;  %v3205_v2 = vsel %vm5001_vm10, %v3200_v46, %v3204_v0  ;;  %v3209_v3 = vrot.slane %v3207_v50, 4  ;;  %v3212_v26 = vrot.slane %v3210_v51, 5  ;;  %v3557_v18 = vld [vmem:[#allocation2 + $0x70] sm:$0xf]  ;;  %v4758_v50 = vld [vmem:[#allocation2 + $0x48] sm:$0xff]  }
  0xd7   : > { %v3216_v4 = vshll.u32 %v3012_v61, 16  ;;  %v4518_v8 = vcombine.low %v3195_v60, %v3205_v2  ;;  %v3013_v58 = vld [vmem:[#allocation2 + $0x74] sm:$0x1]  ;;  %v3220_v40 = vshrl.u32 %v3012_v61, 16  ;;  %v1160_v20 = vshll.u32 %v923_v54, 16  ;;  %887 = vst.msk [vmem:[#allocation3 + $0x30] sm:$0xff] %vm880_vm14, %v4758_v50 }
  0xd8   : > { %2761 = vrot.lane.b32.xlu1 %v4487_v10, %s4843_s14  ;;  %v1147_v10 = vor.u32 %v1146_v1, %v1143_v48  ;;  %v3213_v12 = vor.u32 %v3212_v26, %v3209_v3  ;;  %v3226_v13 = vshll.u32 %v3013_v58, 16  ;;  %v3558_v15 = vld [vmem:[#allocation2 + $0x74] sm:$0x1]  ;;  %v4535_v21 = vrot.slane %v3556_v5, 9  ;;  %v925_v31 = vld [vmem:[#allocation2 + $0x70] sm:$0xf] }
  0xd9   : > { %v1709_v53 = vpop.permute.xlu0 %1708  ;;  %v3218_v30 = vrot.slane %v3216_v4, 5  ;;  %3482 = vrot.lane.b32.xlu0 %v4518_v8, %s4846_s17  ;;  %v3222_v16 = vrot.slane %v3220_v40, 4  ;;  %v1156_v49 = vrot.slane %v1154_v14, 4  ;;  %v3682_v28 = vrot.slane %v3557_v18, 5  ;;  %v926_v35 = vld [vmem:[#allocation2 + $0x74] sm:$0x1] }
  0xda   : > { %1755 = vst.msk [vmem:[#allocation3 + $0x10] sm:$0xff] %vm1752_vm1, %v1709_v53  ;;  %v1387_v63 = vpop.permute.xlu1 %1386  ;;  %v1148_v17 = vrot.slane %v1147_v10, 4  ;;  %v3214_v27 = vrot.slane %v3213_v12, 4  ;;  %v3228_v0 = vrot.slane %v3226_v13, 5  ;;  %v1162_v56 = vrot.slane %v1160_v20, 5  ;;  %v4759_v4 = vld [vmem:[#allocation2 + $0x54] sm:$0xff]  }
  0xdb   : > { %1432 = vst.msk [vmem:[#allocation3 + $0x18] sm:$0xff] %vm1428_vm15, %v1387_v63  ;;  %v3223_v23 = vor.u32 %v3222_v16, %v3218_v30  ;;  %v3685_v36 = vrot.slane %v3558_v15, 5  ;;  %v1157_v39 = vor.u32 %v1156_v49, %v5446_v11  ;;  %v3683_v42 = vsel %vm4994_vm9, %v4535_v21, %v3682_v28  ;;  %v1469_v48 = vld [vmem:[#allocation2 + $0x60] sm:$0xe]  ;;  %v1470_v3 = vld [vmem:[#allocation2 + $0x64] sm:$0xf] }
  0xdc   : > { %2939 = vrot.lane.b32.xlu1 %v4739_v59, %s4842_s13  ;;  %v1153_v34 = vsel %vm5001_vm10, %v1148_v17, %v5446_v11  ;;  %v3219_v38 = vsel %vm5001_vm10, %v3214_v27, %v3218_v30  ;;  %v3684_v47 = vrot.slane %v3682_v28, 4  ;;  %v1165_v52 = vshrl.u32 %v924_v24, 16  ;;  %v297_v26 = vld [vmem:[%s4988_s9 + $0x48] sm:$0xf]  ;;  %v1472_v40 = vld [vmem:[#allocation2 + $0x6c] sm:$0xe] }
  0xdd   : > { %v1886_v33 = vpop.permute.xlu0 %1885  ;;  %v3224_v51 = vrot.slane %v3223_v23, 4  ;;  %3803 = vrot.lane.b32.xlu0 %v4550_v62, %s4844_s15  ;;  %v1168_v54 = vshll.u32 %v924_v24, 16  ;;  %v1174_v59 = vshll.u32 %v925_v31, 16  ;;  %v1158_v60 = vrot.slane %v1157_v39, 4  ;;  %v1471_v58 = vld [vmem:[#allocation2 + $0x68] sm:$0x1] }
  0xde   : > { %1932 = vst.msk [vmem:[#allocation3 + $0x10] sm:$0xff] %vm1929_vm2, %v1886_v33  ;;  %v1711_v46 = vpop.permute.xlu1 %1710  ;;  %v3686_v61 = vsel %vm4994_vm9, %v3684_v47, %v3685_v36  ;;  %v1178_v1 = vshrl.u32 %v925_v31, 16  ;;  %v1184_v2 = vshll.u32 %v926_v35, 16  ;;  %v1167_v53 = vrot.slane %v1165_v52, 4  ;;  %v1473_v30 = vld [vmem:[#allocation2 + $0x70] sm:$0xf] }
  0xdf   : > { %1756 = vst.msk [vmem:[#allocation3 + $0x18] sm:$0xff] %vm1752_vm1, %v1711_v46  ;;  %v3229_v5 = vsel %vm5001_vm10, %v3224_v51, %v3228_v0  ;;  %v4551_v62 = vcombine.low %v3683_v42, %v3686_v61  ;;  %v1170_v8 = vrot.slane %v1168_v54, 5  ;;  %v1163_v11 = vsel %vm5001_vm10, %v1158_v60, %v1162_v56  ;;  %v1474_v13 = vld [vmem:[#allocation2 + $0x74] sm:$0x1]  ;;  %v298_v33 = vld [vmem:[%s4988_s9 + $0x4c] sm:$0xf] }
  0xe0   : > { %v4519_v10 = vcombine.low %v3219_v38, %v3229_v5  ;;  %v1176_v18 = vrot.slane %v1174_v59, 5  ;;  %v1180_v12 = vrot.slane %v1178_v1, 4  ;;  %888 = vst.msk [vmem:[#allocation3 + $0x38] sm:$0xff] %vm880_vm14, %v4759_v4  ;;  %v4392_v63 = vcombine.low %v1153_v34, %v1163_v11  ;;  %v703_v38 = vld [vmem:[#allocation2 + $0x78] sm:$0xf] }
  0xe1   : > { %3805 = vrot.lane.b32.xlu0 %v4551_v62, %s4844_s15  ;;  %v1171_v16 = vor.u32 %v1170_v8, %v1167_v53  ;;  %v1186_v17 = vrot.slane %v1184_v2, 5  ;;  %v4408_v20 = vrot.slane %v1469_v48, 9  ;;  %v1602_v24 = vrot.slane %v1470_v3, 5  ;;  %v1970_v2 = vld [vmem:[#allocation2 + $0x6c] sm:$0xf] }
  0xe2   : > { %v1888_v14 = vpop.permute.xlu1 %1887  ;;  %v2431_v15 = vpop.permute.xlu0 %2430  ;;  %3484 = vrot.lane.b32.xlu1 %v4519_v10, %s4846_s17  ;;  %v1181_v21 = vor.u32 %v1180_v12, %v1176_v18  ;;  %v1605_v27 = vrot.slane %v1471_v58, 5  ;;  %v4409_v0 = vrot.slane %v1472_v40, 9  ;;  %v1609_v28 = vrot.slane %v1473_v30, 5  ;;  %v1971_v3 = vld [vmem:[#allocation2 + $0x70] sm:$0xf] }
  0xe3   : > { %1933 = vst.msk [vmem:[#allocation3 + $0x18] sm:$0xff] %vm1929_vm2, %v1888_v14  ;;  %v1172_v49 = vrot.slane %v1171_v16, 4  ;;  %v1612_v31 = vrot.slane %v1474_v13, 5  ;;  %v468_v23 = vshrl.u32 %v297_v26, 16  ;;  %v1603_v34 = vsel %vm4994_vm9, %v4408_v20, %v1602_v24  ;;  %v1972_v53 = vld [vmem:[#allocation2 + $0x74] sm:$0x1] }
  0xe4   : > { %v1182_v56 = vrot.slane %v1181_v21, 4  ;;  %v1604_v36 = vrot.slane %v1602_v24, 4  ;;  %v471_v35 = vshll.u32 %v297_v26, 16  ;;  %v5482_v47 = vsel %vm4994_vm9, %v4409_v0, %v1609_v28  ;;  %v707_v26 = vld [vmem:[#allocation2 + $0x80] sm:$0x1]  ;;  %v4740_v58 = vld [vmem:[#allocation2 + $0x6c] sm:$0xff]  }
  0xe5   : > { %v1177_v42 = vsel %vm5001_vm10, %v1172_v49, %v1176_v18  ;;  %v1611_v48 = vrot.slane %v1609_v28, 4  ;;  %v470_v46 = vrot.slane %v468_v23, 7  ;;  %v476_v52 = vshrl.u32 %v298_v33, 16  ;;  %v5500_v10 = vld [vmem:[%s4988_s9 + $0x50] sm:$0xf] }
  0xe6   : > { %v2752_v39 = vpop.permute.xlu0 %2751  ;;  %1396 = vrot.lane.b32.xlu1 %v4392_v63, %s4840_s11  ;;  %v1187_v50 = vsel %vm5001_vm10, %v1182_v56, %v1186_v17  ;;  %v1606_v51 = vsel %vm4994_vm9, %v1604_v36, %v1605_v27  ;;  %v479_v54 = vshll.u32 %v298_v33, 16  ;;  %vm2474_vm3 = vcmask 162944   ;;  %v5509_v30 = vld [vmem:[%s4988_s9 + $0x54] sm:$0xf]  ;;  %v710_v36 = vld [vmem:[#allocation2 + $0x84] sm:$0xf] }
  0xe7   : > { %v4393_v59 = vcombine.low %v1177_v42, %v1187_v50  ;;  %v4424_v60 = vcombine.low %v1603_v34, %v1606_v51  ;;  %v1613_v61 = vsel %vm4994_vm9, %v1611_v48, %v1612_v31  ;;  %v473_v1 = vor.u32 %v471_v35, %v470_v46  ;;  %2476 = vst.msk [vmem:[#allocation3 + $0x8] sm:$0xff] %vm2474_vm3, %v5388_v7  ;;  %v2515_v7 = vld [vmem:[#allocation2 + $0x6c] sm:$0xe]  ;;  %v2517_v17 = vld [vmem:[#allocation2 + $0x74] sm:$0x1] }
  0xe8   : > { %v4425_v4 = vcombine.low %v5482_v47, %v1613_v61  ;;  %v474_v5 = vrot.slane %v470_v46, 4  ;;  %v478_v62 = vrot.slane %v476_v52, 7  ;;  %vm2795_vm4 = vcmask 195744   ;;  %2475 = vst.msk [vmem:[#allocation3] sm:$0xff] %vm2474_vm3, %v5419_v9  ;;  %2477 = vst.msk [vmem:[#allocation3 + $0x10] sm:$0xff] %vm2474_vm3, %v2431_v15 }
  0xe9   : > { %1720 = vrot.lane.b32.xlu0 %v4424_v60, %s4839_s10  ;;  %v704_v40 = vsel %vm5009_vm11, %v473_v1, %v703_v38  ;;  %vm2973_vm5 = vcmask 228544   ;;  %vm3518_vm6 = vcmask 261344   ;;  %vm6166_vm7 = vcmask 294144   ;;  %2797 = vst.msk [vmem:[#allocation3 + $0x8] sm:$0xff] %vm2795_vm4, %v5360_v44  ;;  %2796 = vst.msk [vmem:[#allocation3] sm:$0xff] %vm2795_vm4, %v5329_v32 }
  0xea   : > { %v2930_v8 = vpop.permute.xlu0 %2929  ;;  %1398 = vrot.lane.b32.xlu1 %v4393_v59, %s4840_s11  ;;  %v481_v11 = vor.u32 %v479_v54, %v478_v62  ;;  %v483_v18 = vrot.slane %v478_v62, 4  ;;  %705 = vst [vmem:[#allocation2 + $0x78] sm:$0xf] %v704_v40  ;;  %v2187_v12 = vshrl.u32 %v1970_v2, 16  ;;  %2798 = vst.msk [vmem:[#allocation3 + $0x10] sm:$0xff] %vm2795_vm4, %v2752_v39  ;;  %v2190_v13 = vshll.u32 %v1970_v2, 16 }
  0xeb   : > { %2975 = vst.msk [vmem:[#allocation3 + $0x8] sm:$0xff] %vm2973_vm5, %v5327_v25  ;;  %v2196_v14 = vshll.u32 %v1971_v3, 16  ;;  %v2200_v15 = vshrl.u32 %v1971_v3, 16  ;;  %v2206_v63 = vshll.u32 %v1972_v53, 16  ;;  %2974 = vst.msk [vmem:[#allocation3] sm:$0xff] %vm2973_vm5, %v5317_v6  ;;  %v4472_v24 = vrot.slane %v2515_v7, 9 }
  0xec   : > { %v2516_v44 = vld [vmem:[#allocation2 + $0x70] sm:$0xf]  ;;  %2976 = vst.msk [vmem:[#allocation3 + $0x10] sm:$0xff] %vm2973_vm5, %v2930_v8  ;;  %v482_v32 = vsel %vm5017_vm12, %v474_v5, %v481_v11  ;;  %v2189_v16 = vrot.slane %v2187_v12, 4  ;;  %v708_v25 = vsel %vm5032_vm13, %v483_v18, %v707_v26  ;;  %v485_v0 = vshrl.u32 %v5500_v10, 16 }
  0xed   : > { %v2433_v9 = vpop.permute.xlu1 %2432  ;;  %3520 = vst.msk [vmem:[#allocation3 + $0x8] sm:$0xff] %vm3518_vm6, %v5402_v43  ;;  %3519 = vst.msk [vmem:[#allocation3] sm:$0xff] %vm3518_vm6, %v5436_v22  ;;  %v5529_v6 = vld [vmem:[%s6161_s1 + $0x10] ss:$0 sps:$4 sm:$0x33]   ;;  %1897 = vrot.lane.b32.xlu0 %v4740_v58, %s4841_s12  ;;  %v2192_v43 = vrot.slane %v2190_v13, 5 }
  0xee   : > { %2478 = vst.msk [vmem:[#allocation3 + $0x18] sm:$0xff] %vm2474_vm3, %v2433_v9  ;;  %v2198_v20 = vrot.slane %v2196_v14, 5  ;;  %v2202_v21 = vrot.slane %v2200_v15, 4  ;;  %709 = vst [vmem:[#allocation2 + $0x80] sm:$0x1] %v708_v25  ;;  %1722 = vrot.lane.b32.xlu1 %v4425_v4, %s4839_s10  ;;  %v2208_v22 = vrot.slane %v2206_v63, 5 }
  0xef   : > { %706 = vst.msk [vmem:[#allocation2 + $0x7c] sm:$0xf] %vm223_vm0, %v482_v32  ;;  %v2645_v27 = vrot.slane %v2516_v44, 5  ;;  %v488_v49 = vshll.u32 %v5500_v10, 16  ;;  %v2193_v31 = vor.u32 %v2192_v43, %v2189_v16  ;;  %v493_v23 = vshrl.u32 %v5509_v30, 16 }
  0xf0   : > { %3841 = vst.msk [vmem:[#allocation3 + $0x8] sm:$0xff] %vm6166_vm7, %v5362_v45  ;;  %3840 = vst.msk [vmem:[#allocation3] sm:$0xff] %vm6166_vm7, %v5341_v57  ;;  %v2203_v33 = vor.u32 %v2202_v21, %v2198_v20  ;;  %v2648_v45 = vrot.slane %v2517_v17, 5  ;;  %v5542_v34 = vrot.slane %v485_v0, 7  ;;  %v496_v57 = vshll.u32 %v5509_v30, 16 }
  0xf1   : > { %v2754_v28 = vpop.permute.xlu1 %2753  ;;  %v2647_v56 = vrot.slane %v2645_v27, 4  ;;  %vm3948_vm8 = vcmask 1041408   ;;  %v2194_v35 = vrot.slane %v2193_v31, 4  ;;  %v1973_v39 = vld [vmem:[#allocation2 + $0x78] sm:$0xf]  ;;  %v2646_v59 = vsel %vm4994_vm9, %v4472_v24, %v2645_v27 }
  0xf2   : > { %2799 = vst.msk [vmem:[#allocation3 + $0x18] sm:$0xff] %vm2795_vm4, %v2754_v28  ;;  %v2204_v38 = vrot.slane %v2203_v33, 4  ;;  %4670 = vmatprep.subr.msk.bf16.mxu0 %vm3948_vm8, %v5529_v6  ;;  %v3475_v42 = vpop.permute.xlu0 %3474  ;;  %4671 = vmatprep.subr.msk.bf16.mxu1 %vm3948_vm8, %v5529_v6  ;;  %v2211_v47 = vshrl.u32 %v1973_v39, 16  ;;  %v2214_v48 = vshll.u32 %v1973_v39, 16  ;;  %v2518_v46 = vld [vmem:[#allocation2 + $0x78] sm:$0xe]  ;;  %v490_v50 = vor.u32 %v488_v49, %v5542_v34 }
  0xf3   : > { %3521 = vst.msk [vmem:[#allocation3 + $0x10] sm:$0xff] %vm3518_vm6, %v3475_v42  ;;  %v2199_v52 = vsel %vm5001_vm10, %v2194_v35, %v2198_v20  ;;  %v2649_v60 = vsel %vm4994_vm9, %v2647_v56, %v2648_v45  ;;  %v3014_v61 = vld [vmem:[#allocation2 + $0x78] sm:$0xf]  ;;  %v4473_v58 = vrot.slane %v2518_v46, 9  ;;  %v491_v7 = vrot.slane %v5542_v34, 4 }
  0xf4   : > { %v2209_v54 = vsel %vm5001_vm10, %v2204_v38, %v2208_v22  ;;  %v2213_v26 = vrot.slane %v2211_v47, 4  ;;  %v711_v4 = vsel %vm5009_vm11, %v490_v50, %v710_v36  ;;  %v2216_v62 = vrot.slane %v2214_v48, 5  ;;  %v714_v21 = vld [vmem:[#allocation2 + $0x8c] sm:$0x1]  ;;  %v3559_v34 = vld [vmem:[#allocation2 + $0x78] sm:$0xe] }
  0xf5   : > { %v2932_v51 = vpop.permute.xlu1 %2931  ;;  %v4456_v2 = vcombine.low %v2199_v52, %v2209_v54  ;;  %v1975_v5 = vld [vmem:[#allocation2 + $0x80] sm:$0x1]  ;;  %712 = vst [vmem:[#allocation2 + $0x84] sm:$0xf] %v711_v4  ;;  %v4488_v11 = vcombine.low %v2646_v59, %v2649_v60  ;;  %v495_v44 = vrot.slane %v493_v23, 7  ;;  %v3231_v16 = vshrl.u32 %v3014_v61, 16 }
  0xf6   : > { %2977 = vst.msk [vmem:[#allocation3 + $0x18] sm:$0xff] %vm2973_vm5, %v2932_v51  ;;  %v4741_v1 = vld [vmem:[#allocation2 + $0x78] sm:$0xff]   ;;  %v3796_v40 = vpop.permute.xlu0 %3795  ;;  %v2230_v10 = vshll.u32 %v1975_v5, 16  ;;  %v2520_v12 = vld [vmem:[#allocation2 + $0x80] sm:$0x1]  ;;  %v2217_v30 = vor.u32 %v2216_v62, %v2213_v26  ;;  %v3234_v28 = vshll.u32 %v3014_v61, 16 }
  0xf7   : > { %v1974_v3 = vld [vmem:[#allocation2 + $0x7c] sm:$0xf]  ;;  %1899 = vrot.lane.b32.xlu1 %v4741_v1, %s4841_s12  ;;  %2442 = vrot.lane.b32.xlu0 %v4456_v2, %s4845_s16  ;;  %3842 = vst.msk [vmem:[#allocation3 + $0x10] sm:$0xff] %vm6166_vm7, %v3796_v40  ;;  %v2655_v63 = vrot.slane %v2520_v12, 5  ;;  %v498_v22 = vor.u32 %v496_v57, %v495_v44  ;;  %v500_v27 = vrot.slane %v495_v44, 4  ;;  %v3233_v49 = vrot.slane %v3231_v16, 4 }
  0xf8   : > { %v2220_v53 = vshll.u32 %v1974_v3, 16  ;;  %v2224_v8 = vshrl.u32 %v1974_v3, 16  ;;  %v2519_v18 = vld [vmem:[#allocation2 + $0x7c] sm:$0xf]  ;;  %v2232_v15 = vrot.slane %v2230_v10, 5  ;;  %v2218_v25 = vrot.slane %v2217_v30, 4 }
  0xf9   : > { %v2652_v14 = vrot.slane %v2519_v18, 5  ;;  %v3015_v32 = vld [vmem:[#allocation2 + $0x7c] sm:$0xf]  ;;  %v3016_v0 = vld [vmem:[#allocation2 + $0x80] sm:$0x1]  ;;  %v499_v57 = vsel %vm5017_vm12, %v491_v7, %v498_v22  ;;  %v3236_v38 = vrot.slane %v3234_v28, 5  ;;  %v715_v50 = vsel %vm5032_vm13, %v500_v27, %v714_v21 }
  0xfa   : > { %v2222_v9 = vrot.slane %v2220_v53, 5  ;;  %v2226_v13 = vrot.slane %v2224_v8, 4  ;;  %v4746_v24 = vld [vmem:[#allocation2 + $0x78] sm:$0xff]   ;;  %v3240_v56 = vshll.u32 %v3015_v32, 16  ;;  %v3244_v39 = vshrl.u32 %v3015_v32, 16  ;;  %v3857_v30 = vld [vmem:[#allocation3 + $0x8] sm:$0xff] }
  0xfb   : > { %v5568_v43 = vsel %vm4994_vm9, %v4473_v58, %v2652_v14  ;;  %v2654_v20 = vrot.slane %v2652_v14, 4  ;;  %2763 = vrot.lane.b32.xlu0 %v4488_v11, %s4843_s14  ;;  %713 = vst.msk [vmem:[#allocation2 + $0x88] sm:$0xf] %vm223_vm0, %v499_v57  ;;  %v3250_v46 = vshll.u32 %v3016_v0, 16  ;;  %v3560_v51 = vld [vmem:[#allocation2 + $0x7c] sm:$0xf]  ;;  %v3237_v54 = vor.u32 %v3236_v38, %v3233_v49 }
  0xfc   : > { %v2227_v17 = vor.u32 %v2226_v13, %v2222_v9  ;;  %v3477_v31 = vpop.permute.xlu1 %3476  ;;  %v2223_v33 = vsel %vm5001_vm10, %v2218_v25, %v2222_v9  ;;  %v3798_v36 = vpop.permute.xlu0 %3797  ;;  %v3017_v42 = vld [vmem:[#allocation2 + $0x84] sm:$0xf]  ;;  %v3242_v48 = vrot.slane %v3240_v56, 5  ;;  %v3246_v59 = vrot.slane %v3244_v39, 4  ;;  %716 = vst [vmem:[#allocation2 + $0x8c] sm:$0x1] %v715_v50 }
  0xfd   : > { %v2656_v23 = vsel %vm4994_vm9, %v2654_v20, %v2655_v63  ;;  %3522 = vst.msk [vmem:[#allocation3 + $0x18] sm:$0xff] %vm3518_vm6, %v3477_v31  ;;  %v3255_v60 = vshrl.u32 %v3017_v42, 16  ;;  %v3561_v61 = vld [vmem:[#allocation2 + $0x80] sm:$0x1]  ;;  %v927_v1 = vld [vmem:[#allocation2 + $0x78] sm:$0xf] }
  0xfe   : > { %v2228_v45 = vrot.slane %v2227_v17, 4  ;;  %v4489_v35 = vcombine.low %v5568_v43, %v2656_v23  ;;  %3843 = vst.msk [vmem:[#allocation3 + $0x18] sm:$0xff] %vm6166_vm7, %v3798_v36  ;;  %v3252_v3 = vrot.slane %v3250_v46, 5  ;;  %v3258_v26 = vshll.u32 %v3017_v42, 16  ;;  %v3856_v62 = vld [vmem:[#allocation3] sm:$0xff]  ;;  %v4764_v38 = vld [vmem:[#allocation2 + $0x60] sm:$0xff]  }
  0xff   : > { %2941 = vrot.lane.b32.xlu0 %v4746_v24, %s4842_s13  ;;  %v3950_v4 = vsel %vm3948_vm8, %v5529_v6, 0  ;;  %v4536_v5 = vrot.slane %v3559_v34, 9  ;;  %v3238_v53 = vrot.slane %v3237_v54, 4  ;;  %v3247_v8 = vor.u32 %v3246_v59, %v3242_v48  ;;  %v928_v10 = vld [vmem:[#allocation2 + $0x7c] sm:$0xf]  ;;  %v3858_v6 = vld [vmem:[#allocation3 + $0x10] sm:$0xff] }
 0x100   : > { %v2233_v47 = vsel %vm5001_vm10, %v2228_v45, %v2232_v15  ;;  %v1389_v2 = vpop.permute.xlu1 %1388  ;;  %v3257_v58 = vrot.slane %v3255_v60, 4  ;;  %4614 = vmatpush3.bf16.msra.mxu0 %v3950_v4  ;;  %v3689_v40 = vrot.slane %v3560_v51, 5  ;;  %v3260_v18 = vrot.slane %v3258_v26, 5  ;;  %4669 = vmatpush3.bf16.msra.mxu1 %v3950_v4  ;;  %v929_v63 = vld [vmem:[#allocation2 + $0x80] sm:$0x1]  ;;  %889 = vst.msk [vmem:[#allocation3 + $0x40] sm:$0xff] %vm880_vm14, %v4764_v38 }
 0x101   : > { %v4457_v52 = vcombine.low %v2223_v33, %v2233_v47  ;;  %1433 = vst.msk [vmem:[#allocation3 + $0x20] sm:$0xff] %vm1428_vm15, %v1389_v2  ;;  %v1713_v11 = vpop.permute.xlu0 %1712  ;;  %v3692_v12 = vrot.slane %v3561_v61, 5  ;;  %vm3899_vm7 = vcmask 293888   ;;  %v1189_v7 = vshrl.u32 %v927_v1, 16  ;;  %v3562_v43 = vld [vmem:[#allocation2 + $0x84] sm:$0xe] }
 0x102   : > { %1757 = vst.msk [vmem:[#allocation3 + $0x20] sm:$0xff] %vm1752_vm1, %v1713_v11  ;;  %v3243_v9 = vsel %vm5001_vm10, %v3238_v53, %v3242_v48  ;;  %v3248_v13 = vrot.slane %v3247_v8, 4  ;;  %v3690_v14 = vsel %vm4994_vm9, %v4536_v5, %v3689_v40  ;;  %v3691_v15 = vrot.slane %v3689_v40, 4  ;;  %4615 = vmatprep.mubr.msk.bf16.mxu0 %vm3899_vm7, %v3856_v62  ;;  %v4748_v20 = vld [vmem:[#allocation2 + $0x84] sm:$0xff]   ;;  %v1475_v8 = vld [vmem:[#allocation2 + $0x78] sm:$0xe] }
 0x103   : > { %2444 = vrot.lane.b32.xlu1 %v4457_v52, %s4845_s16  ;;  %v3261_v32 = vor.u32 %v3260_v18, %v3257_v58  ;;  %v1191_v16 = vrot.slane %v1189_v7, 4  ;;  %v1192_v25 = vshll.u32 %v927_v1, 16  ;;  %v1198_v17 = vshll.u32 %v928_v10, 16  ;;  %4616 = vmatmul.mubr.msk.bf16.vlgmr.msra.gmra.mrb[0].mxu0 %vm3899_vm7, %v3857_v30  ;;  %v3018_v24 = vld [vmem:[#allocation2 + $0x88] sm:$0xf]  ;;  %v4765_v40 = vld [vmem:[#allocation2 + $0x6c] sm:$0xff]  }
 0x104   : > { %v1391_v44 = vpop.permute.xlu1 %1390  ;;  %v3253_v21 = vsel %vm5001_vm10, %v3248_v13, %v3252_v3  ;;  %v3693_v22 = vsel %vm4994_vm9, %v3691_v15, %v3692_v12  ;;  %v1202_v27 = vshrl.u32 %v928_v10, 16  ;;  %4619 = vmatprep.mubr.msk.bf16.mxu0 %vm3899_vm7, %v3858_v6  ;;  %v3019_v28 = vld [vmem:[#allocation2 + $0x8c] sm:$0x1]  ;;  %v3264_v33 = vshll.u32 %v3018_v24, 16  ;;  %v930_v59 = vld [vmem:[#allocation2 + $0x84] sm:$0xf] }
 0x105   : > { %1434 = vst.msk [vmem:[#allocation3 + $0x28] sm:$0xff] %vm1428_vm15, %v1391_v44  ;;  %v1890_v0 = vpop.permute.xlu0 %1889  ;;  %v4520_v49 = vcombine.low %v3243_v9, %v3253_v21  ;;  %v3262_v31 = vrot.slane %v3261_v32, 4  ;;  %v3268_v45 = vshrl.u32 %v3018_v24, 16  ;;  %v3274_v23 = vshll.u32 %v3019_v28, 16  ;;  %v3564_v46 = vld [vmem:[#allocation2 + $0x8c] sm:$0x1] }
 0x106   : > { %1934 = vst.msk [vmem:[#allocation3 + $0x20] sm:$0xff] %vm1929_vm2, %v1890_v0  ;;  %v4552_v56 = vcombine.low %v3690_v14, %v3693_v22  ;;  %v1194_v34 = vrot.slane %v1192_v25, 5  ;;  %v1200_v36 = vrot.slane %v1198_v17, 5  ;;  %v3266_v39 = vrot.slane %v3264_v33, 5  ;;  %v3859_v60 = vld [vmem:[#allocation3 + $0x18] sm:$0xff] }
 0x107   : > { %2765 = vrot.lane.b32.xlu1 %v4489_v35, %s4843_s14  ;;  %v3563_v35 = vld [vmem:[#allocation2 + $0x88] sm:$0xf]  ;;  %3486 = vrot.lane.b32.xlu0 %v4520_v49, %s4846_s17  ;;  %v3270_v42 = vrot.slane %v3268_v45, 4  ;;  %v1204_v47 = vrot.slane %v1202_v27, 4  ;;  %v1208_v48 = vshll.u32 %v929_v63, 16  ;;  %v3276_v50 = vrot.slane %v3274_v23, 5 }
 0x108   : > { %v1715_v57 = vpop.permute.xlu1 %1714  ;;  %v1195_v51 = vor.u32 %v1194_v34, %v1191_v16  ;;  %v4537_v52 = vrot.slane %v3562_v43, 9  ;;  %v3696_v54 = vrot.slane %v3563_v35, 5  ;;  %v3267_v61 = vsel %vm5001_vm10, %v3262_v31, %v3266_v39  ;;  %v931_v26 = vld [vmem:[#allocation2 + $0x88] sm:$0xf]  ;;  %v1476_v58 = vld [vmem:[#allocation2 + $0x7c] sm:$0xf] }
 0x109   : > { %1758 = vst.msk [vmem:[#allocation3 + $0x28] sm:$0xff] %vm1752_vm1, %v1715_v57  ;;  %v3271_v1 = vor.u32 %v3270_v42, %v3266_v39  ;;  %v1205_v2 = vor.u32 %v1204_v47, %v1200_v36  ;;  %v1210_v3 = vrot.slane %v1208_v48, 5  ;;  %v3699_v53 = vrot.slane %v3564_v46, 5  ;;  %v932_v6 = vld [vmem:[#allocation2 + $0x8c] sm:$0x1] }
 0x10a   : > { %v1196_v4 = vrot.slane %v1195_v51, 4  ;;  %v3697_v5 = vsel %vm4994_vm9, %v4537_v52, %v3696_v54  ;;  %v3698_v62 = vrot.slane %v3696_v54, 4  ;;  %v1213_v18 = vshrl.u32 %v930_v59, 16  ;;  %v1477_v14 = vld [vmem:[#allocation2 + $0x80] sm:$0x1]  ;;  %890 = vst.msk [vmem:[#allocation3 + $0x48] sm:$0xff] %vm880_vm14, %v4765_v40 }
 0x10b   : > { %2943 = vrot.lane.b32.xlu1 %v4748_v20, %s4842_s13  ;;  %v3272_v10 = vrot.slane %v3271_v1, 4  ;;  %3807 = vrot.lane.b32.xlu0 %v4552_v56, %s4844_s15  ;;  %v1206_v11 = vrot.slane %v1205_v2, 4  ;;  %v1216_v12 = vshll.u32 %v930_v59, 16  ;;  %v1222_v9 = vshll.u32 %v931_v26, 16  ;;  %v1478_v16 = vld [vmem:[#allocation2 + $0x84] sm:$0xe] }
 0x10c   : > { %4620 = vmatmul.mubr.msk.bf16.gmra.mrb[4].mxu0 %vm3899_vm7, %v3859_v60  ;;  %v1201_v7 = vsel %vm5001_vm10, %v1196_v4, %v1200_v36  ;;  %v3700_v30 = vsel %vm4994_vm9, %v3698_v62, %v3699_v53  ;;  %v1226_v13 = vshrl.u32 %v931_v26, 16  ;;  %v1215_v32 = vrot.slane %v1213_v18, 4  ;;  %v1479_v25 = vld [vmem:[#allocation2 + $0x88] sm:$0xf]  ;;  %v1480_v31 = vld [vmem:[#allocation2 + $0x8c] sm:$0x1] }
 0x10d   : > { %v3277_v15 = vsel %vm5001_vm10, %v3272_v10, %v3276_v50  ;;  %v1211_v63 = vsel %vm5001_vm10, %v1206_v11, %v1210_v3  ;;  %v4553_v44 = vcombine.low %v3697_v5, %v3700_v30  ;;  %v1218_v24 = vrot.slane %v1216_v12, 5  ;;  %v301_v34 = vld [vmem:[%s4988_s9 + $0x58] sm:$0xf]  ;;  %v302_v39 = vld [vmem:[%s4988_s9 + $0x5c] sm:$0xf]  ;;  %v4750_v12 = vld [vmem:[#allocation2 + $0x84] sm:$0xff]  }
 0x10e   : > { %v1892_v17 = vpop.permute.xlu1 %1891  ;;  %v4521_v20 = vcombine.low %v3267_v61, %v3277_v15  ;;  %v4394_v21 = vcombine.low %v1201_v7, %v1211_v63  ;;  %v1224_v22 = vrot.slane %v1222_v9, 5  ;;  %v1228_v27 = vrot.slane %v1226_v13, 4  ;;  %v1976_v51 = vld [vmem:[#allocation2 + $0x84] sm:$0xf]  ;;  %v1977_v61 = vld [vmem:[#allocation2 + $0x88] sm:$0xf] }
 0x10f   : > { %v2435_v43 = vpop.permute.xlu0 %2434  ;;  %1935 = vst.msk [vmem:[#allocation3 + $0x28] sm:$0xff] %vm1929_vm2, %v1892_v17  ;;  %3809 = vrot.lane.b32.xlu0 %v4553_v44, %s4844_s15  ;;  %v1232_v0 = vshll.u32 %v932_v6, 16  ;;  %v4410_v49 = vrot.slane %v1475_v8, 9  ;;  %v1616_v28 = vrot.slane %v1476_v58, 5  ;;  %v1219_v33 = vor.u32 %v1218_v24, %v1215_v32  ;;  %v717_v4 = vld [vmem:[#allocation2 + $0x90] sm:$0xf] }
 0x110   : > { %2479 = vst.msk [vmem:[#allocation3 + $0x20] sm:$0xff] %vm2474_vm3, %v2435_v43  ;;  %3488 = vrot.lane.b32.xlu1 %v4521_v20, %s4846_s17  ;;  %v1619_v45 = vrot.slane %v1477_v14, 5  ;;  %v4411_v23 = vrot.slane %v1478_v16, 9  ;;  %v1623_v56 = vrot.slane %v1479_v25, 5  ;;  %v1229_v36 = vor.u32 %v1228_v27, %v1224_v22  ;;  %v1978_v5 = vld [vmem:[#allocation2 + $0x8c] sm:$0x1] }
 0x111   : > { %v1234_v35 = vrot.slane %v1232_v0, 5  ;;  %v1617_v57 = vsel %vm4994_vm9, %v4410_v49, %v1616_v28  ;;  %v1618_v38 = vrot.slane %v1616_v28, 4  ;;  %v1220_v47 = vrot.slane %v1219_v33, 4  ;;  %v721_v40 = vld [vmem:[#allocation2 + $0x98] sm:$0x1]  ;;  %v4769_v13 = vld [vmem:[#allocation2 + $0x84] sm:$0xff]  }
 0x112   : > { %v5634_v48 = vsel %vm4994_vm9, %v4411_v23, %v1623_v56  ;;  %v1625_v46 = vrot.slane %v1623_v56, 4  ;;  %v1626_v50 = vrot.slane %v1480_v31, 5  ;;  %v1230_v52 = vrot.slane %v1229_v36, 4  ;;  %v2521_v10 = vld [vmem:[#allocation2 + $0x84] sm:$0xe]  ;;  %v4768_v9 = vld [vmem:[#allocation2 + $0x78] sm:$0xff]  }
 0x113   : > { %v2756_v42 = vpop.permute.xlu0 %2755  ;;  %v1620_v54 = vsel %vm4994_vm9, %v1618_v38, %v1619_v45  ;;  %v502_v59 = vshrl.u32 %v301_v34, 16  ;;  %v505_v60 = vshll.u32 %v301_v34, 16  ;;  %v1225_v1 = vsel %vm5001_vm10, %v1220_v47, %v1224_v22  ;;  %v2522_v32 = vld [vmem:[#allocation2 + $0x88] sm:$0xf]  ;;  %v303_v16 = vld [vmem:[%s4988_s9 + $0x60] sm:$0xf] }
 0x114   : > { %2800 = vst.msk [vmem:[#allocation3 + $0x20] sm:$0xff] %vm2795_vm4, %v2756_v42  ;;  %1400 = vrot.lane.b32.xlu1 %v4394_v21, %s4840_s11  ;;  %v4426_v2 = vcombine.low %v1617_v57, %v1620_v54  ;;  %v1627_v3 = vsel %vm4994_vm9, %v1625_v46, %v1626_v50  ;;  %v510_v26 = vshrl.u32 %v302_v39, 16  ;;  %v1235_v62 = vsel %vm5001_vm10, %v1230_v52, %v1234_v35  ;;  %v2523_v24 = vld [vmem:[#allocation2 + $0x8c] sm:$0x1]  ;;  %v304_v28 = vld [vmem:[%s4988_s9 + $0x64] sm:$0xf] }
 0x115   : > { %v4427_v53 = vcombine.low %v5634_v48, %v1627_v3  ;;  %v504_v8 = vrot.slane %v502_v59, 7  ;;  %v513_v58 = vshll.u32 %v302_v39, 16  ;;  %v4395_v18 = vcombine.low %v1225_v1, %v1235_v62  ;;  %891 = vst.msk [vmem:[#allocation3 + $0x50] sm:$0xff] %vm880_vm14, %v4768_v9  ;;  %892 = vst.msk [vmem:[#allocation3 + $0x58] sm:$0xff] %vm880_vm14, %v4769_v13  ;;  %v5666_v48 = vld [vmem:[%s4988_s9 + $0x68] sm:$0xf] }
 0x116   : > { %1724 = vrot.lane.b32.xlu0 %v4426_v2, %s4839_s10  ;;  %v512_v7 = vrot.slane %v510_v26, 7  ;;  %v2235_v30 = vshrl.u32 %v1976_v51, 16  ;;  %v2238_v6 = vshll.u32 %v1976_v51, 16  ;;  %v2244_v63 = vshll.u32 %v1977_v61, 16  ;;  %v5669_v52 = vld [vmem:[%s4988_s9 + $0x6c] sm:$0xf] }
 0x117   : > { %v2934_v11 = vpop.permute.xlu0 %2933  ;;  %v507_v14 = vor.u32 %v505_v60, %v504_v8  ;;  %v508_v15 = vrot.slane %v504_v8, 4  ;;  %v2248_v44 = vshrl.u32 %v1977_v61, 16  ;;  %v2254_v49 = vshll.u32 %v1978_v5, 16  ;;  %v724_v26 = vld [vmem:[#allocation2 + $0x9c] sm:$0xf] }
 0x118   : > { %2978 = vst.msk [vmem:[#allocation3 + $0x20] sm:$0xff] %vm2973_vm5, %v2934_v11  ;;  %1402 = vrot.lane.b32.xlu1 %v4395_v18, %s4840_s11  ;;  %v515_v17 = vor.u32 %v513_v58, %v512_v7  ;;  %v517_v43 = vrot.slane %v512_v7, 4  ;;  %v2237_v20 = vrot.slane %v2235_v30, 4  ;;  %v2240_v21 = vrot.slane %v2238_v6, 5 }
 0x119   : > { %v718_v22 = vsel %vm5009_vm11, %v507_v14, %v717_v4  ;;  %v2246_v27 = vrot.slane %v2244_v63, 5  ;;  %v2250_v0 = vrot.slane %v2248_v44, 4  ;;  %v4474_v23 = vrot.slane %v2521_v10, 9 }
 0x11a   : > { %v2437_v25 = vpop.permute.xlu1 %2436  ;;  %1901 = vrot.lane.b32.xlu0 %v4750_v12, %s4841_s12  ;;  %v516_v31 = vsel %vm5017_vm12, %v508_v15, %v515_v17  ;;  %719 = vst [vmem:[#allocation2 + $0x90] sm:$0xf] %v718_v22  ;;  %v2241_v33 = vor.u32 %v2240_v21, %v2237_v20  ;;  %v722_v45 = vsel %vm5032_vm13, %v517_v43, %v721_v40  ;;  %v2256_v34 = vrot.slane %v2254_v49, 5 }
 0x11b   : > { %2480 = vst.msk [vmem:[#allocation3 + $0x28] sm:$0xff] %vm2474_vm3, %v2437_v25  ;;  %v2251_v56 = vor.u32 %v2250_v0, %v2246_v27  ;;  %723 = vst [vmem:[#allocation2 + $0x98] sm:$0x1] %v722_v45  ;;  %v2659_v36 = vrot.slane %v2522_v32, 5  ;;  %v2662_v35 = vrot.slane %v2523_v24, 5  ;;  %v519_v39 = vshrl.u32 %v303_v16, 16 }
 0x11c   : > { %720 = vst.msk [vmem:[#allocation2 + $0x94] sm:$0xf] %vm223_vm0, %v516_v31  ;;  %1726 = vrot.lane.b32.xlu1 %v4427_v53, %s4839_s10  ;;  %v2242_v38 = vrot.slane %v2241_v33, 4  ;;  %v522_v42 = vshll.u32 %v303_v16, 16  ;;  %v527_v47 = vshrl.u32 %v304_v28, 16  ;;  %v530_v51 = vshll.u32 %v304_v28, 16 }
 0x11d   : > { %v2252_v46 = vrot.slane %v2251_v56, 4  ;;  %v2661_v50 = vrot.slane %v2659_v36, 4  ;;  %v2660_v59 = vsel %vm4994_vm9, %v4474_v23, %v2659_v36  ;;  %v521_v60 = vrot.slane %v519_v39, 7 }
 0x11e   : > { %v2758_v57 = vpop.permute.xlu1 %2757  ;;  %v2247_v54 = vsel %vm5001_vm10, %v2242_v38, %v2246_v27  ;;  %v5675_v61 = vrot.slane %v527_v47, 7  ;;  %v536_v5 = vshrl.u32 %v5666_v48, 16  ;;  %v539_v62 = vshll.u32 %v5666_v48, 16  ;;  %v728_v38 = vld [vmem:[#allocation2 + $0xa4] sm:$0x1] }
 0x11f   : > { %2801 = vst.msk [vmem:[#allocation3 + $0x28] sm:$0xff] %vm2795_vm4, %v2758_v57  ;;  %v3479_v1 = vpop.permute.xlu0 %3478  ;;  %v2257_v2 = vsel %vm5001_vm10, %v2252_v46, %v2256_v34  ;;  %v2663_v3 = vsel %vm4994_vm9, %v2661_v50, %v2662_v35  ;;  %v524_v8 = vor.u32 %v522_v42, %v521_v60  ;;  %v525_v58 = vrot.slane %v521_v60, 4 }
 0x120   : > { %3523 = vst.msk [vmem:[#allocation3 + $0x20] sm:$0xff] %vm3518_vm6, %v3479_v1  ;;  %v4458_v53 = vcombine.low %v2247_v54, %v2257_v2  ;;  %v544_v40 = vshrl.u32 %v5669_v52, 16  ;;  %v532_v18 = vor.u32 %v530_v51, %v5675_v61  ;;  %v4490_v6 = vcombine.low %v2660_v59, %v2663_v3 }
 0x121   : > { %v1979_v10 = vld [vmem:[#allocation2 + $0x90] sm:$0xf]  ;;  %v725_v9 = vsel %vm5009_vm11, %v524_v8, %v724_v26  ;;  %vm6179_vm8 = vcmask 294144   ;;  %v534_v33 = vrot.slane %v5675_v61, 4 }
 0x122   : > { %v2936_v4 = vpop.permute.xlu1 %2935  ;;  %v2524_v11 = vld [vmem:[#allocation2 + $0x90] sm:$0xe]  ;;  %2446 = vrot.lane.b32.xlu0 %v4458_v53, %s4845_s16  ;;  %v2259_v30 = vshrl.u32 %v1979_v10, 16  ;;  %v1981_v14 = vld [vmem:[#allocation2 + $0x98] sm:$0x1]  ;;  %v2262_v15 = vshll.u32 %v1979_v10, 16  ;;  %v533_v21 = vsel %vm5017_vm12, %v525_v58, %v532_v18 }
 0x123   : > { %2979 = vst.msk [vmem:[#allocation3 + $0x28] sm:$0xff] %vm2973_vm5, %v2936_v4  ;;  %v4751_v12 = vld [vmem:[#allocation2 + $0x90] sm:$0xff]   ;;  %v3800_v13 = vpop.permute.xlu0 %3799  ;;  %v4475_v32 = vrot.slane %v2524_v11, 9  ;;  %726 = vst [vmem:[#allocation2 + $0x9c] sm:$0xf] %v725_v9  ;;  %v2278_v17 = vshll.u32 %v1981_v14, 16 }
 0x124   : > { %v1980_v7 = vld [vmem:[#allocation2 + $0x94] sm:$0xf]  ;;  %3844 = vst.msk [vmem:[#allocation3 + $0x20] sm:$0xff] %vm6179_vm8, %v3800_v13  ;;  %1903 = vrot.lane.b32.xlu1 %v4751_v12, %s4841_s12  ;;  %v2261_v25 = vrot.slane %v2259_v30, 4  ;;  %v2526_v20 = vld [vmem:[#allocation2 + $0x98] sm:$0x1] }
 0x125   : > { %v2268_v63 = vshll.u32 %v1980_v7, 16  ;;  %v2272_v44 = vshrl.u32 %v1980_v7, 16  ;;  %v2525_v43 = vld [vmem:[#allocation2 + $0x94] sm:$0xf]  ;;  %v2264_v24 = vrot.slane %v2262_v15, 5  ;;  %v2280_v49 = vrot.slane %v2278_v17, 5 }
 0x126   : > { %v3481_v16 = vpop.permute.xlu1 %3480  ;;  %v2666_v0 = vrot.slane %v2525_v43, 5  ;;  %727 = vst.msk [vmem:[#allocation2 + $0xa0] sm:$0xf] %vm223_vm0, %v533_v21  ;;  %2767 = vrot.lane.b32.xlu0 %v4490_v6, %s4843_s14  ;;  %v2669_v28 = vrot.slane %v2526_v20, 5  ;;  %v4754_v31 = vld [vmem:[#allocation2 + $0x90] sm:$0xff]   ;;  %v729_v6 = vsel %vm5032_vm13, %v534_v33, %v728_v38 }
 0x127   : > { %3524 = vst.msk [vmem:[#allocation3 + $0x28] sm:$0xff] %vm3518_vm6, %v3481_v16  ;;  %v2270_v22 = vrot.slane %v2268_v63, 5  ;;  %v2274_v27 = vrot.slane %v2272_v44, 4  ;;  %v3802_v45 = vpop.permute.xlu0 %3801  ;;  %v2265_v23 = vor.u32 %v2264_v24, %v2261_v25  ;;  %v3020_v35 = vld [vmem:[#allocation2 + $0x90] sm:$0xf] }
 0x128   : > { %v5700_v34 = vsel %vm4994_vm9, %v4475_v32, %v2666_v0  ;;  %v2668_v36 = vrot.slane %v2666_v0, 4  ;;  %v3021_v57 = vld [vmem:[#allocation2 + $0x94] sm:$0xf]  ;;  %3845 = vst.msk [vmem:[#allocation3 + $0x28] sm:$0xff] %vm6179_vm8, %v3802_v45  ;;  %v3022_v39 = vld [vmem:[#allocation2 + $0x98] sm:$0x1] }
 0x129   : > { %v2275_v56 = vor.u32 %v2274_v27, %v2270_v22  ;;  %v3279_v42 = vshrl.u32 %v3020_v35, 16  ;;  %v3282_v47 = vshll.u32 %v3020_v35, 16  ;;  %v3288_v46 = vshll.u32 %v3021_v57, 16  ;;  %v3565_v61 = vld [vmem:[#allocation2 + $0x90] sm:$0xe] }
 0x12a   : > { %v3292_v50 = vshrl.u32 %v3021_v57, 16  ;;  %v2266_v51 = vrot.slane %v2265_v23, 4  ;;  %v2670_v59 = vsel %vm4994_vm9, %v2668_v36, %v2669_v28  ;;  %v3298_v60 = vshll.u32 %v3022_v39, 16  ;;  %v1393_v1 = vpop.permute.xlu1 %1392  ;;  %2945 = vrot.lane.b32.xlu0 %v4754_v31, %s4842_s13  ;;  %v3023_v18 = vld [vmem:[#allocation2 + $0x9c] sm:$0xf] }
 0x12b   : > { %v2276_v54 = vrot.slane %v2275_v56, 4  ;;  %v4491_v2 = vcombine.low %v5700_v34, %v2670_v59  ;;  %v3281_v3 = vrot.slane %v3279_v42, 4  ;;  %v3284_v26 = vrot.slane %v3282_v47, 5  ;;  %1435 = vst.msk [vmem:[#allocation3 + $0x30] sm:$0xff] %vm1428_vm15, %v1393_v1  ;;  %v3860_v53 = vld [vmem:[#allocation3 + $0x20] sm:$0xff] }
 0x12c   : > { %v3290_v4 = vrot.slane %v3288_v46, 5  ;;  %v2271_v8 = vsel %vm5001_vm10, %v2266_v51, %v2270_v22  ;;  %v3294_v10 = vrot.slane %v3292_v50, 4  ;;  %v3300_v11 = vrot.slane %v3298_v60, 5  ;;  %v3566_v12 = vld [vmem:[#allocation2 + $0x94] sm:$0xf]  ;;  %4623 = vmatprep.mubr.msk.bf16.mxu0 %vm3899_vm7, %v3860_v53 }
 0x12d   : > { %v2281_v58 = vsel %vm5001_vm10, %v2276_v54, %v2280_v49  ;;  %v3285_v30 = vor.u32 %v3284_v26, %v3281_v3  ;;  %v3024_v9 = vld [vmem:[#allocation2 + $0xa0] sm:$0xf]  ;;  %v3303_v13 = vshrl.u32 %v3023_v18, 16  ;;  %730 = vst [vmem:[#allocation2 + $0xa4] sm:$0x1] %v729_v6  ;;  %v3306_v63 = vshll.u32 %v3023_v18, 16 }
 0x12e   : > { %v4459_v7 = vcombine.low %v2271_v8, %v2281_v58  ;;  %v1717_v14 = vpop.permute.xlu0 %1716  ;;  %v3295_v15 = vor.u32 %v3294_v10, %v3290_v4  ;;  %v3312_v44 = vshll.u32 %v3024_v9, 16  ;;  %v3316_v32 = vshrl.u32 %v3024_v9, 16  ;;  %v3567_v16 = vld [vmem:[#allocation2 + $0x98] sm:$0x1]  ;;  %v933_v21 = vld [vmem:[#allocation2 + $0x90] sm:$0xf] }
 0x12f   : > { %1759 = vst.msk [vmem:[#allocation3 + $0x30] sm:$0xff] %vm1752_vm1, %v1717_v14  ;;  %v3286_v25 = vrot.slane %v3285_v30, 4  ;;  %v3305_v17 = vrot.slane %v3303_v13, 4  ;;  %v4538_v43 = vrot.slane %v3565_v61, 9  ;;  %v3703_v20 = vrot.slane %v3566_v12, 5  ;;  %v1395_v24 = vpop.permute.xlu1 %1394  ;;  %v4755_v31 = vld [vmem:[#allocation2 + $0x9c] sm:$0xff]  }
 0x130   : > { %2448 = vrot.lane.b32.xlu1 %v4459_v7, %s4845_s16  ;;  %v3296_v22 = vrot.slane %v3295_v15, 4  ;;  %v3308_v27 = vrot.slane %v3306_v63, 5  ;;  %v5717_v0 = vrot.slane %v3312_v44, 5  ;;  %v3318_v49 = vrot.slane %v3316_v32, 4  ;;  %v934_v28 = vld [vmem:[#allocation2 + $0x94] sm:$0xf] }
 0x131   : > { %1436 = vst.msk [vmem:[#allocation3 + $0x38] sm:$0xff] %vm1428_vm15, %v1395_v24  ;;  %v3291_v33 = vsel %vm5001_vm10, %v3286_v25, %v3290_v4  ;;  %v3704_v45 = vsel %vm4994_vm9, %v4538_v43, %v3703_v20  ;;  %v3705_v23 = vrot.slane %v3703_v20, 4  ;;  %v3706_v56 = vrot.slane %v3567_v16, 5  ;;  %v935_v38 = vld [vmem:[#allocation2 + $0x98] sm:$0x1]  ;;  %v3861_v47 = vld [vmem:[#allocation3 + $0x28] sm:$0xff] }
 0x132   : > { %v1894_v34 = vpop.permute.xlu0 %1893  ;;  %v3301_v36 = vsel %vm5001_vm10, %v3296_v22, %v3300_v11  ;;  %v3309_v35 = vor.u32 %v3308_v27, %v3305_v17  ;;  %v3319_v57 = vor.u32 %v3318_v49, %v5717_v0  ;;  %v1237_v39 = vshrl.u32 %v933_v21, 16  ;;  %v3568_v42 = vld [vmem:[#allocation2 + $0x9c] sm:$0xe]  ;;  %v3569_v59 = vld [vmem:[#allocation2 + $0xa0] sm:$0xf]  ;;  %4624 = vmatmul.mubr.msk.bf16.gmra.mrb[8].mxu0 %vm3899_vm7, %v3861_v47  ;;  %v4770_v8 = vld [vmem:[#allocation2 + $0x90] sm:$0xff]  }
 0x133   : > { %1936 = vst.msk [vmem:[#allocation3 + $0x30] sm:$0xff] %vm1929_vm2, %v1894_v34  ;;  %v4522_v46 = vcombine.low %v3291_v33, %v3301_v36  ;;  %v3707_v50 = vsel %vm4994_vm9, %v3705_v23, %v3706_v56  ;;  %v1240_v51 = vshll.u32 %v933_v21, 16  ;;  %v1246_v54 = vshll.u32 %v934_v28, 16  ;;  %v936_v60 = vld [vmem:[#allocation2 + $0x9c] sm:$0xf]  ;;  %v1719_v61 = vpop.permute.xlu1 %1718 }
 0x134   : > { %2769 = vrot.lane.b32.xlu1 %v4491_v2, %s4843_s14  ;;  %v3310_v1 = vrot.slane %v3309_v35, 4  ;;  %v3320_v3 = vrot.slane %v3319_v57, 4  ;;  %v4554_v26 = vcombine.low %v3704_v45, %v3707_v50  ;;  %v1239_v4 = vrot.slane %v1237_v39, 4  ;;  %v937_v53 = vld [vmem:[#allocation2 + $0xa0] sm:$0xf]  ;;  %1760 = vst.msk [vmem:[#allocation3 + $0x38] sm:$0xff] %vm1752_vm1, %v1719_v61 }
 0x135   : > { %3490 = vrot.lane.b32.xlu0 %v4522_v46, %s4846_s17  ;;  %v3025_v2 = vld [vmem:[#allocation2 + $0xa4] sm:$0x1]  ;;  %v1242_v58 = vrot.slane %v1240_v51, 5  ;;  %v1248_v10 = vrot.slane %v1246_v54, 5  ;;  %v1250_v11 = vshrl.u32 %v934_v28, 16  ;;  %v1256_v18 = vshll.u32 %v935_v38, 16 }
 0x136   : > { %v3315_v12 = vsel %vm5001_vm10, %v3310_v1, %v5717_v0  ;;  %v3322_v7 = vshll.u32 %v3025_v2, 16  ;;  %v3570_v30 = vld [vmem:[#allocation2 + $0xa4] sm:$0x1]  ;;  %v4539_v6 = vrot.slane %v3568_v42, 9  ;;  %v3710_v9 = vrot.slane %v3569_v59, 5  ;;  %893 = vst.msk [vmem:[#allocation3 + $0x60] sm:$0xff] %vm880_vm14, %v4770_v8 }
 0x137   : > { %v4771_v13 = vld [vmem:[#allocation2 + $0x9c] sm:$0xff]   ;;  %v1243_v14 = vor.u32 %v1242_v58, %v1239_v4  ;;  %v1252_v15 = vrot.slane %v1250_v11, 4  ;;  %v1258_v63 = vrot.slane %v1256_v18, 5  ;;  %v3713_v44 = vrot.slane %v3570_v30, 5  ;;  %v1481_v43 = vld [vmem:[#allocation2 + $0x90] sm:$0xe] }
 0x138   : > { %2947 = vrot.lane.b32.xlu1 %v4755_v31, %s4842_s13  ;;  %v3324_v32 = vrot.slane %v3322_v7, 5  ;;  %v3711_v16 = vsel %vm4994_vm9, %v4539_v6, %v3710_v9  ;;  %v3712_v25 = vrot.slane %v3710_v9, 4  ;;  %v1261_v17 = vshrl.u32 %v936_v60, 16  ;;  %v1482_v20 = vld [vmem:[#allocation2 + $0x94] sm:$0xf]  ;;  %894 = vst.msk [vmem:[#allocation3 + $0x68] sm:$0xff] %vm880_vm14, %v4771_v13 }
 0x139   : > { %3811 = vrot.lane.b32.xlu0 %v4554_v26, %s4844_s15  ;;  %v1244_v21 = vrot.slane %v1243_v14, 4  ;;  %v1253_v24 = vor.u32 %v1252_v15, %v1248_v10  ;;  %v938_v22 = vld [vmem:[#allocation2 + $0xa4] sm:$0x1]  ;;  %v1264_v27 = vshll.u32 %v936_v60, 16  ;;  %v1270_v0 = vshll.u32 %v937_v53, 16 }
 0x13a   : > { %v3325_v49 = vsel %vm5001_vm10, %v3320_v3, %v3324_v32  ;;  %v3714_v28 = vsel %vm4994_vm9, %v3712_v25, %v3713_v44  ;;  %v1263_v31 = vrot.slane %v1261_v17, 4  ;;  %v1274_v33 = vshrl.u32 %v937_v53, 16  ;;  %v1483_v45 = vld [vmem:[#allocation2 + $0x98] sm:$0x1]  ;;  %v1484_v23 = vld [vmem:[#allocation2 + $0x9c] sm:$0xe]  ;;  %v1896_v56 = vpop.permute.xlu1 %1895  ;;  %v2439_v34 = vpop.permute.xlu0 %2438 }
 0x13b   : > { %v4523_v36 = vcombine.low %v3315_v12, %v3325_v49  ;;  %v1249_v35 = vsel %vm5001_vm10, %v1244_v21, %v1248_v10  ;;  %v1254_v57 = vrot.slane %v1253_v24, 4  ;;  %v4555_v38 = vcombine.low %v3711_v16, %v3714_v28  ;;  %1937 = vst.msk [vmem:[#allocation3 + $0x38] sm:$0xff] %vm1929_vm2, %v1896_v56  ;;  %v1485_v50 = vld [vmem:[#allocation2 + $0xa0] sm:$0xf]  ;;  %v1486_v61 = vld [vmem:[#allocation2 + $0xa4] sm:$0x1] }
 0x13c   : > { %2481 = vst.msk [vmem:[#allocation3 + $0x30] sm:$0xff] %vm2474_vm3, %v2439_v34  ;;  %v1266_v39 = vrot.slane %v1264_v27, 5  ;;  %v1272_v42 = vrot.slane %v1270_v0, 5  ;;  %v1276_v47 = vrot.slane %v1274_v33, 4  ;;  %v1280_v46 = vshll.u32 %v938_v22, 16  ;;  %v4756_v49 = vld [vmem:[#allocation2 + $0x9c] sm:$0xff]  }
 0x13d   : > { %3492 = vrot.lane.b32.xlu1 %v4523_v36, %s4846_s17  ;;  %v1259_v51 = vsel %vm5001_vm10, %v1254_v57, %v1258_v63  ;;  %3813 = vrot.lane.b32.xlu0 %v4555_v38, %s4844_s15  ;;  %v4412_v54 = vrot.slane %v1481_v43, 9  ;;  %v1630_v59 = vrot.slane %v1482_v20, 5  ;;  %v1633_v60 = vrot.slane %v1483_v45, 5  ;;  %v731_v11 = vld [vmem:[#allocation2 + $0xa8] sm:$0xf] }
 0x13e   : > { %v4396_v1 = vcombine.low %v1249_v35, %v1259_v51  ;;  %v1267_v3 = vor.u32 %v1266_v39, %v1263_v31  ;;  %v1277_v26 = vor.u32 %v1276_v47, %v1272_v42  ;;  %v1282_v4 = vrot.slane %v1280_v46, 5  ;;  %v2760_v53 = vpop.permute.xlu0 %2759  ;;  %v1982_v6 = vld [vmem:[#allocation2 + $0x9c] sm:$0xf]  ;;  %v735_v63 = vld [vmem:[#allocation2 + $0xb0] sm:$0x1] }
 0x13f   : > { %v1631_v8 = vsel %vm4994_vm9, %v4412_v54, %v1630_v59  ;;  %v1632_v2 = vrot.slane %v1630_v59, 4  ;;  %v4413_v58 = vrot.slane %v1484_v23, 9  ;;  %v1637_v10 = vrot.slane %v1485_v50, 5  ;;  %2802 = vst.msk [vmem:[#allocation3 + $0x30] sm:$0xff] %vm2795_vm4, %v2760_v53  ;;  %v1983_v25 = vld [vmem:[#allocation2 + $0xa0] sm:$0xf] }
 0x140   : > { %v1268_v18 = vrot.slane %v1267_v3, 4  ;;  %v1278_v12 = vrot.slane %v1277_v26, 4  ;;  %v1640_v7 = vrot.slane %v1486_v61, 5  ;;  %v538_v30 = vrot.slane %v536_v5, 7  ;;  %v1984_v24 = vld [vmem:[#allocation2 + $0xa4] sm:$0x1] }
 0x141   : > { %1404 = vrot.lane.b32.xlu1 %v4396_v1, %s4840_s11  ;;  %v1634_v9 = vsel %vm4994_vm9, %v1632_v2, %v1633_v60  ;;  %v1638_v13 = vsel %vm4994_vm9, %v4413_v58, %v1637_v10  ;;  %v1639_v14 = vrot.slane %v1637_v10, 4  ;;  %v546_v15 = vrot.slane %v544_v40, 7  ;;  %v2527_v22 = vld [vmem:[#allocation2 + $0x9c] sm:$0xe]  ;;  %v307_v27 = vld [vmem:[%s4988_s9 + $0x70] sm:$0xf] }
 0x142   : > { %v1273_v44 = vsel %vm5001_vm10, %v1268_v18, %v1272_v42  ;;  %v1283_v5 = vsel %vm5001_vm10, %v1278_v12, %v1282_v4  ;;  %v4428_v32 = vcombine.low %v1631_v8, %v1634_v9  ;;  %v541_v16 = vor.u32 %v539_v62, %v538_v30  ;;  %v2938_v17 = vpop.permute.xlu0 %2937  ;;  %v2528_v31 = vld [vmem:[#allocation2 + $0xa0] sm:$0xf]  ;;  %v2529_v34 = vld [vmem:[#allocation2 + $0xa4] sm:$0x1]  ;;  %v308_v39 = vld [vmem:[%s4988_s9 + $0x74] sm:$0xf] }
 0x143   : > { %v4397_v43 = vcombine.low %v1273_v44, %v1283_v5  ;;  %v1641_v20 = vsel %vm4994_vm9, %v1639_v14, %v1640_v7  ;;  %v542_v21 = vrot.slane %v538_v30, 4  ;;  %v547_v40 = vshll.u32 %v5669_v52, 16  ;;  %2980 = vst.msk [vmem:[#allocation3 + $0x30] sm:$0xff] %vm2973_vm5, %v2938_v17  ;;  %v5791_v1 = vld [vmem:[%s4988_s9 + $0x78] sm:$0xf] }
 0x144   : > { %1728 = vrot.lane.b32.xlu0 %v4428_v32, %s4839_s10  ;;  %v4429_v0 = vcombine.low %v1638_v13, %v1641_v20  ;;  %v551_v48 = vrot.slane %v546_v15, 4  ;;  %v732_v62 = vsel %vm5009_vm11, %v541_v16, %v731_v11  ;;  %v2283_v28 = vshrl.u32 %v1982_v6, 16  ;;  %v738_v12 = vld [vmem:[#allocation2 + $0xb4] sm:$0xf] }
 0x145   : > { %1406 = vrot.lane.b32.xlu1 %v4397_v43, %s4840_s11  ;;  %v549_v52 = vor.u32 %v547_v40, %v546_v15  ;;  %733 = vst [vmem:[#allocation2 + $0xa8] sm:$0xf] %v732_v62  ;;  %v2286_v45 = vshll.u32 %v1982_v6, 16  ;;  %v2292_v23 = vshll.u32 %v1983_v25, 16  ;;  %v2296_v56 = vshrl.u32 %v1983_v25, 16 }
 0x146   : > { %v2441_v33 = vpop.permute.xlu1 %2440  ;;  %v2285_v36 = vrot.slane %v2283_v28, 4  ;;  %v2302_v35 = vshll.u32 %v1984_v24, 16  ;;  %v736_v57 = vsel %vm5032_vm13, %v551_v48, %v735_v63  ;;  %v4476_v38 = vrot.slane %v2527_v22, 9 }
 0x147   : > { %2482 = vst.msk [vmem:[#allocation3 + $0x38] sm:$0xff] %vm2474_vm3, %v2441_v33  ;;  %v550_v42 = vsel %vm5017_vm12, %v542_v21, %v549_v52  ;;  %v2288_v47 = vrot.slane %v2286_v45, 5  ;;  %v2294_v46 = vrot.slane %v2292_v23, 5  ;;  %v2298_v50 = vrot.slane %v2296_v56, 4  ;;  %737 = vst [vmem:[#allocation2 + $0xb0] sm:$0x1] %v736_v57 }
 0x148   : > { %1905 = vrot.lane.b32.xlu0 %v4756_v49, %s4841_s12  ;;  %734 = vst.msk [vmem:[#allocation2 + $0xac] sm:$0xf] %vm223_vm0, %v550_v42  ;;  %v2304_v51 = vrot.slane %v2302_v35, 5  ;;  %v2673_v54 = vrot.slane %v2528_v31, 5  ;;  %v2676_v59 = vrot.slane %v2529_v34, 5  ;;  %v553_v60 = vshrl.u32 %v307_v27, 16 }
 0x149   : > { %1730 = vrot.lane.b32.xlu1 %v4429_v0, %s4839_s10  ;;  %v2289_v3 = vor.u32 %v2288_v47, %v2285_v36  ;;  %v2299_v26 = vor.u32 %v2298_v50, %v2294_v46  ;;  %v556_v4 = vshll.u32 %v307_v27, 16  ;;  %v561_v53 = vshrl.u32 %v308_v39, 16 }
 0x14a   : > { %v2762_v61 = vpop.permute.xlu1 %2761  ;;  %v2675_v8 = vrot.slane %v2673_v54, 4  ;;  %v555_v2 = vrot.slane %v553_v60, 7  ;;  %v564_v58 = vshll.u32 %v308_v39, 16  ;;  %v570_v7 = vshrl.u32 %v5791_v1, 16 }
 0x14b   : > { %2803 = vst.msk [vmem:[#allocation3 + $0x38] sm:$0xff] %vm2795_vm4, %v2762_v61  ;;  %v2290_v10 = vrot.slane %v2289_v3, 4  ;;  %v2300_v11 = vrot.slane %v2299_v26, 4  ;;  %v5795_v18 = vrot.slane %v561_v53, 7  ;;  %v2674_v6 = vsel %vm4994_vm9, %v4476_v38, %v2673_v54  ;;  %v3483_v63 = vpop.permute.xlu0 %3482 }
 0x14c   : > { %v1985_v30 = vld [vmem:[#allocation2 + $0xa8] sm:$0xf]  ;;  %v2677_v9 = vsel %vm4994_vm9, %v2675_v8, %v2676_v59  ;;  %v558_v14 = vor.u32 %v556_v4, %v555_v2  ;;  %3525 = vst.msk [vmem:[#allocation3 + $0x30] sm:$0xff] %vm3518_vm6, %v3483_v63  ;;  %v559_v21 = vrot.slane %v555_v2, 4  ;;  %v742_v4 = vld [vmem:[#allocation2 + $0xbc] sm:$0x1] }
 0x14d   : > { %v2530_v13 = vld [vmem:[#allocation2 + $0xa8] sm:$0xe]  ;;  %v2295_v44 = vsel %vm5001_vm10, %v2290_v10, %v2294_v46  ;;  %v2305_v5 = vsel %vm5001_vm10, %v2300_v11, %v2304_v51  ;;  %v2307_v32 = vshrl.u32 %v1985_v30, 16  ;;  %v2310_v16 = vshll.u32 %v1985_v30, 16 }
 0x14e   : > { %v2940_v15 = vpop.permute.xlu1 %2939  ;;  %v4460_v25 = vcombine.low %v2295_v44, %v2305_v5  ;;  %v1987_v17 = vld [vmem:[#allocation2 + $0xb0] sm:$0x1]  ;;  %v4477_v20 = vrot.slane %v2530_v13, 9  ;;  %v3026_v40 = vld [vmem:[#allocation2 + $0xa8] sm:$0xf]  ;;  %v4492_v0 = vcombine.low %v2674_v6, %v2677_v9  ;;  %v566_v49 = vor.u32 %v564_v58, %v5795_v18 }
 0x14f   : > { %2981 = vst.msk [vmem:[#allocation3 + $0x38] sm:$0xff] %vm2973_vm5, %v2940_v15  ;;  %v2532_v43 = vld [vmem:[#allocation2 + $0xb0] sm:$0x1]  ;;  %v4757_v24 = vld [vmem:[#allocation2 + $0xa8] sm:$0xff]   ;;  %v2309_v27 = vrot.slane %v2307_v32, 4  ;;  %v739_v48 = vsel %vm5009_vm11, %v558_v14, %v738_v12  ;;  %v2312_v62 = vrot.slane %v2310_v16, 5  ;;  %v3804_v45 = vpop.permute.xlu0 %3803 }
 0x150   : > { %v1986_v22 = vld [vmem:[#allocation2 + $0xac] sm:$0xf]  ;;  %2450 = vrot.lane.b32.xlu0 %v4460_v25, %s4845_s16  ;;  %v2326_v33 = vshll.u32 %v1987_v17, 16  ;;  %740 = vst [vmem:[#allocation2 + $0xb4] sm:$0xf] %v739_v48  ;;  %1907 = vrot.lane.b32.xlu1 %v4757_v24, %s4841_s12  ;;  %v2683_v56 = vrot.slane %v2532_v43, 5  ;;  %v567_v34 = vsel %vm5017_vm12, %v559_v21, %v566_v49 }
 0x151   : > { %v2316_v28 = vshll.u32 %v1986_v22, 16  ;;  %v2320_v31 = vshrl.u32 %v1986_v22, 16  ;;  %v2531_v52 = vld [vmem:[#allocation2 + $0xac] sm:$0xf]  ;;  %v568_v36 = vrot.slane %v5795_v18, 4  ;;  %3846 = vst.msk [vmem:[#allocation3 + $0x30] sm:$0xff] %vm6179_vm8, %v3804_v45  ;;  %v2313_v35 = vor.u32 %v2312_v62, %v2309_v27 }
 0x152   : > { %v2680_v23 = vrot.slane %v2531_v52, 5  ;;  %v2328_v39 = vrot.slane %v2326_v33, 5  ;;  %741 = vst.msk [vmem:[#allocation2 + $0xb8] sm:$0xf] %vm223_vm0, %v567_v34  ;;  %v3027_v42 = vld [vmem:[#allocation2 + $0xac] sm:$0xf] }
 0x153   : > { %v2318_v57 = vrot.slane %v2316_v28, 5  ;;  %v2322_v38 = vrot.slane %v2320_v31, 4  ;;  %v3028_v50 = vld [vmem:[#allocation2 + $0xb0] sm:$0x1]  ;;  %v3327_v51 = vshrl.u32 %v3026_v40, 16  ;;  %v3330_v54 = vshll.u32 %v3026_v40, 16  ;;  %v3806_v53 = vpop.permute.xlu0 %3805 }
 0x154   : > { %v5820_v47 = vsel %vm4994_vm9, %v4477_v20, %v2680_v23  ;;  %v2682_v46 = vrot.slane %v2680_v23, 4  ;;  %v2314_v59 = vrot.slane %v2313_v35, 4  ;;  %2771 = vrot.lane.b32.xlu0 %v4492_v0, %s4843_s14  ;;  %v4760_v61 = vld [vmem:[#allocation2 + $0xa8] sm:$0xff]   ;;  %v3336_v3 = vshll.u32 %v3027_v42, 16  ;;  %v3485_v18 = vpop.permute.xlu1 %3484  ;;  %v3573_v13 = vld [vmem:[#allocation2 + $0xb0] sm:$0x1] }
 0x155   : > { %v2323_v60 = vor.u32 %v2322_v38, %v2318_v57  ;;  %v3340_v26 = vshrl.u32 %v3027_v42, 16  ;;  %v3329_v2 = vrot.slane %v3327_v51, 4  ;;  %v3332_v58 = vrot.slane %v3330_v54, 5  ;;  %v3571_v11 = vld [vmem:[#allocation2 + $0xa8] sm:$0xe]  ;;  %3526 = vst.msk [vmem:[#allocation3 + $0x38] sm:$0xff] %vm3518_vm6, %v3485_v18 }
 0x156   : > { %v5825_v8 = vsel %vm4994_vm9, %v2682_v46, %v2683_v56  ;;  %v3346_v10 = vshll.u32 %v3028_v50, 16  ;;  %v2319_v12 = vsel %vm5001_vm10, %v2314_v59, %v2318_v57  ;;  %v3338_v6 = vrot.slane %v3336_v3, 5  ;;  %v3572_v9 = vld [vmem:[#allocation2 + $0xac] sm:$0xf]  ;;  %3847 = vst.msk [vmem:[#allocation3 + $0x38] sm:$0xff] %vm6179_vm8, %v3806_v53 }
 0x157   : > { %v2324_v30 = vrot.slane %v2323_v60, 4  ;;  %v4493_v14 = vcombine.low %v5820_v47, %v5825_v8  ;;  %v3333_v15 = vor.u32 %v3332_v58, %v3329_v2  ;;  %v3342_v63 = vrot.slane %v3340_v26, 4  ;;  %v3029_v5 = vld [vmem:[#allocation2 + $0xb4] sm:$0xf]  ;;  %v939_v43 = vld [vmem:[#allocation2 + $0xa8] sm:$0xf] }
 0x158   : > { %v743_v44 = vsel %vm5032_vm13, %v568_v36, %v742_v4  ;;  %2949 = vrot.lane.b32.xlu0 %v4760_v61, %s4842_s13  ;;  %v3348_v16 = vrot.slane %v3346_v10, 5  ;;  %v3351_v25 = vshrl.u32 %v3029_v5, 16  ;;  %v3354_v17 = vshll.u32 %v3029_v5, 16  ;;  %v3862_v20 = vld [vmem:[#allocation3 + $0x30] sm:$0xff]  ;;  %v1397_v0 = vpop.permute.xlu1 %1396  ;;  %v941_v50 = vld [vmem:[#allocation2 + $0xb0] sm:$0x1] }
 0x159   : > { %v2329_v32 = vsel %vm5001_vm10, %v2324_v30, %v2328_v39  ;;  %744 = vst [vmem:[#allocation2 + $0xbc] sm:$0x1] %v743_v44  ;;  %v3334_v40 = vrot.slane %v3333_v15, 4  ;;  %v3343_v24 = vor.u32 %v3342_v63, %v3338_v6  ;;  %v3030_v22 = vld [vmem:[#allocation2 + $0xb8] sm:$0xf]  ;;  %v4540_v27 = vrot.slane %v3571_v11, 9  ;;  %4627 = vmatprep.mubr.msk.bf16.mxu0 %vm3899_vm7, %v3862_v20 }
 0x15a   : > { %v4461_v21 = vcombine.low %v2319_v12, %v2329_v32  ;;  %v3353_v49 = vrot.slane %v3351_v25, 4  ;;  %v3356_v48 = vrot.slane %v3354_v17, 5  ;;  %v3360_v62 = vshll.u32 %v3030_v22, 16  ;;  %1437 = vst.msk [vmem:[#allocation3 + $0x40] sm:$0xff] %vm1428_vm15, %v1397_v0  ;;  %v940_v36 = vld [vmem:[#allocation2 + $0xac] sm:$0xf] }
 0x15b   : > { %v3364_v28 = vshrl.u32 %v3030_v22, 16  ;;  %v3339_v31 = vsel %vm5001_vm10, %v3334_v40, %v3338_v6  ;;  %v3344_v33 = vrot.slane %v3343_v24, 4  ;;  %v3717_v52 = vrot.slane %v3572_v9, 5  ;;  %v1721_v57 = vpop.permute.xlu0 %1720  ;;  %v4772_v38 = vld [vmem:[#allocation2 + $0xa8] sm:$0xff]   ;;  %v4761_v39 = vld [vmem:[#allocation2 + $0xb4] sm:$0xff]  }
 0x15c   : > { %2452 = vrot.lane.b32.xlu1 %v4461_v21, %s4845_s16  ;;  %v3720_v45 = vrot.slane %v3573_v13, 5  ;;  %v3357_v23 = vor.u32 %v3356_v48, %v3353_v49  ;;  %v5843_v56 = vrot.slane %v3360_v62, 5  ;;  %v1285_v35 = vshrl.u32 %v939_v43, 16  ;;  %v1399_v54 = vpop.permute.xlu1 %1398  ;;  %1761 = vst.msk [vmem:[#allocation3 + $0x40] sm:$0xff] %vm1752_vm1, %v1721_v57  ;;  %v3574_v26 = vld [vmem:[#allocation2 + $0xb4] sm:$0xe] }
 0x15d   : > { %v3366_v34 = vrot.slane %v3364_v28, 4  ;;  %v3349_v42 = vsel %vm5001_vm10, %v3344_v33, %v3348_v16  ;;  %v3718_v47 = vsel %vm4994_vm9, %v4540_v27, %v3717_v52  ;;  %v3719_v46 = vrot.slane %v3717_v52, 4  ;;  %v3575_v4 = vld [vmem:[#allocation2 + $0xb8] sm:$0xf]  ;;  %1438 = vst.msk [vmem:[#allocation3 + $0x48] sm:$0xff] %vm1428_vm15, %v1399_v54  ;;  %v3863_v11 = vld [vmem:[#allocation3 + $0x38] sm:$0xff] }
 0x15e   : > { %v1288_v51 = vshll.u32 %v939_v43, 16  ;;  %v4524_v59 = vcombine.low %v3339_v31, %v3349_v42  ;;  %v3358_v60 = vrot.slane %v3357_v23, 4  ;;  %v1287_v3 = vrot.slane %v1285_v35, 4  ;;  %895 = vst.msk [vmem:[#allocation3 + $0x70] sm:$0xff] %vm880_vm14, %v4772_v38  ;;  %v942_v13 = vld [vmem:[#allocation2 + $0xb4] sm:$0xf]  ;;  %4628 = vmatmul.mubr.msk.bf16.gmra.mrb[12].mxu0 %vm3899_vm7, %v3863_v11 }
 0x15f   : > { %v3367_v61 = vor.u32 %v3366_v34, %v5843_v56  ;;  %v3721_v8 = vsel %vm4994_vm9, %v3719_v46, %v3720_v45  ;;  %v1294_v58 = vshll.u32 %v940_v36, 16  ;;  %v1298_v10 = vshrl.u32 %v940_v36, 16  ;;  %v4773_v16 = vld [vmem:[#allocation2 + $0xb4] sm:$0xff]   ;;  %v1487_v0 = vld [vmem:[#allocation2 + $0xa8] sm:$0xe] }
 0x160   : > { %2773 = vrot.lane.b32.xlu1 %v4493_v14, %s4843_s14  ;;  %v3031_v53 = vld [vmem:[#allocation2 + $0xbc] sm:$0x1]  ;;  %v1290_v2 = vrot.slane %v1288_v51, 5  ;;  %3494 = vrot.lane.b32.xlu0 %v4524_v59, %s4846_s17  ;;  %v3363_v18 = vsel %vm5001_vm10, %v3358_v60, %v5843_v56  ;;  %v4556_v6 = vcombine.low %v3718_v47, %v3721_v8  ;;  %v1898_v14 = vpop.permute.xlu0 %1897  ;;  %v1304_v5 = vshll.u32 %v941_v50, 16  ;;  %v1723_v32 = vpop.permute.xlu1 %1722  ;;  %v943_v21 = vld [vmem:[#allocation2 + $0xb8] sm:$0xf] }
 0x161   : > { %v3368_v12 = vrot.slane %v3367_v61, 4  ;;  %v3370_v30 = vshll.u32 %v3031_v53, 16  ;;  %v3576_v9 = vld [vmem:[#allocation2 + $0xbc] sm:$0x1]  ;;  %v1296_v63 = vrot.slane %v1294_v58, 5  ;;  %v1300_v44 = vrot.slane %v1298_v10, 4 }
 0x162   : > { %v1291_v15 = vor.u32 %v1290_v2, %v1287_v3  ;;  %1938 = vst.msk [vmem:[#allocation3 + $0x40] sm:$0xff] %vm1929_vm2, %v1898_v14  ;;  %v4541_v17 = vrot.slane %v3574_v26, 9  ;;  %v3724_v43 = vrot.slane %v3575_v4, 5  ;;  %v3727_v20 = vrot.slane %v3576_v9, 5  ;;  %v944_v28 = vld [vmem:[#allocation2 + $0xbc] sm:$0x1] }
 0x163   : > { %v3372_v25 = vrot.slane %v3370_v30, 5  ;;  %1762 = vst.msk [vmem:[#allocation3 + $0x48] sm:$0xff] %vm1752_vm1, %v1723_v32  ;;  %v1301_v24 = vor.u32 %v1300_v44, %v1296_v63  ;;  %v1306_v22 = vrot.slane %v1304_v5, 5  ;;  %v1309_v27 = vshrl.u32 %v942_v13, 16  ;;  %v1488_v33 = vld [vmem:[#allocation2 + $0xac] sm:$0xf] }
 0x164   : > { %2951 = vrot.lane.b32.xlu1 %v4761_v39, %s4842_s13  ;;  %v1292_v40 = vrot.slane %v1291_v15, 4  ;;  %896 = vst.msk [vmem:[#allocation3 + $0x78] sm:$0xff] %vm880_vm14, %v4773_v16  ;;  %3815 = vrot.lane.b32.xlu0 %v4556_v6, %s4844_s15  ;;  %v3725_v48 = vsel %vm4994_vm9, %v4541_v17, %v3724_v43  ;;  %v3726_v62 = vrot.slane %v3724_v43, 4  ;;  %v1312_v31 = vshll.u32 %v942_v13, 16  ;;  %v1489_v34 = vld [vmem:[#allocation2 + $0xb0] sm:$0x1] }
 0x165   : > { %v3373_v49 = vsel %vm5001_vm10, %v3368_v12, %v3372_v25  ;;  %v1302_v23 = vrot.slane %v1301_v24, 4  ;;  %v1311_v56 = vrot.slane %v1309_v27, 4  ;;  %v1318_v57 = vshll.u32 %v943_v21, 16  ;;  %v1490_v39 = vld [vmem:[#allocation2 + $0xb4] sm:$0xe] }
 0x166   : > { %v4525_v52 = vcombine.low %v3363_v18, %v3373_v49  ;;  %v1297_v45 = vsel %vm5001_vm10, %v1292_v40, %v1296_v63  ;;  %v3728_v36 = vsel %vm4994_vm9, %v3726_v62, %v3727_v20  ;;  %v1314_v35 = vrot.slane %v1312_v31, 5  ;;  %v1491_v51 = vld [vmem:[#allocation2 + $0xb8] sm:$0xf]  ;;  %v1492_v54 = vld [vmem:[#allocation2 + $0xbc] sm:$0x1] }
 0x167   : > { %v1322_v38 = vshrl.u32 %v943_v21, 16  ;;  %v1307_v42 = vsel %vm5001_vm10, %v1302_v23, %v1306_v22  ;;  %v4557_v47 = vcombine.low %v3725_v48, %v3728_v36  ;;  %v1328_v46 = vshll.u32 %v944_v28, 16  ;;  %v310_v26 = vld [vmem:[%s4988_s9 + $0x7c] sm:$0xf]  ;;  %v745_v32 = vld [vmem:[#allocation2 + $0xc0] sm:$0xf] }
 0x168   : > { %3496 = vrot.lane.b32.xlu1 %v4525_v52, %s4846_s17  ;;  %v4414_v50 = vrot.slane %v1487_v0, 9  ;;  %v4398_v59 = vcombine.low %v1297_v45, %v1307_v42  ;;  %v1315_v60 = vor.u32 %v1314_v35, %v1311_v56  ;;  %v1320_v61 = vrot.slane %v1318_v57, 5  ;;  %v1988_v20 = vld [vmem:[#allocation2 + $0xb4] sm:$0xf]  ;;  %v1989_v21 = vld [vmem:[#allocation2 + $0xb8] sm:$0xf] }
 0x169   : > { %v1324_v3 = vrot.slane %v1322_v38, 4  ;;  %3817 = vrot.lane.b32.xlu0 %v4557_v47, %s4844_s15  ;;  %v1330_v4 = vrot.slane %v1328_v46, 5  ;;  %v1644_v53 = vrot.slane %v1488_v33, 5  ;;  %v1647_v8 = vrot.slane %v1489_v34, 5  ;;  %v1900_v58 = vpop.permute.xlu1 %1899  ;;  %v2443_v10 = vpop.permute.xlu0 %2442  ;;  %v1990_v27 = vld [vmem:[#allocation2 + $0xbc] sm:$0x1] }
 0x16a   : > { %v4415_v2 = vrot.slane %v1490_v39, 9  ;;  %v1316_v11 = vrot.slane %v1315_v60, 4  ;;  %v1651_v12 = vrot.slane %v1491_v51, 5  ;;  %v1654_v30 = vrot.slane %v1492_v54, 5  ;;  %1939 = vst.msk [vmem:[#allocation3 + $0x48] sm:$0xff] %vm1929_vm2, %v1900_v58  ;;  %v4762_v62 = vld [vmem:[#allocation2 + $0xb4] sm:$0xff]  }
 0x16b   : > { %v1325_v18 = vor.u32 %v1324_v3, %v1320_v61  ;;  %2483 = vst.msk [vmem:[#allocation3 + $0x40] sm:$0xff] %vm2474_vm3, %v2443_v10  ;;  %v1645_v6 = vsel %vm4994_vm9, %v4414_v50, %v1644_v53  ;;  %v1646_v9 = vrot.slane %v1644_v53, 4  ;;  %v572_v13 = vrot.slane %v570_v7, 7  ;;  %v2533_v0 = vld [vmem:[#allocation2 + $0xb4] sm:$0xe] }
 0x16c   : > { %1408 = vrot.lane.b32.xlu1 %v4398_v59, %s4840_s11  ;;  %v573_v14 = vshll.u32 %v5791_v1, 16  ;;  %v1321_v15 = vsel %vm5001_vm10, %v1316_v11, %v1320_v61  ;;  %v1652_v44 = vsel %vm4994_vm9, %v4415_v2, %v1651_v12  ;;  %v1653_v5 = vrot.slane %v1651_v12, 4  ;;  %v749_v33 = vld [vmem:[#allocation2 + $0xc8] sm:$0x1]  ;;  %v3035_v52 = vld [vmem:[#allocation2 + $0xcc] sm:$0xf] }
 0x16d   : > { %v1326_v63 = vrot.slane %v1325_v18, 4  ;;  %v1648_v16 = vsel %vm4994_vm9, %v1646_v9, %v1647_v8  ;;  %v576_v17 = vrot.slane %v572_v13, 4  ;;  %v578_v43 = vshrl.u32 %v310_v26, 16  ;;  %v2764_v7 = vpop.permute.xlu0 %2763  ;;  %v2534_v36 = vld [vmem:[#allocation2 + $0xb8] sm:$0xf] }
 0x16e   : > { %v575_v25 = vor.u32 %v573_v14, %v572_v13  ;;  %v4430_v40 = vcombine.low %v1645_v6, %v1648_v16  ;;  %v1655_v24 = vsel %vm4994_vm9, %v1653_v5, %v1654_v30  ;;  %v581_v22 = vshll.u32 %v310_v26, 16  ;;  %2804 = vst.msk [vmem:[#allocation3 + $0x40] sm:$0xff] %vm2795_vm4, %v2764_v7  ;;  %v2535_v39 = vld [vmem:[#allocation2 + $0xbc] sm:$0x1]  ;;  %v5907_v3 = vld [vmem:[#allocation2 + $0xd0] sm:$0xf] }
 0x16f   : > { %v1331_v1 = vsel %vm5001_vm10, %v1326_v63, %v1330_v4  ;;  %v4431_v48 = vcombine.low %v1652_v44, %v1655_v24  ;;  %v580_v28 = vrot.slane %v578_v43, 7  ;;  %v2331_v45 = vshrl.u32 %v1988_v20, 16 }
 0x170   : > { %v4399_v49 = vcombine.low %v1321_v15, %v1331_v1  ;;  %v746_v31 = vsel %vm5009_vm11, %v575_v25, %v745_v32  ;;  %1732 = vrot.lane.b32.xlu0 %v4430_v40, %s4839_s10  ;;  %v2334_v23 = vshll.u32 %v1988_v20, 16  ;;  %v2340_v56 = vshll.u32 %v1989_v21, 16 }
 0x171   : > { %747 = vst [vmem:[#allocation2 + $0xc0] sm:$0xf] %v746_v31  ;;  %v2344_v34 = vshrl.u32 %v1989_v21, 16  ;;  %v583_v35 = vor.u32 %v581_v22, %v580_v28  ;;  %v585_v57 = vrot.slane %v580_v28, 4  ;;  %v2350_v38 = vshll.u32 %v1990_v27, 16  ;;  %v2942_v47 = vpop.permute.xlu0 %2941 }
 0x172   : > { %1410 = vrot.lane.b32.xlu1 %v4399_v49, %s4840_s11  ;;  %v4478_v42 = vrot.slane %v2533_v0, 9  ;;  %v2333_v37 = vrot.slane %v2331_v45, 4  ;;  %v2336_v46 = vrot.slane %v2334_v23, 5  ;;  %v2342_v50 = vrot.slane %v2340_v56, 5  ;;  %2982 = vst.msk [vmem:[#allocation3 + $0x40] sm:$0xff] %vm2973_vm5, %v2942_v47  ;;  %s4295_s11 = scalar_lea.sflag [#allocation5], %s215_s23 }
 0x173   : > { %v2346_v51 = vrot.slane %v2344_v34, 4  ;;  %v584_v54 = vsel %vm5017_vm12, %v576_v17, %v583_v35  ;;  %v2352_v59 = vrot.slane %v2350_v38, 5  ;;  %v750_v60 = vsel %vm5032_vm13, %v585_v57, %v749_v33 }
 0x174   : > { %v2687_v61 = vrot.slane %v2534_v36, 5  ;;  %1909 = vrot.lane.b32.xlu0 %v4762_v62, %s4841_s12  ;;  %748 = vst.msk [vmem:[#allocation2 + $0xc4] sm:$0xf] %vm223_vm0, %v584_v54  ;;  %v2337_v4 = vor.u32 %v2336_v46, %v2333_v37  ;;  %751 = vst [vmem:[#allocation2 + $0xc8] sm:$0x1] %v750_v60  ;;  %v2690_v8 = vrot.slane %v2535_v39, 5 }
 0x175   : > { %v2445_v26 = vpop.permute.xlu1 %2444  ;;  %v2347_v53 = vor.u32 %v2346_v51, %v2342_v50  ;;  %v3399_v2 = vshrl.u32 %v3035_v52, 16  ;;  %v3402_v55 = vshll.u32 %v3035_v52, 16  ;;  %v3408_v18 = vshll.u32 %v5907_v3, 16  ;;  %vm6180_vm0 = vmmov %vm6179_vm8  ;;  %v3037_v60 = vld [vmem:[#allocation2 + $0xd4] sm:$0x1] }
 0x176   : > { %2484 = vst.msk [vmem:[#allocation3 + $0x48] sm:$0xff] %vm2474_vm3, %v2445_v26  ;;  %1734 = vrot.lane.b32.xlu1 %v4431_v48, %s4839_s10  ;;  %v2689_v41 = vrot.slane %v2687_v61, 4  ;;  %v2338_v58 = vrot.slane %v2337_v4, 4  ;;  %v2688_v30 = vsel %vm4994_vm9, %v4478_v42, %v2687_v61  ;;  %v3412_v17 = vshrl.u32 %v5907_v3, 16  ;;  %vm6181_vm11 = vmmov %vm6180_vm0  ;;  %s6118_s10 = scalar_lea.hbm %s6165_s5, %s4581_s30 }
 0x177   : > { %v2348_v10 = vrot.slane %v2347_v53, 4  ;;  %v5913_v11 = vrot.slane %v3399_v2, 4  ;;  %v5926_v7 = vrot.slane %v3402_v55, 5  ;;  %vm6184_vm12 = vmmov %vm6180_vm0  ;;  %vm4145_vm14 = vcmask 261120  }
 0x178   : > { %v1991_v12 = vld [vmem:[#allocation2 + $0xc0] sm:$0xf]  ;;  %v2691_v6 = vsel %vm4994_vm9, %v2689_v41, %v2690_v8  ;;  %v2343_v14 = vsel %vm5001_vm10, %v2338_v58, %v2342_v50  ;;  %vm6185_vm13 = vmmov %vm6180_vm0 }
 0x179   : > { %v2536_v9 = vld [vmem:[#allocation2 + $0xc0] sm:$0xe]  ;;  %v2766_v13 = vpop.permute.xlu1 %2765  ;;  %v2353_v15 = vsel %vm5001_vm10, %v2348_v10, %v2352_v59  ;;  %v2355_v63 = vshrl.u32 %v1991_v12, 16  ;;  %v2358_v44 = vshll.u32 %v1991_v12, 16  ;;  %v3487_v1 = vpop.permute.xlu0 %3486  ;;  %v4494_v22 = vcombine.low %v2688_v30, %v2691_v6 }
 0x17a   : > { %v3032_v5 = vld [vmem:[#allocation2 + $0xc0] sm:$0xf]  ;;  %2805 = vst.msk [vmem:[#allocation3 + $0x48] sm:$0xff] %vm2795_vm4, %v2766_v13  ;;  %v4462_v32 = vcombine.low %v2343_v14, %v2353_v15  ;;  %v4479_v16 = vrot.slane %v2536_v9, 9  ;;  %v3405_v61 = vor.u32 %v5926_v7, %v5913_v11  ;;  %v3410_v12 = vrot.slane %v3408_v18, 5 }
 0x17b   : > { %v3375_v25 = vshrl.u32 %v3032_v5, 16  ;;  %v2357_v43 = vrot.slane %v2355_v63, 4  ;;  %v2360_v20 = vrot.slane %v2358_v44, 5  ;;  %v3378_v21 = vshll.u32 %v3032_v5, 16  ;;  %v4763_v40 = vld [vmem:[#allocation2 + $0xc0] sm:$0xff]   ;;  %3527 = vst.msk [vmem:[#allocation3 + $0x40] sm:$0xff] %vm3518_vm6, %v3487_v1 }
 0x17c   : > { %2454 = vrot.lane.b32.xlu0 %v4462_v32, %s4845_s16  ;;  %v1992_v24 = vld [vmem:[#allocation2 + $0xc4] sm:$0xf]  ;;  %v1993_v49 = vld [vmem:[#allocation2 + $0xc8] sm:$0x1]  ;;  %1911 = vrot.lane.b32.xlu1 %v4763_v40, %s4841_s12  ;;  %v3577_v2 = vld [vmem:[#allocation2 + $0xc0] sm:$0xe] }
 0x17d   : > { %v3377_v27 = vrot.slane %v3375_v25, 4  ;;  %v2944_v0 = vpop.permute.xlu1 %2943  ;;  %v2361_v48 = vor.u32 %v2360_v20, %v2357_v43  ;;  %v2364_v62 = vshll.u32 %v1992_v24, 16  ;;  %v2368_v28 = vshrl.u32 %v1992_v24, 16  ;;  %v2537_v31 = vld [vmem:[#allocation2 + $0xc4] sm:$0xf]  ;;  %v3808_v35 = vpop.permute.xlu0 %3807  ;;  %s4774_s12 = scalar_lea.vmem %s6120_s7, 16 }
 0x17e   : > { %2983 = vst.msk [vmem:[#allocation3 + $0x48] sm:$0xff] %vm2973_vm5, %v2944_v0  ;;  %v2374_v33 = vshll.u32 %v1993_v49, 16  ;;  %v2538_v52 = vld [vmem:[#allocation2 + $0xc8] sm:$0x1]  ;;  %v2694_v45 = vrot.slane %v2537_v31, 5  ;;  %v4766_v38 = vld [vmem:[#allocation2 + $0xc0] sm:$0xff]   ;;  %p4775_p11 = scmp.ne.s32.totalorder %s6120_s7, %s4774_s12 }
 0x17f   : > { %v2362_v23 = vrot.slane %v2361_v48, 4  ;;  %v2366_v56 = vrot.slane %v2364_v62, 5  ;;  %v2370_v34 = vrot.slane %v2368_v28, 4  ;;  %v2697_v36 = vrot.slane %v2538_v52, 5  ;;  %v3033_v39 = vld [vmem:[#allocation2 + $0xc4] sm:$0xf] }
 0x180   : > { %2775 = vrot.lane.b32.xlu0 %v4494_v22, %s4843_s14  ;;  %v2696_v57 = vrot.slane %v2694_v45, 4  ;;  %v3034_v42 = vld [vmem:[#allocation2 + $0xc8] sm:$0x1]  ;;  %3848 = vst.msk [vmem:[#allocation3 + $0x40] sm:$0xff] %vm6180_vm0, %v3808_v35  ;;  %v2376_v37 = vrot.slane %v2374_v33, 5  ;;  %v3380_v46 = vrot.slane %v3378_v21, 5  ;;  %v2695_v51 = vsel %vm4994_vm9, %v4479_v16, %v2694_v45  ;;  %p4776_p12 = pnand %p4775_p11, %p4919_p5 }
 0x181   : > { %v2371_v47 = vor.u32 %v2370_v34, %v2366_v56  ;;  %v3384_v50 = vshll.u32 %v3033_v39, 16  ;;  %v3388_v54 = vshrl.u32 %v3033_v39, 16  ;;  %v3394_v59 = vshll.u32 %v3034_v42, 16  ;;  %v3578_v41 = vld [vmem:[#allocation2 + $0xc4] sm:$0xf]  ;;  %v3810_v55 = vpop.permute.xlu0 %3809  ;;  %v4767_v33 = vld [vmem:[#allocation2 + $0xcc] sm:$0xff]  }
 0x182   : > { %v2367_v26 = vsel %vm5001_vm10, %v2362_v23, %v2366_v56  ;;  %v3381_v53 = vor.u32 %v3380_v46, %v3377_v27  ;;  %v2698_v58 = vsel %vm4994_vm9, %v2696_v57, %v2697_v36  ;;  %v3414_v30 = vrot.slane %v3412_v17, 4  ;;  %v3579_v11 = vld [vmem:[#allocation2 + $0xc8] sm:$0x1]  ;;  %v3489_v6 = vpop.permute.xlu1 %3488  ;;  %v3581_v16 = vld [vmem:[#allocation2 + $0xd0] sm:$0xf]  ;;  %p4777_p13 = pneg %p4776_p12 }
 0x183   : > { %v2372_v4 = vrot.slane %v2371_v47, 4  ;;  %v3386_v8 = vrot.slane %v3384_v50, 5  ;;  %v3390_v10 = vrot.slane %v3388_v54, 4  ;;  %v3396_v14 = vrot.slane %v3394_v59, 5  ;;  %3528 = vst.msk [vmem:[#allocation3 + $0x48] sm:$0xff] %vm3518_vm6, %v3489_v6 }
 0x184   : > { %2953 = vrot.lane.b32.xlu0 %v4766_v38, %s4842_s13  ;;  %v3382_v13 = vrot.slane %v3381_v53, 4  ;;  %v3418_v15 = vshll.u32 %v3037_v60, 16  ;;  %v3415_v5 = vor.u32 %v3414_v30, %v3410_v12  ;;  %v4542_v32 = vrot.slane %v3577_v2, 9  ;;  %3849 = vst.msk [vmem:[#allocation3 + $0x48] sm:$0xff] %vm6181_vm11, %v3810_v55  ;;  %v3580_v22 = vld [vmem:[#allocation2 + $0xcc] sm:$0xe] }
 0x185   : > { %v2377_v9 = vsel %vm5001_vm10, %v2372_v4, %v2376_v37  ;;  %v3391_v44 = vor.u32 %v3390_v10, %v3386_v8  ;;  %v3731_v3 = vrot.slane %v3578_v41, 5  ;;  %v3734_v18 = vrot.slane %v3579_v11, 5  ;;  %v3582_v48 = vld [vmem:[#allocation2 + $0xd4] sm:$0x1] }
 0x186   : > { %v4463_v63 = vcombine.low %v2367_v26, %v2377_v9  ;;  %v4495_v17 = vcombine.low %v2695_v51, %v2698_v58  ;;  %v3387_v43 = vsel %vm5001_vm10, %v3382_v13, %v3386_v8  ;;  %v3406_v21 = vrot.slane %v3405_v61, 4  ;;  %v1401_v7 = vpop.permute.xlu1 %1400 }
 0x187   : > { %v3864_v25 = vld [vmem:[#allocation3 + $0x40] sm:$0xff]  ;;  %v3392_v20 = vrot.slane %v3391_v44, 4  ;;  %v3416_v1 = vrot.slane %v3415_v5, 4  ;;  %v3420_v40 = vrot.slane %v3418_v15, 5  ;;  %v3733_v24 = vrot.slane %v3731_v3, 4  ;;  %1439 = vst.msk [vmem:[#allocation3 + $0x50] sm:$0xff] %vm1428_vm15, %v1401_v7 }
 0x188   : > { %2456 = vrot.lane.b32.xlu1 %v4463_v63, %s4845_s16  ;;  %4631 = vmatprep.mubr.msk.bf16.mxu0 %vm3899_vm7, %v3864_v25  ;;  %v3738_v27 = vrot.slane %v3581_v16, 5  ;;  %v3732_v49 = vsel %vm4994_vm9, %v4542_v32, %v3731_v3  ;;  %v1725_v62 = vpop.permute.xlu0 %1724  ;;  %v3411_v52 = vsel %vm5001_vm10, %v3406_v21, %v3410_v12  ;;  %v4543_v45 = vrot.slane %v3580_v22, 9  ;;  %v6008_v5 = vld [vmem:[%s6162_s2] ss:$0 sm:$0xff] }
 0x189   : > { %v3397_v0 = vsel %vm5001_vm10, %v3392_v20, %v3396_v14  ;;  %v3735_v31 = vsel %vm4994_vm9, %v3733_v24, %v3734_v18  ;;  %1763 = vst.msk [vmem:[#allocation3 + $0x50] sm:$0xff] %vm1752_vm1, %v1725_v62  ;;  %v3421_v56 = vsel %vm5001_vm10, %v3416_v1, %v3420_v40  ;;  %v3741_v35 = vrot.slane %v3582_v48, 5  ;;  %vm6183_vm10 = vmmov %vm6180_vm0 }
 0x18a   : > { %v4526_v28 = vcombine.low %v3387_v43, %v3397_v0  ;;  %v1403_v23 = vpop.permute.xlu1 %1402  ;;  %v4558_v34 = vcombine.low %v3732_v49, %v3735_v31  ;;  %v3740_v36 = vrot.slane %v3738_v27, 4  ;;  %v4527_v39 = vcombine.low %v3411_v52, %v3421_v56 }
 0x18b   : > { %1440 = vst.msk [vmem:[#allocation3 + $0x58] sm:$0xff] %vm1428_vm15, %v1403_v23  ;;  %v3865_v57 = vld [vmem:[#allocation3 + $0x48] sm:$0xff]  ;;  %v3739_v29 = vsel %vm4994_vm9, %v4543_v45, %v3738_v27 }
 0x18c   : > { %2777 = vrot.lane.b32.xlu1 %v4495_v17, %s4843_s14  ;;  %3498 = vrot.lane.b32.xlu0 %v4526_v28, %s4846_s17  ;;  %v1902_v38 = vpop.permute.xlu0 %1901  ;;  %v3742_v47 = vsel %vm4994_vm9, %v3740_v36, %v3741_v35  ;;  %vm6182_vm9 = vmmov %vm6180_vm0 }
 0x18d   : > { %4632 = vmatmul.mubr.msk.bf16.gmra.mrb[16].mxu0 %vm3899_vm7, %v3865_v57  ;;  %1940 = vst.msk [vmem:[#allocation3 + $0x50] sm:$0xff] %vm1929_vm2, %v1902_v38  ;;  %v4559_v37 = vcombine.low %v3739_v29, %v3742_v47 }
 0x18e   : > { %v1727_v42 = vpop.permute.xlu1 %1726 }
 0x18f   : > { %1764 = vst.msk [vmem:[#allocation3 + $0x58] sm:$0xff] %vm1752_vm1, %v1727_v42 }
 0x190   : > { %2955 = vrot.lane.b32.xlu1 %v4767_v33, %s4842_s13  ;;  %3819 = vrot.lane.b32.xlu0 %v4558_v34, %s4844_s15  ;;  %s4778_s13 = sshll.u32 %s4850_s22, 4  ;;  %s4779_s13 = int_to_ptr.vmem [resolvable:$false] %s4778_s13 }
 0x191   : > { %s4780_s14 = scalar_lea.vmem %s4779_s13, 32  ;;  %p4781_p0 = scmp.lt.s32.totalorder %s6120_s7, %s4779_s13 }
 0x192   : > { %p4782_p1 = scmp.lt.s32.totalorder %s4780_s14, %s4774_s12 }
 0x194   : > { %3500 = vrot.lane.b32.xlu1 %v4527_v39, %s4846_s17  ;;  %v2447_v46 = vpop.permute.xlu0 %2446  ;;  %p4783_p2 = por %p4782_p1, %p4781_p0 }
 0x195   : > { %2485 = vst.msk [vmem:[#allocation3 + $0x50] sm:$0xff] %vm2474_vm3, %v2447_v46 }
 0x196   : > { %v1904_v50 = vpop.permute.xlu1 %1903  ;;  %p4784_p3 = pnand %p4783_p2, %p4777_p13 }
 0x197   : > { %1941 = vst.msk [vmem:[#allocation3 + $0x58] sm:$0xff] %vm1929_vm2, %v1904_v50 }
 0x198   : > { %3821 = vrot.lane.b32.xlu1 %v4559_v37, %s4844_s15  ;;  %v2768_v51 = vpop.permute.xlu0 %2767 }
 0x199   : > { %2806 = vst.msk [vmem:[#allocation3 + $0x50] sm:$0xff] %vm2795_vm4, %v2768_v51 }
 0x19c   : > { %v2946_v54 = vpop.permute.xlu0 %2945 }
 0x19d   : > { %2984 = vst.msk [vmem:[#allocation3 + $0x50] sm:$0xff] %vm2973_vm5, %v2946_v54 }
 0x1a2   : > { %v2449_v19 = vpop.permute.xlu1 %2448 }
 0x1a3   : > { %2486 = vst.msk [vmem:[#allocation3 + $0x58] sm:$0xff] %vm2474_vm3, %v2449_v19 }
 0x1a6   : > { %v2770_v59 = vpop.permute.xlu1 %2769 }
 0x1a7   : > { %2807 = vst.msk [vmem:[#allocation3 + $0x58] sm:$0xff] %vm2795_vm4, %v2770_v59  ;;  %v3491_v60 = vpop.permute.xlu0 %3490 }
 0x1a8   : > { %3529 = vst.msk [vmem:[#allocation3 + $0x50] sm:$0xff] %vm3518_vm6, %v3491_v60 }
 0x1aa   : > { %v2948_v61 = vpop.permute.xlu1 %2947 }
 0x1ab   : > { %2985 = vst.msk [vmem:[#allocation3 + $0x58] sm:$0xff] %vm2973_vm5, %v2948_v61  ;;  %v3812_v26 = vpop.permute.xlu0 %3811 }
 0x1ac   : > { %3850 = vst.msk [vmem:[#allocation3 + $0x50] sm:$0xff] %vm6182_vm9, %v3812_v26 }
 0x1af   : > { %v3493_v4 = vpop.permute.xlu1 %3492  ;;  %v3814_v53 = vpop.permute.xlu0 %3813 }
 0x1b0   : > { %3530 = vst.msk [vmem:[#allocation3 + $0x58] sm:$0xff] %vm3518_vm6, %v3493_v4 }
 0x1b1   : > { %3851 = vst.msk [vmem:[#allocation3 + $0x58] sm:$0xff] %vm6183_vm10, %v3814_v53 }
 0x1b3   : > { %v1405_v8 = vpop.permute.xlu1 %1404  ;;  %v3866_v2 = vld [vmem:[#allocation3 + $0x50] sm:$0xff] }
 0x1b4   : > { %1441 = vst.msk [vmem:[#allocation3 + $0x60] sm:$0xff] %vm1428_vm15, %v1405_v8  ;;  %4635 = vmatprep.mubr.msk.bf16.mxu1 %vm3899_vm7, %v3866_v2 }
 0x1b6   : > { %v1729_v41 = vpop.permute.xlu0 %1728 }
 0x1b7   : > { %v1407_v55 = vpop.permute.xlu1 %1406  ;;  %1765 = vst.msk [vmem:[#allocation3 + $0x60] sm:$0xff] %vm1752_vm1, %v1729_v41 }
 0x1b8   : > { %1442 = vst.msk [vmem:[#allocation3 + $0x68] sm:$0xff] %vm1428_vm15, %v1407_v55  ;;  %v3867_v58 = vld [vmem:[#allocation3 + $0x58] sm:$0xff] }
 0x1b9   : > { %4636 = vmatmul.mubr.msk.bf16.vlgmr.msra.gmra.mrb[0].mxu1 %vm3899_vm7, %v3867_v58 }
 0x1ba   : > { %v1906_v10 = vpop.permute.xlu0 %1905 }
 0x1bb   : > { %v1731_v12 = vpop.permute.xlu1 %1730  ;;  %1942 = vst.msk [vmem:[#allocation3 + $0x60] sm:$0xff] %vm1929_vm2, %v1906_v10 }
 0x1bc   : > { %1766 = vst.msk [vmem:[#allocation3 + $0x68] sm:$0xff] %vm1752_vm1, %v1731_v12 }
 0x1c2   : > { %v2451_v30 = vpop.permute.xlu0 %2450  ;;  %v1908_v11 = vpop.permute.xlu1 %1907 }
 0x1c3   : > { %2487 = vst.msk [vmem:[#allocation3 + $0x60] sm:$0xff] %vm2474_vm3, %v2451_v30 }
 0x1c4   : > { %1943 = vst.msk [vmem:[#allocation3 + $0x68] sm:$0xff] %vm1929_vm2, %v1908_v11 }
 0x1c6   : > { %v2772_v6 = vpop.permute.xlu0 %2771 }
 0x1c7   : > { %2808 = vst.msk [vmem:[#allocation3 + $0x60] sm:$0xff] %vm2795_vm4, %v2772_v6 }
 0x1ca   : > { %v2950_v9 = vpop.permute.xlu0 %2949 }
 0x1cb   : > { %2986 = vst.msk [vmem:[#allocation3 + $0x60] sm:$0xff] %vm2973_vm5, %v2950_v9 }
 0x1ce   : > { %v2453_v13 = vpop.permute.xlu1 %2452 }
 0x1cf   : > { %2488 = vst.msk [vmem:[#allocation3 + $0x68] sm:$0xff] %vm2474_vm3, %v2453_v13 }
 0x1d2   : > { %v2774_v14 = vpop.permute.xlu1 %2773  ;;  %v3495_v15 = vpop.permute.xlu0 %3494 }
 0x1d3   : > { %2809 = vst.msk [vmem:[#allocation3 + $0x68] sm:$0xff] %vm2795_vm4, %v2774_v14 }
 0x1d4   : > { %3531 = vst.msk [vmem:[#allocation3 + $0x60] sm:$0xff] %vm3518_vm6, %v3495_v15 }
 0x1d6   : > { %v2952_v63 = vpop.permute.xlu1 %2951  ;;  %v3816_v44 = vpop.permute.xlu0 %3815 }
 0x1d7   : > { %2987 = vst.msk [vmem:[#allocation3 + $0x68] sm:$0xff] %vm2973_vm5, %v2952_v63  ;;  %v4617_v32 = vpop.f32.mrb[0].mxu0 }
 0x1d8   : > { %3852 = vst.msk [vmem:[#allocation3 + $0x60] sm:$0xff] %vm6184_vm12, %v3816_v44  ;;  %v3986_v16 = vpop.f32.mrb[1].mxu0  ;;  %v3995_v18 = vadd.f32 %v4617_v32, %v6008_v5 }
 0x1d9   : > { %v3987_v25 = vadd.f32 %v6008_v5, %v3986_v16  ;;  %v4618_v17 = vpop.f32.mrb[2].mxu0 }
 0x1da   : > { %v3497_v3 = vpop.permute.xlu1 %3496  ;;  %v3989_v43 = vpop.f32.mrb[3].mxu0  ;;  %v3998_v7 = vadd.f32 %v4618_v17, %v6008_v5  ;;  %v4115_v24 = vmax.f32 %v3995_v18, 0.0 }
 0x1db   : > { %3532 = vst.msk [vmem:[#allocation3 + $0x68] sm:$0xff] %vm3518_vm6, %v3497_v3  ;;  %v3818_v20 = vpop.permute.xlu0 %3817  ;;  %v4113_v21 = vmax.f32 %v3987_v25, 0.0  ;;  %v3990_v1 = vadd.f32 %v6008_v5, %v3989_v43 }
 0x1dc   : > { %3853 = vst.msk [vmem:[#allocation3 + $0x68] sm:$0xff] %vm6185_vm13, %v3818_v20  ;;  %v4116_v49 = vmax.f32 %v3998_v7, 0.0  ;;  %v4149_v33 = vsel %vm4145_vm14, %v4115_v24, 0.0 }
 0x1dd   : > { %v4114_v22 = vmax.f32 %v3990_v1, 0.0  ;;  %v4146_v0 = vsel %vm4145_vm14, %v4113_v21, 0.0 }
 0x1de   : > { %v1409_v40 = vpop.permute.xlu1 %1408  ;;  %v4151_v38 = vsel %vm4145_vm14, %v4116_v49, 0.0 }
 0x1df   : > { %1443 = vst.msk [vmem:[#allocation3 + $0x70] sm:$0xff] %vm1428_vm15, %v1409_v40  ;;  %v3868_v27 = vld [vmem:[#allocation3 + $0x60] sm:$0xff]  ;;  %v4147_v48 = vsel %vm4145_vm14, %v4114_v22, 0.0  ;;  %v4621_v62 = vpop.f32.mrb[4].mxu0 }
 0x1e0   : > { %4639 = vmatprep.mubr.msk.bf16.mxu1 %vm3899_vm7, %v3868_v27  ;;  %v4148_v28 = vadd.f32 %v4147_v48, %v4146_v0  ;;  %v4002_v31 = vpop.f32.mrb[5].mxu0  ;;  %v4011_v52 = vadd.f32 %v4621_v62, %v6008_v5 }
 0x1e1   : > { %v4003_v45 = vadd.f32 %v6008_v5, %v4002_v31  ;;  %v4622_v23 = vpop.f32.mrb[6].mxu0 }
 0x1e2   : > { %v1733_v56 = vpop.permute.xlu0 %1732  ;;  %v4150_v34 = vadd.f32 %v4149_v33, %v4148_v28  ;;  %v4005_v36 = vpop.f32.mrb[7].mxu0  ;;  %v4014_v42 = vadd.f32 %v4622_v23, %v6008_v5  ;;  %v4119_v37 = vmax.f32 %v4011_v52, 0.0 }
 0x1e3   : > { %1767 = vst.msk [vmem:[#allocation3 + $0x70] sm:$0xff] %vm1752_vm1, %v1733_v56  ;;  %v3869_v57 = vld [vmem:[#allocation3 + $0x68] sm:$0xff]  ;;  %v4117_v39 = vmax.f32 %v4003_v45, 0.0  ;;  %v4006_v29 = vadd.f32 %v6008_v5, %v4005_v36 }
 0x1e4   : > { %v1411_v35 = vpop.permute.xlu1 %1410  ;;  %4640 = vmatmul.mubr.msk.bf16.gmra.mrb[4].mxu1 %vm3899_vm7, %v3869_v57  ;;  %v4152_v47 = vadd.f32 %v4151_v38, %v4150_v34  ;;  %v4120_v59 = vmax.f32 %v4014_v42, 0.0  ;;  %v4157_v26 = vsel %vm4145_vm14, %v4119_v37, 0.0 }
 0x1e5   : > { %1444 = vst.msk [vmem:[#allocation3 + $0x78] sm:$0xff] %vm1428_vm15, %v1411_v35  ;;  %v4153_v46 = vsel %vm4145_vm14, %v4117_v39, 0.0  ;;  %v4118_v50 = vmax.f32 %v4006_v29, 0.0  ;;  %vm6186_vm15 = vmmov %vm6180_vm0 }
 0x1e6   : > { %v1910_v51 = vpop.permute.xlu0 %1909  ;;  %v4154_v54 = vadd.f32 %v4153_v46, %v4152_v47  ;;  %v4159_v53 = vsel %vm4145_vm14, %v4120_v59, 0.0 }
 0x1e7   : > { %1944 = vst.msk [vmem:[#allocation3 + $0x70] sm:$0xff] %vm1929_vm2, %v1910_v51  ;;  %v4155_v60 = vsel %vm4145_vm14, %v4118_v50, 0.0 }
 0x1e8   : > { %v1735_v19 = vpop.permute.xlu1 %1734  ;;  %v4156_v61 = vadd.f32 %v4155_v60, %v4154_v54 }
 0x1e9   : > { %1768 = vst.msk [vmem:[#allocation3 + $0x78] sm:$0xff] %vm1752_vm1, %v1735_v19  ;;  %vm6187_vm1 = vmmov %vm6180_vm0 }
 0x1ea   : > { %v4158_v4 = vadd.f32 %v4157_v26, %v4156_v61 }
 0x1ec   : > { %v4160_v8 = vadd.f32 %v4159_v53, %v4158_v4 }
 0x1ee   : > { %v2455_v2 = vpop.permute.xlu0 %2454  ;;  %v1912_v41 = vpop.permute.xlu1 %1911 }
 0x1ef   : > { %2489 = vst.msk [vmem:[#allocation3 + $0x70] sm:$0xff] %vm2474_vm3, %v2455_v2 }
 0x1f0   : > { %1945 = vst.msk [vmem:[#allocation3 + $0x78] sm:$0xff] %vm1929_vm2, %v1912_v41  ;;  %vm4848_vm2 = vmmov 0  }
 0x1f2   : > { %v2776_v55 = vpop.permute.xlu0 %2775 }
 0x1f3   : > { %2810 = vst.msk [vmem:[#allocation3 + $0x70] sm:$0xff] %vm2795_vm4, %v2776_v55 }
 0x1f6   : > { %v2954_v58 = vpop.permute.xlu0 %2953 }
 0x1f7   : > { %2988 = vst.msk [vmem:[#allocation3 + $0x70] sm:$0xff] %vm2973_vm5, %v2954_v58 }
 0x1fa   : > { %v2457_v10 = vpop.permute.xlu1 %2456 }
 0x1fb   : > { %2490 = vst.msk [vmem:[#allocation3 + $0x78] sm:$0xff] %vm2474_vm3, %v2457_v10 }
 0x1fe   : > { %v2778_v12 = vpop.permute.xlu1 %2777  ;;  %v3499_v30 = vpop.permute.xlu0 %3498 }
 0x1ff   : > { %2811 = vst.msk [vmem:[#allocation3 + $0x78] sm:$0xff] %vm2795_vm4, %v2778_v12 }
 0x200   : > { %3533 = vst.msk [vmem:[#allocation3 + $0x70] sm:$0xff] %vm3518_vm6, %v3499_v30 }
 0x202   : > { %v2956_v11 = vpop.permute.xlu1 %2955  ;;  %v3820_v6 = vpop.permute.xlu0 %3819 }
 0x203   : > { %2989 = vst.msk [vmem:[#allocation3 + $0x78] sm:$0xff] %vm2973_vm5, %v2956_v11 }
 0x204   : > { %3854 = vst.msk [vmem:[#allocation3 + $0x70] sm:$0xff] %vm6186_vm15, %v3820_v6 }
 0x205   : > { %v4625_v13 = vpop.f32.mrb[8].mxu0 }
 0x206   : > { %v3501_v9 = vpop.permute.xlu1 %3500  ;;  %v4018_v14 = vpop.f32.mrb[9].mxu0  ;;  %v4027_v15 = vadd.f32 %v4625_v13, %v6008_v5  ;;  %v4847_v13 = vmov 0.0|0.0  }
 0x207   : > { %3534 = vst.msk [vmem:[#allocation3 + $0x78] sm:$0xff] %vm3518_vm6, %v3501_v9  ;;  %v4019_v63 = vadd.f32 %v6008_v5, %v4018_v14  ;;  %v4626_v44 = vpop.f32.mrb[10].mxu0  ;;  %4658 = vmatprep.subr.bf16.mxu1 %v4847_v13  ;;  %v4215_v14 = vld [vmem:[%s6163_s3] sm:$0xff] }
 0x208   : > { %v4021_v16 = vpop.f32.mrb[11].mxu0  ;;  %v4030_v25 = vadd.f32 %v4626_v44, %v6008_v5  ;;  %v4123_v43 = vmax.f32 %v4027_v15, 0.0  ;;  %v4216_v15 = vld [vmem:[%s6163_s3 + $0x8] sm:$0xff]  ;;  %v4217_v44 = vld [vmem:[%s6163_s3 + $0x10] sm:$0xff] }
 0x209   : > { %v4121_v18 = vmax.f32 %v4019_v63, 0.0  ;;  %v4022_v17 = vadd.f32 %v6008_v5, %v4021_v16  ;;  %v4659_v63 = vpack.c.bf16 %v4216_v15, %v4215_v14 }
 0x20a   : > { %v3822_v32 = vpop.permute.xlu1 %3821  ;;  %v4124_v1 = vmax.f32 %v4030_v25, 0.0  ;;  %v4165_v22 = vsel %vm4145_vm14, %v4123_v43, 0.0 }
 0x20b   : > { %3855 = vst.msk [vmem:[#allocation3 + $0x78] sm:$0xff] %vm6187_vm1, %v3822_v32  ;;  %v3870_v3 = vld [vmem:[#allocation3 + $0x70] sm:$0xff]  ;;  %v4161_v20 = vsel %vm4145_vm14, %v4121_v18, 0.0  ;;  %v4122_v21 = vmax.f32 %v4022_v17, 0.0  ;;  %4660 = vmatpush3.bf16.msra.mxu1 %v4659_v63  ;;  %v4218_v32 = vld [vmem:[%s6163_s3 + $0x18] sm:$0xff] }
 0x20c   : > { %4643 = vmatprep.mubr.msk.bf16.mxu1 %vm3899_vm7, %v3870_v3  ;;  %v4162_v7 = vadd.f32 %v4161_v20, %v4160_v8  ;;  %v4167_v49 = vsel %vm4145_vm14, %v4124_v1, 0.0  ;;  %4661 = vmatprep.subr.bf16.mxu1 %v4847_v13  ;;  %v4662_v16 = vpack.c.bf16 %v4218_v32, %v4217_v44  ;;  %v4849_v3 = vmov 0.0  }
 0x20d   : > { %v4163_v40 = vsel %vm4145_vm14, %v4122_v21, 0.0 }
 0x20e   : > { %v4164_v24 = vadd.f32 %v4163_v40, %v4162_v7 }
 0x20f   : > { %4663 = vmatpush3.bf16.msra.mxu1 %v4662_v16 }
 0x210   : > { %v4166_v0 = vadd.f32 %v4165_v22, %v4164_v24 }
 0x212   : > { %v3871_v27 = vld [vmem:[#allocation3 + $0x78] sm:$0xff]  ;;  %v4168_v48 = vadd.f32 %v4167_v49, %v4166_v0 }
 0x213   : > { %4644 = vmatmul.mubr.msk.bf16.gmra.mrb[8].mxu1 %vm3899_vm7, %v3871_v27 }
 0x214   : > { %4655 = vmatprep.mubr.msk.f32.mxu1 %vm4848_vm2, %v4849_v3 }
 0x231   : > { %v4629_v62 = vpop.f32.mrb[12].mxu0 }
 0x232   : > { %v4034_v28 = vpop.f32.mrb[13].mxu0  ;;  %v4043_v31 = vadd.f32 %v4629_v62, %v6008_v5 }
 0x233   : > { %v4035_v33 = vadd.f32 %v6008_v5, %v4034_v28  ;;  %v4630_v52 = vpop.f32.mrb[14].mxu0 }
 0x234   : > { %v4037_v45 = vpop.f32.mrb[15].mxu0  ;;  %v4046_v56 = vadd.f32 %v4630_v52, %v6008_v5  ;;  %v4127_v36 = vmax.f32 %v4043_v31, 0.0 }
 0x235   : > { %v4125_v23 = vmax.f32 %v4035_v33, 0.0  ;;  %v4038_v34 = vadd.f32 %v6008_v5, %v4037_v45 }
 0x236   : > { %v4128_v39 = vmax.f32 %v4046_v56, 0.0  ;;  %v4173_v47 = vsel %vm4145_vm14, %v4127_v36, 0.0 }
 0x237   : > { %v4169_v35 = vsel %vm4145_vm14, %v4125_v23, 0.0  ;;  %v4126_v57 = vmax.f32 %v4038_v34, 0.0 }
 0x238   : > { %v4170_v38 = vadd.f32 %v4169_v35, %v4168_v48  ;;  %v4175_v46 = vsel %vm4145_vm14, %v4128_v39, 0.0 }
 0x239   : > { %v4171_v42 = vsel %vm4145_vm14, %v4126_v57, 0.0 }
 0x23a   : > { %v4172_v29 = vadd.f32 %v4171_v42, %v4170_v38 }
 0x23c   : > { %v4174_v37 = vadd.f32 %v4173_v47, %v4172_v29 }
 0x23e   : > { %v4176_v50 = vadd.f32 %v4175_v46, %v4174_v37 }
 0x260   : > { %v4633_v51 = vpop.f32.mrb[16].mxu0 }
 0x261   : > { %v4050_v54 = vpop.f32.mrb[17].mxu0  ;;  %v4059_v19 = vadd.f32 %v4633_v51, %v6008_v5 }
 0x262   : > { %v4051_v59 = vadd.f32 %v6008_v5, %v4050_v54  ;;  %v4634_v60 = vpop.f32.mrb[18].mxu0 }
 0x263   : > { %v4053_v61 = vpop.f32.mrb[19].mxu0  ;;  %v4062_v4 = vadd.f32 %v4634_v60, %v6008_v5  ;;  %v4131_v8 = vmax.f32 %v4059_v19, 0.0 }
 0x264   : > { %v4129_v26 = vmax.f32 %v4051_v59, 0.0  ;;  %v4054_v53 = vadd.f32 %v6008_v5, %v4053_v61 }
 0x265   : > { %v4132_v58 = vmax.f32 %v4062_v4, 0.0  ;;  %v4181_v30 = vsel %vm4145_vm14, %v4131_v8, 0.0 }
 0x266   : > { %v4177_v2 = vsel %vm4145_vm14, %v4129_v26, 0.0  ;;  %v4130_v41 = vmax.f32 %v4054_v53, 0.0 }
 0x267   : > { %v4178_v55 = vadd.f32 %v4177_v2, %v4176_v50  ;;  %v4183_v6 = vsel %vm4145_vm14, %v4132_v58, 0.0 }
 0x268   : > { %v4179_v10 = vsel %vm4145_vm14, %v4130_v41, 0.0 }
 0x269   : > { %v4180_v12 = vadd.f32 %v4179_v10, %v4178_v55 }
 0x26b   : > { %v4182_v11 = vadd.f32 %v4181_v30, %v4180_v12 }
 0x26d   : > { %v4184_v9 = vadd.f32 %v4183_v6, %v4182_v11 }
 0x28c   : > { %v4637_v18 = vpop.f32.mrb[0].mxu1 }
 0x28d   : > { %v4066_v25 = vpop.f32.mrb[1].mxu1  ;;  %v4075_v17 = vadd.f32 %v4637_v18, %v6008_v5 }
 0x28e   : > { %v4067_v43 = vadd.f32 %v6008_v5, %v4066_v25  ;;  %v4638_v20 = vpop.f32.mrb[2].mxu1 }
 0x28f   : > { %v4069_v21 = vpop.f32.mrb[3].mxu1  ;;  %v4078_v1 = vadd.f32 %v4638_v20, %v6008_v5  ;;  %v4135_v24 = vmax.f32 %v4075_v17, 0.0  ;;  %v4219_v17 = vld [vmem:[%s6164_s4] sm:$0x1] }
 0x290   : > { %v4133_v7 = vmax.f32 %v4067_v43, 0.0  ;;  %v4070_v40 = vadd.f32 %v6008_v5, %v4069_v21 }
 0x291   : > { %v4136_v49 = vmax.f32 %v4078_v1, 0.0  ;;  %v4189_v28 = vsel %vm4145_vm14, %v4135_v24, 0.0 }
 0x292   : > { %v4185_v22 = vsel %vm4145_vm14, %v4133_v7, 0.0  ;;  %v4134_v27 = vmax.f32 %v4070_v40, 0.0 }
 0x293   : > { %v4186_v0 = vadd.f32 %v4185_v22, %v4184_v9  ;;  %v4191_v33 = vsel %vm4145_vm14, %v4136_v49, 0.0 }
 0x294   : > { %v4187_v48 = vsel %vm4145_vm14, %v4134_v27, 0.0 }
 0x295   : > { %v4188_v62 = vadd.f32 %v4187_v48, %v4186_v0 }
 0x297   : > { %v4190_v31 = vadd.f32 %v4189_v28, %v4188_v62 }
 0x299   : > { %v4192_v52 = vadd.f32 %v4191_v33, %v4190_v31 }
 0x2b7   : > { %v4641_v45 = vpop.f32.mrb[4].mxu1 }
 0x2b8   : > { %v4082_v23 = vpop.f32.mrb[5].mxu1  ;;  %v4091_v56 = vadd.f32 %v4641_v45, %v6008_v5 }
 0x2b9   : > { %v4083_v34 = vadd.f32 %v6008_v5, %v4082_v23  ;;  %v4642_v36 = vpop.f32.mrb[6].mxu1 }
 0x2ba   : > { %v4085_v35 = vpop.f32.mrb[7].mxu1  ;;  %v4094_v38 = vadd.f32 %v4642_v36, %v6008_v5  ;;  %v4139_v42 = vmax.f32 %v4091_v56, 0.0 }
 0x2bb   : > { %v4137_v57 = vmax.f32 %v4083_v34, 0.0  ;;  %v4086_v39 = vadd.f32 %v6008_v5, %v4085_v35 }
 0x2bc   : > { %v4140_v46 = vmax.f32 %v4094_v38, 0.0  ;;  %v4197_v54 = vsel %vm4145_vm14, %v4139_v42, 0.0 }
 0x2bd   : > { %v4193_v29 = vsel %vm4145_vm14, %v4137_v57, 0.0  ;;  %v4138_v47 = vmax.f32 %v4086_v39, 0.0 }
 0x2be   : > { %v4194_v37 = vadd.f32 %v4193_v29, %v4192_v52  ;;  %v4199_v59 = vsel %vm4145_vm14, %v4140_v46, 0.0 }
 0x2bf   : > { %v4195_v50 = vsel %vm4145_vm14, %v4138_v47, 0.0 }
 0x2c0   : > { %v4196_v51 = vadd.f32 %v4195_v50, %v4194_v37 }
 0x2c2   : > { %v4198_v19 = vadd.f32 %v4197_v54, %v4196_v51 }
 0x2c4   : > { %v4200_v60 = vadd.f32 %v4199_v59, %v4198_v19 }
 0x2e6   : > { %v4645_v61 = vpop.f32.mrb[8].mxu1 }
 0x2e7   : > { %v4098_v26 = vpop.f32.mrb[9].mxu1  ;;  %v4107_v4 = vadd.f32 %v4645_v61, %v6008_v5 }
 0x2e8   : > { %v4099_v53 = vadd.f32 %v6008_v5, %v4098_v26  ;;  %v4646_v8 = vpop.f32.mrb[10].mxu1 }
 0x2e9   : > { %v4101_v2 = vpop.f32.mrb[11].mxu1  ;;  %v4110_v55 = vadd.f32 %v4646_v8, %v6008_v5  ;;  %v4143_v10 = vmax.f32 %v4107_v4, 0.0 }
 0x2ea   : > { %v4141_v41 = vmax.f32 %v4099_v53, 0.0  ;;  %v4102_v58 = vadd.f32 %v6008_v5, %v4101_v2 }
 0x2eb   : > { %v4144_v6 = vmax.f32 %v4110_v55, 0.0  ;;  %v4205_v14 = vsel %vm4145_vm14, %v4143_v10, 0.0 }
 0x2ec   : > { %v4201_v12 = vsel %vm4145_vm14, %v4141_v41, 0.0  ;;  %v4142_v30 = vmax.f32 %v4102_v58, 0.0 }
 0x2ed   : > { %v4202_v11 = vadd.f32 %v4201_v12, %v4200_v60  ;;  %v4207_v63 = vsel %vm4145_vm14, %v4144_v6, 0.0 }
 0x2ee   : > { %v4203_v9 = vsel %vm4145_vm14, %v4142_v30, 0.0 }
 0x2ef   : > { %v4204_v13 = vadd.f32 %v4203_v9, %v4202_v11 }
 0x2f1   : > { %v4206_v15 = vadd.f32 %v4205_v14, %v4204_v13 }
 0x2f3   : > { %v4208_v44 = vadd.f32 %v4207_v63, %v4206_v15 }
 0x2f5   : > { %v4209_v32 = vrot.slane %v4208_v44, 4 }
 0x2f7   : > { %v4210_v16 = vadd.f32 %v4209_v32, %v4208_v44 }
 0x2f9   : > { %v4211_v5 = vrot.slane %v4210_v16, 2 }
 0x2fb   : > { %v4212_v3 = vadd.f32 %v4211_v5, %v4210_v16 }
 0x2fd   : > { %v4213_v18 = vrot.slane %v4212_v3, 1 }
 0x2ff   : > { %v4214_v25 = vadd.f32 %v4213_v18, %v4212_v3 }
 0x301   : > { %4656 = vmatmul.mubr.msk.f32.vlgmr.msra.gmra.mrb[12].mxu1 %vm4145_vm14, %v4214_v25 }
 0x3d4   : > { %v4289_v43 = vpop.f32.mrb[12].mxu1 }
 0x3d5   : > { %v4290_v20 = vadd.f32 %v4289_v43, %v4219_v17  ;;  %v4657_v21 = vpop.f32.mrb[13].mxu1 }
 0x3d7   : > { %4293 = vst [vmem:[%s216_s6] sm:$0x1] %v4290_v20 }
 0x3d8   : > { %4787 = shalt.err (!%p4784_p3)
}
 0x3d9   : > { %s4788_s15 = scalar_lea.hbm %s6118_s10, 16  ;;  %s4792_s23 = scalar_lea.hbm %s6165_s5, 32 }
 0x3da   : > { %p4789_p4 = scmp.ne.s32.totalorder %s6118_s10, %s4788_s15  ;;  %p4793_p9 = scmp.lt.u32.totalorder %s6118_s10, %s6165_s5 }
 0x3db   : > { %p4794_p10 = scmp.lt.u32.totalorder %s4792_s23, %s4788_s15  ;;  %p4796_p12 = scmp.lt.u32.totalorder %s4788_s15, %s6118_s10 }
 0x3dc   : > { %p4790_p7 = pnand %p4789_p4, %p4919_p5 }
 0x3dd   : > { %p4795_p11 = por %p4794_p10, %p4793_p9 }
 0x3de   : > { %p4791_p8 = pneg %p4790_p7 }
 0x3df   : > { %p4797_p13 = por %p4796_p12, %p4795_p11 }
 0x3e1   : > { %p4798_p0 = pnand %p4797_p13, %p4791_p8 }
 0x3e3   : > { %4801 = shalt.err (!%p4798_p0)
}
 0x3e4   : > { %4672 = dma.vmem_to_hbm [thread:$0]  (%p4919_p5), %s6120_s7, 16, %s6118_s10, %s4295_s11  }
 0x3e5 PF: > { %p4678_p1 = scmp.ge.s32.totalorder %s4836_s21, 2  ;;  %s4319_s30 = sand.u32 1, %s4824_s18  }
 0x3e6   : > { %s4320_s6 = scalar_lea.sflag [#allocation5], %s4319_s30 }
 0x3e7   : > { %p4675_p2 = pnand %p4678_p1, %p4923_p6 }
 0x3e9   : > { %4819 = dma.done.wait (!%p4675_p2), %s4320_s6, 16  }
 0x3ea   : > { %4821 = vsyncadd (!%p4675_p2), %s4320_s6, 4294967280  ;;  %p15_p3 = scmp.ge.s32.totalorder %s4906_s24, 4   ;;  %s6188_s18 = smov %s4828_s19 }
 0x3eb   : > { %s6189_s19 = smov %s4832_s20  ;;  %s6190_s20 = smov %s4917_s27 }
 0x3ec   : > { %s6191_s21 = smov %s4906_s24  ;;  %17 = sbr.rel (!%p15_p3) target bundleno = 3 (0x3), region = 77 }
 0x3f3   :  { %4324 = vsyncpa [#allocation5], 1 }
 0x3f4   :  { %4326 = vsyncpa [#allocation5 + $0x1], 1 }

</bundles_post_ra>
